<compile_context>
chip_gen: v6e
topology: v6e:2x2x1
jax: 0.10.0
libtpu: 0.0.40
codegen_flags: <defaults>
</compile_context>

<pallas_src>
import functools
from math import sqrt

import jax
import jax.numpy as jnp
from jax.experimental import pallas as pl
from jax.experimental.pallas import tpu as pltpu

EPS = 1e-6


# --------------------------------------------------------------------------
# Final LayerNormalisation kernel:  alpha * (x - mean) / (std + eps) + bias
# (unbiased std, matching torch.Tensor.std default)
# --------------------------------------------------------------------------
def _layernorm_kernel(x_ref, alpha_ref, bias_ref, o_ref):
    x = x_ref[...].astype(jnp.float32)                       # (tm, D)
    d = x.shape[-1]
    mean = jnp.mean(x, axis=-1, keepdims=True)
    var = jnp.sum((x - mean) ** 2, axis=-1, keepdims=True) / (d - 1)
    y = alpha_ref[0] * (x - mean) / (jnp.sqrt(var) + EPS) + bias_ref[0]
    o_ref[...] = y.astype(o_ref.dtype)


def layer_norm(x, alpha, bias):
    B, S, D = x.shape
    N = B * S
    tm = N if N <= 256 else 256
    assert N % tm == 0
    xf = x.reshape(N, D)
    out = pl.pallas_call(
        _layernorm_kernel,
        out_shape=jax.ShapeDtypeStruct((N, D), x.dtype),
        grid=(N // tm,),
        in_specs=[
            pl.BlockSpec((tm, D), lambda i: (i, 0)),
            pl.BlockSpec(memory_space=pltpu.MemorySpace.SMEM),
            pl.BlockSpec(memory_space=pltpu.MemorySpace.SMEM),
        ],
        out_specs=pl.BlockSpec((tm, D), lambda i: (i, 0)),
        compiler_params=pltpu.CompilerParams(
            dimension_semantics=("parallel",)),
    )(xf, alpha, bias)
    return out.reshape(B, S, D)


# --------------------------------------------------------------------------
# Fused attention sublayer kernel (one batch row per grid step):
#   n   = LayerNorm(x)
#   q   = n @ Wq + bq ;  k,v from (n if self-attn else enc) @ Wk/Wv + b
#   per head h (static lane slices, no head transpose):
#     s = q_h k_h^T / sqrt(dk);  s[mask==0] = -1e9;  softmax;  ctx_h = p v_h
#     acc += ctx_h @ Wo[h*dk:(h+1)*dk, :]
#   out = x + (acc + bo)          (pre-norm residual connection)
# --------------------------------------------------------------------------
def _attn_sublayer_kernel(x_ref, kv_ref, mask_ref,
                          alpha_ref, beta_ref,
                          wq_ref, bq_ref, wk_ref, bk_ref,
                          wv_ref, bv_ref, wo_ref, bo_ref,
                          o_ref, *, num_heads, scale, self_attn):
    x = x_ref[0].astype(jnp.float32)                          # (Sq, D)
    Sq, D = x.shape
    dk = D // num_heads

    # pre-norm (LayerNormalisation: unbiased std, eps added to std)
    mean = jnp.mean(x, axis=-1, keepdims=True)
    var = jnp.sum((x - mean) ** 2, axis=-1, keepdims=True) / (D - 1)
    n = alpha_ref[0] * (x - mean) / (jnp.sqrt(var) + EPS) + beta_ref[0]

    kv_in = n if self_attn else kv_ref[0].astype(jnp.float32)  # (Sk, D)

    q = jnp.dot(n, wq_ref[...], preferred_element_type=jnp.float32) + bq_ref[...]
    k = jnp.dot(kv_in, wk_ref[...], preferred_element_type=jnp.float32) + bk_ref[...]
    v = jnp.dot(kv_in, wv_ref[...], preferred_element_type=jnp.float32) + bv_ref[...]

    wo = wo_ref[...].astype(jnp.float32)                      # (D, D)
    mask = mask_ref[0, 0]                                     # (Sq, Sk), float 0/1

    acc = jnp.broadcast_to(bo_ref[...].astype(jnp.float32), (Sq, D))
    for h in range(num_heads):                                # static, unrolled
        sl = slice(h * dk, (h + 1) * dk)
        qh = q[:, sl]                                         # (Sq, dk)
        kh = k[:, sl]                                         # (Sk, dk)
        vh = v[:, sl]                                         # (Sk, dk)
        s = jax.lax.dot_general(
            qh, kh, dimension_numbers=(((1,), (1,)), ((), ())),
            preferred_element_type=jnp.float32) * scale        # (Sq, Sk)
        s = jnp.where(mask == 0.0, jnp.float32(-1e9), s)
        s = s - jnp.max(s, axis=-1, keepdims=True)
        p = jnp.exp(s)
        p = p * pl.reciprocal(jnp.sum(p, axis=-1, keepdims=True), approx=True)
        ctx = jnp.dot(p, vh, preferred_element_type=jnp.float32)      # (Sq, dk)
        acc = acc + jnp.dot(ctx, wo[sl, :], preferred_element_type=jnp.float32)

    o_ref[0] = (x + acc).astype(o_ref.dtype)


def attention_sublayer(x, kv, mask, p, alpha, beta, num_heads, self_attn):
    B, Sq, D = x.shape
    Sk = kv.shape[1]
    scale = 1.0 / sqrt(D // num_heads)
    kernel = functools.partial(
        _attn_sublayer_kernel, num_heads=num_heads, scale=scale,
        self_attn=self_attn)
    return pl.pallas_call(
        kernel,
        out_shape=jax.ShapeDtypeStruct((B, Sq, D), x.dtype),
        grid=(B,),
        in_specs=[
            pl.BlockSpec((1, Sq, D), lambda b: (b, 0, 0)),
            pl.BlockSpec((1, Sk, D), lambda b: (b, 0, 0)),
            pl.BlockSpec((1, 1, Sq, Sk), lambda b: (b, 0, 0, 0)),
            pl.BlockSpec(memory_space=pltpu.MemorySpace.SMEM),
            pl.BlockSpec(memory_space=pltpu.MemorySpace.SMEM),
            pl.BlockSpec((D, D), lambda b: (0, 0)),
            pl.BlockSpec((1, D), lambda b: (0, 0)),
            pl.BlockSpec((D, D), lambda b: (0, 0)),
            pl.BlockSpec((1, D), lambda b: (0, 0)),
            pl.BlockSpec((D, D), lambda b: (0, 0)),
            pl.BlockSpec((1, D), lambda b: (0, 0)),
            pl.BlockSpec((D, D), lambda b: (0, 0)),
            pl.BlockSpec((1, D), lambda b: (0, 0)),
        ],
        out_specs=pl.BlockSpec((1, Sq, D), lambda b: (b, 0, 0)),
        compiler_params=pltpu.CompilerParams(
            dimension_semantics=("parallel",)),
    )(x, kv, mask, alpha, beta,
      p["wq"], p["bq"].reshape(1, D), p["wk"], p["bk"].reshape(1, D),
      p["wv"], p["bv"].reshape(1, D), p["wo"], p["bo"].reshape(1, D))


# --------------------------------------------------------------------------
# Fused feed-forward sublayer kernel (one batch row per grid step):
#   n = LayerNorm(x);  h = relu(n @ W1 + b1);  out = x + (h @ W2 + b2)
# --------------------------------------------------------------------------
def _ffn_sublayer_kernel(x_ref, alpha_ref, beta_ref,
                         w1_ref, b1_ref, w2_ref, b2_ref, o_ref):
    x = x_ref[0].astype(jnp.float32)                          # (S, D)
    D = x.shape[-1]
    mean = jnp.mean(x, axis=-1, keepdims=True)
    var = jnp.sum((x - mean) ** 2, axis=-1, keepdims=True) / (D - 1)
    n = alpha_ref[0] * (x - mean) / (jnp.sqrt(var) + EPS) + beta_ref[0]

    h = jnp.dot(n, w1_ref[...], preferred_element_type=jnp.float32) + b1_ref[...]
    h = jnp.maximum(h, 0.0)
    y = jnp.dot(h, w2_ref[...], preferred_element_type=jnp.float32) + b2_ref[...]
    o_ref[0] = (x + y).astype(o_ref.dtype)


def ffn_sublayer(x, alpha, beta, w1, b1, w2, b2):
    B, S, D = x.shape
    DFF = w1.shape[1]
    return pl.pallas_call(
        _ffn_sublayer_kernel,
        out_shape=jax.ShapeDtypeStruct((B, S, D), x.dtype),
        grid=(B,),
        in_specs=[
            pl.BlockSpec((1, S, D), lambda b: (b, 0, 0)),
            pl.BlockSpec(memory_space=pltpu.MemorySpace.SMEM),
            pl.BlockSpec(memory_space=pltpu.MemorySpace.SMEM),
            pl.BlockSpec((D, DFF), lambda b: (0, 0)),
            pl.BlockSpec((1, DFF), lambda b: (0, 0)),
            pl.BlockSpec((DFF, D), lambda b: (0, 0)),
            pl.BlockSpec((1, D), lambda b: (0, 0)),
        ],
        out_specs=pl.BlockSpec((1, S, D), lambda b: (b, 0, 0)),
        compiler_params=pltpu.CompilerParams(
            dimension_semantics=("parallel",)),
    )(x, alpha, beta, w1, b1.reshape(1, DFF), w2, b2.reshape(1, D))


# --------------------------------------------------------------------------
# Decoder block + full decoder forward
# (ResidualConnection is pre-norm: x + sublayer(norm(x)); dropout = identity
#  at inference, so it is omitted.)
# --------------------------------------------------------------------------
def decoder_block(p, x, enc, src_mask, tgt_mask, num_heads):
    x = attention_sublayer(x, x, tgt_mask, p["self_attn"],
                           p["norm1_alpha"], p["norm1_bias"],
                           num_heads, self_attn=True)
    x = attention_sublayer(x, enc, src_mask, p["cross_attn"],
                           p["norm2_alpha"], p["norm2_bias"],
                           num_heads, self_attn=False)
    x = ffn_sublayer(x, p["norm3_alpha"], p["norm3_bias"],
                     p["ff_w1"], p["ff_b1"], p["ff_w2"], p["ff_b2"])
    return x


def decoder_forward(params, x, encoded_output, src_mask, tgt_mask, num_heads):
    for blk in params["blocks"]:
        x = decoder_block(blk, x, encoded_output, src_mask, tgt_mask, num_heads)
    return layer_norm(x, params["norm_alpha"], params["norm_bias"])


# --------------------------------------------------------------------------
# Deterministic parameter construction
# --------------------------------------------------------------------------
def init_attn_params(key, d_model):
    ks = jax.random.split(key, 4)
    def lin(k):
        return (0.02 * jax.random.normal(k, (d_model, d_model), jnp.float32),
                jnp.zeros((d_model,), jnp.float32))
    wq, bq = lin(ks[0]); wk, bk = lin(ks[1]); wv, bv = lin(ks[2]); wo, bo = lin(ks[3])
    return dict(wq=wq, bq=bq, wk=wk, bk=bk, wv=wv, bv=bv, wo=wo, bo=bo)


def init_block_params(key, d_model, d_ff):
    ks = jax.random.split(key, 4)
    return dict(
        self_attn=init_attn_params(ks[0], d_model),
        cross_attn=init_attn_params(ks[1], d_model),
        ff_w1=0.02 * jax.random.normal(ks[2], (d_model, d_ff), jnp.float32),
        ff_b1=jnp.zeros((d_ff,), jnp.float32),
        ff_w2=0.02 * jax.random.normal(ks[3], (d_ff, d_model), jnp.float32),
        ff_b2=jnp.zeros((d_model,), jnp.float32),
        norm1_alpha=jnp.ones((1,), jnp.float32), norm1_bias=jnp.zeros((1,), jnp.float32),
        norm2_alpha=jnp.ones((1,), jnp.float32), norm2_bias=jnp.zeros((1,), jnp.float32),
        norm3_alpha=jnp.ones((1,), jnp.float32), norm3_bias=jnp.zeros((1,), jnp.float32),
    )


def init_decoder_params(key, num_blocks, d_model, d_ff):
    ks = jax.random.split(key, num_blocks)
    return dict(
        blocks=[init_block_params(ks[i], d_model, d_ff) for i in range(num_blocks)],
        norm_alpha=jnp.ones((1,), jnp.float32),
        norm_bias=jnp.zeros((1,), jnp.float32),
    )


if __name__ == "__main__":
    # Small but lane-dense shapes: D = 128 (one full vreg lane width), d_ff = 256.
    B, S, D, H, DFF, NBLOCKS = 2, 16, 128, 4, 256, 2

    key = jax.random.PRNGKey(0)
    k_par, k_x, k_enc = jax.random.split(key, 3)

    params = init_decoder_params(k_par, NBLOCKS, D, DFF)
    x = jax.random.normal(k_x, (B, S, D), jnp.float32)
    encoded_output = jax.random.normal(k_enc, (B, S, D), jnp.float32)

    # src_mask: all-ones padding mask; tgt_mask: causal mask (1 = keep, 0 = mask)
    src_mask = jnp.ones((B, 1, S, S), jnp.float32)
    causal = jnp.tril(jnp.ones((S, S), jnp.float32))
    tgt_mask = jnp.broadcast_to(causal[None, None], (B, 1, S, S))

    fwd = jax.jit(functools.partial(decoder_forward, num_heads=H))
    out = fwd(params, x, encoded_output, src_mask, tgt_mask)
    out = jax.block_until_ready(out)

    assert out.shape == (B, S, D)
    assert bool(jnp.all(jnp.isfinite(out)))
    print("KERNEL_OK")
</pallas_src>

<mosaic_0001>
module attributes {stable_mosaic.version = 11 : i64} {
  func.func @_attn_sublayer_kernel(%arg0: i32, %arg1: memref<1x16x128xf32, #tpu.memory_space<vmem>>, %arg2: memref<1x16x128xf32, #tpu.memory_space<vmem>>, %arg3: memref<1x1x16x16xf32, #tpu.memory_space<vmem>>, %arg4: memref<1xf32, #tpu.memory_space<smem>>, %arg5: memref<1xf32, #tpu.memory_space<smem>>, %arg6: memref<128x128xf32, #tpu.memory_space<vmem>>, %arg7: memref<1x128xf32, #tpu.memory_space<vmem>>, %arg8: memref<128x128xf32, #tpu.memory_space<vmem>>, %arg9: memref<1x128xf32, #tpu.memory_space<vmem>>, %arg10: memref<128x128xf32, #tpu.memory_space<vmem>>, %arg11: memref<1x128xf32, #tpu.memory_space<vmem>>, %arg12: memref<128x128xf32, #tpu.memory_space<vmem>>, %arg13: memref<1x128xf32, #tpu.memory_space<vmem>>, %arg14: memref<1x16x128xf32, #tpu.memory_space<vmem>>) attributes {dimension_semantics = [#tpu.dimension_semantics<parallel>], iteration_bounds = array<i64: 2>, scalar_prefetch = 0 : i64, scratch_operands = 0 : i64, tpu.core_type = #tpu.core_type<tc>, window_params = [{transform_indices = @transform_0, window_bounds = array<i64: 1, 16, 128>}, {transform_indices = @transform_1, window_bounds = array<i64: 1, 16, 128>}, {transform_indices = @transform_2, window_bounds = array<i64: 1, 1, 16, 16>}, {transform_indices = @transform_3, window_bounds = array<i64: 1>}, {transform_indices = @transform_4, window_bounds = array<i64: 1>}, {pipeline_mode = #tpu.pipeline_mode<synchronous>, transform_indices = @transform_5, window_bounds = array<i64: 128, 128>}, {pipeline_mode = #tpu.pipeline_mode<synchronous>, transform_indices = @transform_6, window_bounds = array<i64: 1, 128>}, {pipeline_mode = #tpu.pipeline_mode<synchronous>, transform_indices = @transform_7, window_bounds = array<i64: 128, 128>}, {pipeline_mode = #tpu.pipeline_mode<synchronous>, transform_indices = @transform_8, window_bounds = array<i64: 1, 128>}, {pipeline_mode = #tpu.pipeline_mode<synchronous>, transform_indices = @transform_9, window_bounds = array<i64: 128, 128>}, {pipeline_mode = #tpu.pipeline_mode<synchronous>, transform_indices = @transform_10, window_bounds = array<i64: 1, 128>}, {pipeline_mode = #tpu.pipeline_mode<synchronous>, transform_indices = @transform_11, window_bounds = array<i64: 128, 128>}, {pipeline_mode = #tpu.pipeline_mode<synchronous>, transform_indices = @transform_12, window_bounds = array<i64: 1, 128>}, {transform_indices = @transform_13, window_bounds = array<i64: 1, 16, 128>}]} {
    %c0 = arith.constant 0 : index
    %c0_0 = arith.constant 0 : index
    %c0_1 = arith.constant 0 : index
    %0 = vector.load %arg1[%c0, %c0_0, %c0_1] : memref<1x16x128xf32, #tpu.memory_space<vmem>>, vector<1x16x128xf32>
    %1 = vector.shape_cast %0 : vector<1x16x128xf32> to vector<16x128xf32>
    %cst = arith.constant dense<0.000000e+00> : vector<16xf32>
    %2 = vector.multi_reduction <add>, %1, %cst [1] : vector<16x128xf32> to vector<16xf32>
    %3 = vector.shape_cast %2 : vector<16xf32> to vector<16x1xf32>
    %cst_2 = arith.constant 1.280000e+02 : f32
    %4 = vector.broadcast %cst_2 : f32 to vector<16x1xf32>
    %5 = arith.divf %3, %4 : vector<16x1xf32>
    %6 = vector.broadcast %5 : vector<16x1xf32> to vector<16x128xf32>
    %7 = arith.subf %1, %6 : vector<16x128xf32>
    %8 = arith.mulf %7, %7 : vector<16x128xf32>
    %cst_3 = arith.constant dense<0.000000e+00> : vector<16xf32>
    %9 = vector.multi_reduction <add>, %8, %cst_3 [1] : vector<16x128xf32> to vector<16xf32>
    %10 = vector.shape_cast %9 : vector<16xf32> to vector<16x1xf32>
    %cst_4 = arith.constant 1.270000e+02 : f32
    %11 = vector.broadcast %cst_4 : f32 to vector<16x1xf32>
    %12 = arith.divf %10, %11 : vector<16x1xf32>
    %c0_5 = arith.constant 0 : index
    %13 = memref.load %arg4[%c0_5] : memref<1xf32, #tpu.memory_space<smem>>
    %14 = vector.broadcast %5 : vector<16x1xf32> to vector<16x128xf32>
    %15 = arith.subf %1, %14 : vector<16x128xf32>
    %16 = vector.broadcast %13 : f32 to vector<16x128xf32>
    %17 = arith.mulf %16, %15 : vector<16x128xf32>
    %18 = math.sqrt %12 : vector<16x1xf32>
    %cst_6 = arith.constant 9.99999997E-7 : f32
    %19 = vector.broadcast %cst_6 : f32 to vector<16x1xf32>
    %20 = arith.addf %18, %19 : vector<16x1xf32>
    %21 = vector.broadcast %20 : vector<16x1xf32> to vector<16x128xf32>
    %22 = arith.divf %17, %21 : vector<16x128xf32>
    %c0_7 = arith.constant 0 : index
    %23 = memref.load %arg5[%c0_7] : memref<1xf32, #tpu.memory_space<smem>>
    %24 = vector.broadcast %23 : f32 to vector<16x128xf32>
    %25 = arith.addf %22, %24 : vector<16x128xf32>
    %c0_8 = arith.constant 0 : index
    %c0_9 = arith.constant 0 : index
    %26 = vector.load %arg6[%c0_8, %c0_9] : memref<128x128xf32, #tpu.memory_space<vmem>>, vector<128x128xf32>
    %cst_10 = arith.constant dense<0.000000e+00> : vector<16x128xf32>
    %27 = tpu.matmul %25, %26, %cst_10 {dimension_numbers = #tpu.dot_dimension_numbers<[1], [0], [0], [1], [0, 0, 1, 1], [], []>} : vector<16x128xf32>, vector<128x128xf32>, vector<16x128xf32> -> vector<16x128xf32>
    %c0_11 = arith.constant 0 : index
    %c0_12 = arith.constant 0 : index
    %28 = vector.load %arg7[%c0_11, %c0_12] : memref<1x128xf32, #tpu.memory_space<vmem>>, vector<1x128xf32>
    %29 = vector.broadcast %28 : vector<1x128xf32> to vector<16x128xf32>
    %30 = arith.addf %27, %29 : vector<16x128xf32>
    %c0_13 = arith.constant 0 : index
    %c0_14 = arith.constant 0 : index
    %31 = vector.load %arg8[%c0_13, %c0_14] : memref<128x128xf32, #tpu.memory_space<vmem>>, vector<128x128xf32>
    %cst_15 = arith.constant dense<0.000000e+00> : vector<16x128xf32>
    %32 = tpu.matmul %25, %31, %cst_15 {dimension_numbers = #tpu.dot_dimension_numbers<[1], [0], [0], [1], [0, 0, 1, 1], [], []>} : vector<16x128xf32>, vector<128x128xf32>, vector<16x128xf32> -> vector<16x128xf32>
    %c0_16 = arith.constant 0 : index
    %c0_17 = arith.constant 0 : index
    %33 = vector.load %arg9[%c0_16, %c0_17] : memref<1x128xf32, #tpu.memory_space<vmem>>, vector<1x128xf32>
    %34 = vector.broadcast %33 : vector<1x128xf32> to vector<16x128xf32>
    %35 = arith.addf %32, %34 : vector<16x128xf32>
    %c0_18 = arith.constant 0 : index
    %c0_19 = arith.constant 0 : index
    %36 = vector.load %arg10[%c0_18, %c0_19] : memref<128x128xf32, #tpu.memory_space<vmem>>, vector<128x128xf32>
    %cst_20 = arith.constant dense<0.000000e+00> : vector<16x128xf32>
    %37 = tpu.matmul %25, %36, %cst_20 {dimension_numbers = #tpu.dot_dimension_numbers<[1], [0], [0], [1], [0, 0, 1, 1], [], []>} : vector<16x128xf32>, vector<128x128xf32>, vector<16x128xf32> -> vector<16x128xf32>
    %c0_21 = arith.constant 0 : index
    %c0_22 = arith.constant 0 : index
    %38 = vector.load %arg11[%c0_21, %c0_22] : memref<1x128xf32, #tpu.memory_space<vmem>>, vector<1x128xf32>
    %39 = vector.broadcast %38 : vector<1x128xf32> to vector<16x128xf32>
    %40 = arith.addf %37, %39 : vector<16x128xf32>
    %c0_23 = arith.constant 0 : index
    %c0_24 = arith.constant 0 : index
    %41 = vector.load %arg12[%c0_23, %c0_24] : memref<128x128xf32, #tpu.memory_space<vmem>>, vector<128x128xf32>
    %c0_25 = arith.constant 0 : index
    %c0_26 = arith.constant 0 : index
    %c0_27 = arith.constant 0 : index
    %c0_28 = arith.constant 0 : index
    %42 = vector.load %arg3[%c0_25, %c0_26, %c0_27, %c0_28] : memref<1x1x16x16xf32, #tpu.memory_space<vmem>>, vector<1x1x16x16xf32>
    %43 = vector.shape_cast %42 : vector<1x1x16x16xf32> to vector<16x16xf32>
    %c0_29 = arith.constant 0 : index
    %c0_30 = arith.constant 0 : index
    %44 = vector.load %arg13[%c0_29, %c0_30] : memref<1x128xf32, #tpu.memory_space<vmem>>, vector<1x128xf32>
    %45 = vector.shape_cast %44 : vector<1x128xf32> to vector<1x128xf32>
    %46 = vector.broadcast %45 : vector<1x128xf32> to vector<16x128xf32>
    %47 = vector.extract_strided_slice %30 {offsets = [0, 0], sizes = [16, 32], strides = [1, 1]} : vector<16x128xf32> to vector<16x32xf32>
    %48 = vector.extract_strided_slice %35 {offsets = [0, 0], sizes = [16, 32], strides = [1, 1]} : vector<16x128xf32> to vector<16x32xf32>
    %49 = vector.extract_strided_slice %40 {offsets = [0, 0], sizes = [16, 32], strides = [1, 1]} : vector<16x128xf32> to vector<16x32xf32>
    %cst_31 = arith.constant dense<0.000000e+00> : vector<16x16xf32>
    %50 = tpu.matmul %47, %48, %cst_31 {dimension_numbers = #tpu.dot_dimension_numbers<[1], [1], [0], [0], [0, 0, 1, 0], [], []>} : vector<16x32xf32>, vector<16x32xf32>, vector<16x16xf32> -> vector<16x16xf32>
    %cst_32 = arith.constant 0.176776692 : f32
    %51 = vector.broadcast %cst_32 : f32 to vector<16x16xf32>
    %52 = arith.mulf %50, %51 : vector<16x16xf32>
    %cst_33 = arith.constant 0.000000e+00 : f32
    %53 = vector.broadcast %cst_33 : f32 to vector<16x16xf32>
    %54 = arith.cmpf oeq, %43, %53 : vector<16x16xf32>
    %cst_34 = arith.constant -1.000000e+09 : f32
    %55 = vector.broadcast %cst_34 : f32 to vector<16x16xf32>
    %56 = arith.select %54, %55, %52 : vector<16x16xi1>, vector<16x16xf32>
    %cst_35 = arith.constant dense<0xFF800000> : vector<16xf32>
    %57 = vector.multi_reduction <maximumf>, %56, %cst_35 [1] : vector<16x16xf32> to vector<16xf32>
    %58 = vector.shape_cast %57 : vector<16xf32> to vector<16x1xf32>
    %59 = vector.broadcast %58 : vector<16x1xf32> to vector<16x16xf32>
    %60 = arith.subf %56, %59 : vector<16x16xf32>
    %61 = math.exp %60 : vector<16x16xf32>
    %cst_36 = arith.constant dense<0.000000e+00> : vector<16xf32>
    %62 = vector.multi_reduction <add>, %61, %cst_36 [1] : vector<16x16xf32> to vector<16xf32>
    %63 = vector.shape_cast %62 : vector<16xf32> to vector<16x1xf32>
    %64 = tpu.reciprocal %63 {approx = true} : vector<16x1xf32> -> vector<16x1xf32>
    %65 = vector.broadcast %64 : vector<16x1xf32> to vector<16x16xf32>
    %66 = arith.mulf %61, %65 : vector<16x16xf32>
    %cst_37 = arith.constant dense<0.000000e+00> : vector<16x32xf32>
    %67 = tpu.matmul %66, %49, %cst_37 {dimension_numbers = #tpu.dot_dimension_numbers<[1], [0], [0], [1], [0, 0, 1, 1], [], []>} : vector<16x16xf32>, vector<16x32xf32>, vector<16x32xf32> -> vector<16x32xf32>
    %68 = vector.extract_strided_slice %41 {offsets = [0, 0], sizes = [32, 128], strides = [1, 1]} : vector<128x128xf32> to vector<32x128xf32>
    %cst_38 = arith.constant dense<0.000000e+00> : vector<16x128xf32>
    %69 = tpu.matmul %67, %68, %cst_38 {dimension_numbers = #tpu.dot_dimension_numbers<[1], [0], [0], [1], [0, 0, 1, 1], [], []>} : vector<16x32xf32>, vector<32x128xf32>, vector<16x128xf32> -> vector<16x128xf32>
    %70 = arith.addf %46, %69 : vector<16x128xf32>
    %71 = vector.extract_strided_slice %30 {offsets = [0, 32], sizes = [16, 32], strides = [1, 1]} : vector<16x128xf32> to vector<16x32xf32>
    %72 = vector.extract_strided_slice %35 {offsets = [0, 32], sizes = [16, 32], strides = [1, 1]} : vector<16x128xf32> to vector<16x32xf32>
    %73 = vector.extract_strided_slice %40 {offsets = [0, 32], sizes = [16, 32], strides = [1, 1]} : vector<16x128xf32> to vector<16x32xf32>
    %cst_39 = arith.constant dense<0.000000e+00> : vector<16x16xf32>
    %74 = tpu.matmul %71, %72, %cst_39 {dimension_numbers = #tpu.dot_dimension_numbers<[1], [1], [0], [0], [0, 0, 1, 0], [], []>} : vector<16x32xf32>, vector<16x32xf32>, vector<16x16xf32> -> vector<16x16xf32>
    %cst_40 = arith.constant 0.176776692 : f32
    %75 = vector.broadcast %cst_40 : f32 to vector<16x16xf32>
    %76 = arith.mulf %74, %75 : vector<16x16xf32>
    %cst_41 = arith.constant 0.000000e+00 : f32
    %77 = vector.broadcast %cst_41 : f32 to vector<16x16xf32>
    %78 = arith.cmpf oeq, %43, %77 : vector<16x16xf32>
    %cst_42 = arith.constant -1.000000e+09 : f32
    %79 = vector.broadcast %cst_42 : f32 to vector<16x16xf32>
    %80 = arith.select %78, %79, %76 : vector<16x16xi1>, vector<16x16xf32>
    %cst_43 = arith.constant dense<0xFF800000> : vector<16xf32>
    %81 = vector.multi_reduction <maximumf>, %80, %cst_43 [1] : vector<16x16xf32> to vector<16xf32>
    %82 = vector.shape_cast %81 : vector<16xf32> to vector<16x1xf32>
    %83 = vector.broadcast %82 : vector<16x1xf32> to vector<16x16xf32>
    %84 = arith.subf %80, %83 : vector<16x16xf32>
    %85 = math.exp %84 : vector<16x16xf32>
    %cst_44 = arith.constant dense<0.000000e+00> : vector<16xf32>
    %86 = vector.multi_reduction <add>, %85, %cst_44 [1] : vector<16x16xf32> to vector<16xf32>
    %87 = vector.shape_cast %86 : vector<16xf32> to vector<16x1xf32>
    %88 = tpu.reciprocal %87 {approx = true} : vector<16x1xf32> -> vector<16x1xf32>
    %89 = vector.broadcast %88 : vector<16x1xf32> to vector<16x16xf32>
    %90 = arith.mulf %85, %89 : vector<16x16xf32>
    %cst_45 = arith.constant dense<0.000000e+00> : vector<16x32xf32>
    %91 = tpu.matmul %90, %73, %cst_45 {dimension_numbers = #tpu.dot_dimension_numbers<[1], [0], [0], [1], [0, 0, 1, 1], [], []>} : vector<16x16xf32>, vector<16x32xf32>, vector<16x32xf32> -> vector<16x32xf32>
    %92 = vector.extract_strided_slice %41 {offsets = [32, 0], sizes = [32, 128], strides = [1, 1]} : vector<128x128xf32> to vector<32x128xf32>
    %cst_46 = arith.constant dense<0.000000e+00> : vector<16x128xf32>
    %93 = tpu.matmul %91, %92, %cst_46 {dimension_numbers = #tpu.dot_dimension_numbers<[1], [0], [0], [1], [0, 0, 1, 1], [], []>} : vector<16x32xf32>, vector<32x128xf32>, vector<16x128xf32> -> vector<16x128xf32>
    %94 = arith.addf %70, %93 : vector<16x128xf32>
    %95 = vector.extract_strided_slice %30 {offsets = [0, 64], sizes = [16, 32], strides = [1, 1]} : vector<16x128xf32> to vector<16x32xf32>
    %96 = vector.extract_strided_slice %35 {offsets = [0, 64], sizes = [16, 32], strides = [1, 1]} : vector<16x128xf32> to vector<16x32xf32>
    %97 = vector.extract_strided_slice %40 {offsets = [0, 64], sizes = [16, 32], strides = [1, 1]} : vector<16x128xf32> to vector<16x32xf32>
    %cst_47 = arith.constant dense<0.000000e+00> : vector<16x16xf32>
    %98 = tpu.matmul %95, %96, %cst_47 {dimension_numbers = #tpu.dot_dimension_numbers<[1], [1], [0], [0], [0, 0, 1, 0], [], []>} : vector<16x32xf32>, vector<16x32xf32>, vector<16x16xf32> -> vector<16x16xf32>
    %cst_48 = arith.constant 0.176776692 : f32
    %99 = vector.broadcast %cst_48 : f32 to vector<16x16xf32>
    %100 = arith.mulf %98, %99 : vector<16x16xf32>
    %cst_49 = arith.constant 0.000000e+00 : f32
    %101 = vector.broadcast %cst_49 : f32 to vector<16x16xf32>
    %102 = arith.cmpf oeq, %43, %101 : vector<16x16xf32>
    %cst_50 = arith.constant -1.000000e+09 : f32
    %103 = vector.broadcast %cst_50 : f32 to vector<16x16xf32>
    %104 = arith.select %102, %103, %100 : vector<16x16xi1>, vector<16x16xf32>
    %cst_51 = arith.constant dense<0xFF800000> : vector<16xf32>
    %105 = vector.multi_reduction <maximumf>, %104, %cst_51 [1] : vector<16x16xf32> to vector<16xf32>
    %106 = vector.shape_cast %105 : vector<16xf32> to vector<16x1xf32>
    %107 = vector.broadcast %106 : vector<16x1xf32> to vector<16x16xf32>
    %108 = arith.subf %104, %107 : vector<16x16xf32>
    %109 = math.exp %108 : vector<16x16xf32>
    %cst_52 = arith.constant dense<0.000000e+00> : vector<16xf32>
    %110 = vector.multi_reduction <add>, %109, %cst_52 [1] : vector<16x16xf32> to vector<16xf32>
    %111 = vector.shape_cast %110 : vector<16xf32> to vector<16x1xf32>
    %112 = tpu.reciprocal %111 {approx = true} : vector<16x1xf32> -> vector<16x1xf32>
    %113 = vector.broadcast %112 : vector<16x1xf32> to vector<16x16xf32>
    %114 = arith.mulf %109, %113 : vector<16x16xf32>
    %cst_53 = arith.constant dense<0.000000e+00> : vector<16x32xf32>
    %115 = tpu.matmul %114, %97, %cst_53 {dimension_numbers = #tpu.dot_dimension_numbers<[1], [0], [0], [1], [0, 0, 1, 1], [], []>} : vector<16x16xf32>, vector<16x32xf32>, vector<16x32xf32> -> vector<16x32xf32>
    %116 = vector.extract_strided_slice %41 {offsets = [64, 0], sizes = [32, 128], strides = [1, 1]} : vector<128x128xf32> to vector<32x128xf32>
    %cst_54 = arith.constant dense<0.000000e+00> : vector<16x128xf32>
    %117 = tpu.matmul %115, %116, %cst_54 {dimension_numbers = #tpu.dot_dimension_numbers<[1], [0], [0], [1], [0, 0, 1, 1], [], []>} : vector<16x32xf32>, vector<32x128xf32>, vector<16x128xf32> -> vector<16x128xf32>
    %118 = arith.addf %94, %117 : vector<16x128xf32>
    %119 = vector.extract_strided_slice %30 {offsets = [0, 96], sizes = [16, 32], strides = [1, 1]} : vector<16x128xf32> to vector<16x32xf32>
    %120 = vector.extract_strided_slice %35 {offsets = [0, 96], sizes = [16, 32], strides = [1, 1]} : vector<16x128xf32> to vector<16x32xf32>
    %121 = vector.extract_strided_slice %40 {offsets = [0, 96], sizes = [16, 32], strides = [1, 1]} : vector<16x128xf32> to vector<16x32xf32>
    %cst_55 = arith.constant dense<0.000000e+00> : vector<16x16xf32>
    %122 = tpu.matmul %119, %120, %cst_55 {dimension_numbers = #tpu.dot_dimension_numbers<[1], [1], [0], [0], [0, 0, 1, 0], [], []>} : vector<16x32xf32>, vector<16x32xf32>, vector<16x16xf32> -> vector<16x16xf32>
    %cst_56 = arith.constant 0.176776692 : f32
    %123 = vector.broadcast %cst_56 : f32 to vector<16x16xf32>
    %124 = arith.mulf %122, %123 : vector<16x16xf32>
    %cst_57 = arith.constant 0.000000e+00 : f32
    %125 = vector.broadcast %cst_57 : f32 to vector<16x16xf32>
    %126 = arith.cmpf oeq, %43, %125 : vector<16x16xf32>
    %cst_58 = arith.constant -1.000000e+09 : f32
    %127 = vector.broadcast %cst_58 : f32 to vector<16x16xf32>
    %128 = arith.select %126, %127, %124 : vector<16x16xi1>, vector<16x16xf32>
    %cst_59 = arith.constant dense<0xFF800000> : vector<16xf32>
    %129 = vector.multi_reduction <maximumf>, %128, %cst_59 [1] : vector<16x16xf32> to vector<16xf32>
    %130 = vector.shape_cast %129 : vector<16xf32> to vector<16x1xf32>
    %131 = vector.broadcast %130 : vector<16x1xf32> to vector<16x16xf32>
    %132 = arith.subf %128, %131 : vector<16x16xf32>
    %133 = math.exp %132 : vector<16x16xf32>
    %cst_60 = arith.constant dense<0.000000e+00> : vector<16xf32>
    %134 = vector.multi_reduction <add>, %133, %cst_60 [1] : vector<16x16xf32> to vector<16xf32>
    %135 = vector.shape_cast %134 : vector<16xf32> to vector<16x1xf32>
    %136 = tpu.reciprocal %135 {approx = true} : vector<16x1xf32> -> vector<16x1xf32>
    %137 = vector.broadcast %136 : vector<16x1xf32> to vector<16x16xf32>
    %138 = arith.mulf %133, %137 : vector<16x16xf32>
    %cst_61 = arith.constant dense<0.000000e+00> : vector<16x32xf32>
    %139 = tpu.matmul %138, %121, %cst_61 {dimension_numbers = #tpu.dot_dimension_numbers<[1], [0], [0], [1], [0, 0, 1, 1], [], []>} : vector<16x16xf32>, vector<16x32xf32>, vector<16x32xf32> -> vector<16x32xf32>
    %140 = vector.extract_strided_slice %41 {offsets = [96, 0], sizes = [32, 128], strides = [1, 1]} : vector<128x128xf32> to vector<32x128xf32>
    %cst_62 = arith.constant dense<0.000000e+00> : vector<16x128xf32>
    %141 = tpu.matmul %139, %140, %cst_62 {dimension_numbers = #tpu.dot_dimension_numbers<[1], [0], [0], [1], [0, 0, 1, 1], [], []>} : vector<16x32xf32>, vector<32x128xf32>, vector<16x128xf32> -> vector<16x128xf32>
    %142 = arith.addf %118, %141 : vector<16x128xf32>
    %143 = arith.addf %1, %142 : vector<16x128xf32>
    %c0_63 = arith.constant 0 : index
    %c0_64 = arith.constant 0 : index
    %c0_65 = arith.constant 0 : index
    %144 = vector.load %arg14[%c0_63, %c0_64, %c0_65] : memref<1x16x128xf32, #tpu.memory_space<vmem>>, vector<1x16x128xf32>
    %145 = vector.shape_cast %144 : vector<1x16x128xf32> to vector<16x128xf32>
    %146 = vector.shape_cast %143 : vector<16x128xf32> to vector<1x16x128xf32>
    tpu.vector_store %arg14[%c0_63, %c0_64, %c0_65], %146 {strides = array<i32>} : memref<1x16x128xf32, #tpu.memory_space<vmem>>, vector<1x16x128xf32>,
    return
  }
  func.func @transform_0(%arg0: i32) -> (i32, i32, i32) {
    %c0_i32 = arith.constant 0 : i32
    %c0_i32_0 = arith.constant 0 : i32
    %c0_i32_1 = arith.constant 0 : i32
    return %arg0, %c0_i32, %c0_i32_0 : i32, i32, i32
  }
  func.func @transform_1(%arg0: i32) -> (i32, i32, i32) {
    %c0_i32 = arith.constant 0 : i32
    %c0_i32_0 = arith.constant 0 : i32
    %c0_i32_1 = arith.constant 0 : i32
    return %arg0, %c0_i32, %c0_i32_0 : i32, i32, i32
  }
  func.func @transform_2(%arg0: i32) -> (i32, i32, i32, i32) {
    %c0_i32 = arith.constant 0 : i32
    %c0_i32_0 = arith.constant 0 : i32
    %c0_i32_1 = arith.constant 0 : i32
    %c0_i32_2 = arith.constant 0 : i32
    return %arg0, %c0_i32, %c0_i32_0, %c0_i32_1 : i32, i32, i32, i32
  }
  func.func @transform_3(%arg0: i32) -> i32 {
    %c0_i32 = arith.constant 0 : i32
    %c0_i32_0 = arith.constant 0 : i32
    return %c0_i32 : i32
  }
  func.func @transform_4(%arg0: i32) -> i32 {
    %c0_i32 = arith.constant 0 : i32
    %c0_i32_0 = arith.constant 0 : i32
    return %c0_i32 : i32
  }
  func.func @transform_5(%arg0: i32) -> (i32, i32) {
    %c0_i32 = arith.constant 0 : i32
    %c0_i32_0 = arith.constant 0 : i32
    %c0_i32_1 = arith.constant 0 : i32
    return %c0_i32, %c0_i32_0 : i32, i32
  }
  func.func @transform_6(%arg0: i32) -> (i32, i32) {
    %c0_i32 = arith.constant 0 : i32
    %c0_i32_0 = arith.constant 0 : i32
    %c0_i32_1 = arith.constant 0 : i32
    return %c0_i32, %c0_i32_0 : i32, i32
  }
  func.func @transform_7(%arg0: i32) -> (i32, i32) {
    %c0_i32 = arith.constant 0 : i32
    %c0_i32_0 = arith.constant 0 : i32
    %c0_i32_1 = arith.constant 0 : i32
    return %c0_i32, %c0_i32_0 : i32, i32
  }
  func.func @transform_8(%arg0: i32) -> (i32, i32) {
    %c0_i32 = arith.constant 0 : i32
    %c0_i32_0 = arith.constant 0 : i32
    %c0_i32_1 = arith.constant 0 : i32
    return %c0_i32, %c0_i32_0 : i32, i32
  }
  func.func @transform_9(%arg0: i32) -> (i32, i32) {
    %c0_i32 = arith.constant 0 : i32
    %c0_i32_0 = arith.constant 0 : i32
    %c0_i32_1 = arith.constant 0 : i32
    return %c0_i32, %c0_i32_0 : i32, i32
  }
  func.func @transform_10(%arg0: i32) -> (i32, i32) {
    %c0_i32 = arith.constant 0 : i32
    %c0_i32_0 = arith.constant 0 : i32
    %c0_i32_1 = arith.constant 0 : i32
    return %c0_i32, %c0_i32_0 : i32, i32
  }
  func.func @transform_11(%arg0: i32) -> (i32, i32) {
    %c0_i32 = arith.constant 0 : i32
    %c0_i32_0 = arith.constant 0 : i32
    %c0_i32_1 = arith.constant 0 : i32
    return %c0_i32, %c0_i32_0 : i32, i32
  }
  func.func @transform_12(%arg0: i32) -> (i32, i32) {
    %c0_i32 = arith.constant 0 : i32
    %c0_i32_0 = arith.constant 0 : i32
    %c0_i32_1 = arith.constant 0 : i32
    return %c0_i32, %c0_i32_0 : i32, i32
  }
  func.func @transform_13(%arg0: i32) -> (i32, i32, i32) {
    %c0_i32 = arith.constant 0 : i32
    %c0_i32_0 = arith.constant 0 : i32
    %c0_i32_1 = arith.constant 0 : i32
    return %arg0, %c0_i32, %c0_i32_0 : i32, i32, i32
  }
}

module attributes {stable_mosaic.version = 11 : i64} {
  func.func @_attn_sublayer_kernel(%arg0: i32, %arg1: memref<1x16x128xf32, #tpu.memory_space<vmem>>, %arg2: memref<1x16x128xf32, #tpu.memory_space<vmem>>, %arg3: memref<1x1x16x16xf32, #tpu.memory_space<vmem>>, %arg4: memref<1xf32, #tpu.memory_space<smem>>, %arg5: memref<1xf32, #tpu.memory_space<smem>>, %arg6: memref<128x128xf32, #tpu.memory_space<vmem>>, %arg7: memref<1x128xf32, #tpu.memory_space<vmem>>, %arg8: memref<128x128xf32, #tpu.memory_space<vmem>>, %arg9: memref<1x128xf32, #tpu.memory_space<vmem>>, %arg10: memref<128x128xf32, #tpu.memory_space<vmem>>, %arg11: memref<1x128xf32, #tpu.memory_space<vmem>>, %arg12: memref<128x128xf32, #tpu.memory_space<vmem>>, %arg13: memref<1x128xf32, #tpu.memory_space<vmem>>, %arg14: memref<1x16x128xf32, #tpu.memory_space<vmem>>) attributes {dimension_semantics = [#tpu.dimension_semantics<parallel>], iteration_bounds = array<i64: 2>, scalar_prefetch = 0 : i64, scratch_operands = 0 : i64, tpu.core_type = #tpu.core_type<tc>, window_params = [{transform_indices = @transform_0, window_bounds = array<i64: 1, 16, 128>}, {transform_indices = @transform_1, window_bounds = array<i64: 1, 16, 128>}, {transform_indices = @transform_2, window_bounds = array<i64: 1, 1, 16, 16>}, {transform_indices = @transform_3, window_bounds = array<i64: 1>}, {transform_indices = @transform_4, window_bounds = array<i64: 1>}, {pipeline_mode = #tpu.pipeline_mode<synchronous>, transform_indices = @transform_5, window_bounds = array<i64: 128, 128>}, {pipeline_mode = #tpu.pipeline_mode<synchronous>, transform_indices = @transform_6, window_bounds = array<i64: 1, 128>}, {pipeline_mode = #tpu.pipeline_mode<synchronous>, transform_indices = @transform_7, window_bounds = array<i64: 128, 128>}, {pipeline_mode = #tpu.pipeline_mode<synchronous>, transform_indices = @transform_8, window_bounds = array<i64: 1, 128>}, {pipeline_mode = #tpu.pipeline_mode<synchronous>, transform_indices = @transform_9, window_bounds = array<i64: 128, 128>}, {pipeline_mode = #tpu.pipeline_mode<synchronous>, transform_indices = @transform_10, window_bounds = array<i64: 1, 128>}, {pipeline_mode = #tpu.pipeline_mode<synchronous>, transform_indices = @transform_11, window_bounds = array<i64: 128, 128>}, {pipeline_mode = #tpu.pipeline_mode<synchronous>, transform_indices = @transform_12, window_bounds = array<i64: 1, 128>}, {transform_indices = @transform_13, window_bounds = array<i64: 1, 16, 128>}]} {
    %c0 = arith.constant 0 : index
    %c0_0 = arith.constant 0 : index
    %c0_1 = arith.constant 0 : index
    %0 = vector.load %arg1[%c0, %c0_0, %c0_1] : memref<1x16x128xf32, #tpu.memory_space<vmem>>, vector<1x16x128xf32>
    %1 = vector.shape_cast %0 : vector<1x16x128xf32> to vector<16x128xf32>
    %cst = arith.constant dense<0.000000e+00> : vector<16xf32>
    %2 = vector.multi_reduction <add>, %1, %cst [1] : vector<16x128xf32> to vector<16xf32>
    %3 = vector.shape_cast %2 : vector<16xf32> to vector<16x1xf32>
    %cst_2 = arith.constant 1.280000e+02 : f32
    %4 = vector.broadcast %cst_2 : f32 to vector<16x1xf32>
    %5 = arith.divf %3, %4 : vector<16x1xf32>
    %6 = vector.broadcast %5 : vector<16x1xf32> to vector<16x128xf32>
    %7 = arith.subf %1, %6 : vector<16x128xf32>
    %8 = arith.mulf %7, %7 : vector<16x128xf32>
    %cst_3 = arith.constant dense<0.000000e+00> : vector<16xf32>
    %9 = vector.multi_reduction <add>, %8, %cst_3 [1] : vector<16x128xf32> to vector<16xf32>
    %10 = vector.shape_cast %9 : vector<16xf32> to vector<16x1xf32>
    %cst_4 = arith.constant 1.270000e+02 : f32
    %11 = vector.broadcast %cst_4 : f32 to vector<16x1xf32>
    %12 = arith.divf %10, %11 : vector<16x1xf32>
    %c0_5 = arith.constant 0 : index
    %13 = memref.load %arg4[%c0_5] : memref<1xf32, #tpu.memory_space<smem>>
    %14 = vector.broadcast %5 : vector<16x1xf32> to vector<16x128xf32>
    %15 = arith.subf %1, %14 : vector<16x128xf32>
    %16 = vector.broadcast %13 : f32 to vector<16x128xf32>
    %17 = arith.mulf %16, %15 : vector<16x128xf32>
    %18 = math.sqrt %12 : vector<16x1xf32>
    %cst_6 = arith.constant 9.99999997E-7 : f32
    %19 = vector.broadcast %cst_6 : f32 to vector<16x1xf32>
    %20 = arith.addf %18, %19 : vector<16x1xf32>
    %21 = vector.broadcast %20 : vector<16x1xf32> to vector<16x128xf32>
    %22 = arith.divf %17, %21 : vector<16x128xf32>
    %c0_7 = arith.constant 0 : index
    %23 = memref.load %arg5[%c0_7] : memref<1xf32, #tpu.memory_space<smem>>
    %24 = vector.broadcast %23 : f32 to vector<16x128xf32>
    %25 = arith.addf %22, %24 : vector<16x128xf32>
    %c0_8 = arith.constant 0 : index
    %c0_9 = arith.constant 0 : index
    %c0_10 = arith.constant 0 : index
    %26 = vector.load %arg2[%c0_8, %c0_9, %c0_10] : memref<1x16x128xf32, #tpu.memory_space<vmem>>, vector<1x16x128xf32>
    %27 = vector.shape_cast %26 : vector<1x16x128xf32> to vector<16x128xf32>
    %c0_11 = arith.constant 0 : index
    %c0_12 = arith.constant 0 : index
    %28 = vector.load %arg6[%c0_11, %c0_12] : memref<128x128xf32, #tpu.memory_space<vmem>>, vector<128x128xf32>
    %cst_13 = arith.constant dense<0.000000e+00> : vector<16x128xf32>
    %29 = tpu.matmul %25, %28, %cst_13 {dimension_numbers = #tpu.dot_dimension_numbers<[1], [0], [0], [1], [0, 0, 1, 1], [], []>} : vector<16x128xf32>, vector<128x128xf32>, vector<16x128xf32> -> vector<16x128xf32>
    %c0_14 = arith.constant 0 : index
    %c0_15 = arith.constant 0 : index
    %30 = vector.load %arg7[%c0_14, %c0_15] : memref<1x128xf32, #tpu.memory_space<vmem>>, vector<1x128xf32>
    %31 = vector.broadcast %30 : vector<1x128xf32> to vector<16x128xf32>
    %32 = arith.addf %29, %31 : vector<16x128xf32>
    %c0_16 = arith.constant 0 : index
    %c0_17 = arith.constant 0 : index
    %33 = vector.load %arg8[%c0_16, %c0_17] : memref<128x128xf32, #tpu.memory_space<vmem>>, vector<128x128xf32>
    %cst_18 = arith.constant dense<0.000000e+00> : vector<16x128xf32>
    %34 = tpu.matmul %27, %33, %cst_18 {dimension_numbers = #tpu.dot_dimension_numbers<[1], [0], [0], [1], [0, 0, 1, 1], [], []>} : vector<16x128xf32>, vector<128x128xf32>, vector<16x128xf32> -> vector<16x128xf32>
    %c0_19 = arith.constant 0 : index
    %c0_20 = arith.constant 0 : index
    %35 = vector.load %arg9[%c0_19, %c0_20] : memref<1x128xf32, #tpu.memory_space<vmem>>, vector<1x128xf32>
    %36 = vector.broadcast %35 : vector<1x128xf32> to vector<16x128xf32>
    %37 = arith.addf %34, %36 : vector<16x128xf32>
    %c0_21 = arith.constant 0 : index
    %c0_22 = arith.constant 0 : index
    %38 = vector.load %arg10[%c0_21, %c0_22] : memref<128x128xf32, #tpu.memory_space<vmem>>, vector<128x128xf32>
    %cst_23 = arith.constant dense<0.000000e+00> : vector<16x128xf32>
    %39 = tpu.matmul %27, %38, %cst_23 {dimension_numbers = #tpu.dot_dimension_numbers<[1], [0], [0], [1], [0, 0, 1, 1], [], []>} : vector<16x128xf32>, vector<128x128xf32>, vector<16x128xf32> -> vector<16x128xf32>
    %c0_24 = arith.constant 0 : index
    %c0_25 = arith.constant 0 : index
    %40 = vector.load %arg11[%c0_24, %c0_25] : memref<1x128xf32, #tpu.memory_space<vmem>>, vector<1x128xf32>
    %41 = vector.broadcast %40 : vector<1x128xf32> to vector<16x128xf32>
    %42 = arith.addf %39, %41 : vector<16x128xf32>
    %c0_26 = arith.constant 0 : index
    %c0_27 = arith.constant 0 : index
    %43 = vector.load %arg12[%c0_26, %c0_27] : memref<128x128xf32, #tpu.memory_space<vmem>>, vector<128x128xf32>
    %c0_28 = arith.constant 0 : index
    %c0_29 = arith.constant 0 : index
    %c0_30 = arith.constant 0 : index
    %c0_31 = arith.constant 0 : index
    %44 = vector.load %arg3[%c0_28, %c0_29, %c0_30, %c0_31] : memref<1x1x16x16xf32, #tpu.memory_space<vmem>>, vector<1x1x16x16xf32>
    %45 = vector.shape_cast %44 : vector<1x1x16x16xf32> to vector<16x16xf32>
    %c0_32 = arith.constant 0 : index
    %c0_33 = arith.constant 0 : index
    %46 = vector.load %arg13[%c0_32, %c0_33] : memref<1x128xf32, #tpu.memory_space<vmem>>, vector<1x128xf32>
    %47 = vector.shape_cast %46 : vector<1x128xf32> to vector<1x128xf32>
    %48 = vector.broadcast %47 : vector<1x128xf32> to vector<16x128xf32>
    %49 = vector.extract_strided_slice %32 {offsets = [0, 0], sizes = [16, 32], strides = [1, 1]} : vector<16x128xf32> to vector<16x32xf32>
    %50 = vector.extract_strided_slice %37 {offsets = [0, 0], sizes = [16, 32], strides = [1, 1]} : vector<16x128xf32> to vector<16x32xf32>
    %51 = vector.extract_strided_slice %42 {offsets = [0, 0], sizes = [16, 32], strides = [1, 1]} : vector<16x128xf32> to vector<16x32xf32>
    %cst_34 = arith.constant dense<0.000000e+00> : vector<16x16xf32>
    %52 = tpu.matmul %49, %50, %cst_34 {dimension_numbers = #tpu.dot_dimension_numbers<[1], [1], [0], [0], [0, 0, 1, 0], [], []>} : vector<16x32xf32>, vector<16x32xf32>, vector<16x16xf32> -> vector<16x16xf32>
    %cst_35 = arith.constant 0.176776692 : f32
    %53 = vector.broadcast %cst_35 : f32 to vector<16x16xf32>
    %54 = arith.mulf %52, %53 : vector<16x16xf32>
    %cst_36 = arith.constant 0.000000e+00 : f32
    %55 = vector.broadcast %cst_36 : f32 to vector<16x16xf32>
    %56 = arith.cmpf oeq, %45, %55 : vector<16x16xf32>
    %cst_37 = arith.constant -1.000000e+09 : f32
    %57 = vector.broadcast %cst_37 : f32 to vector<16x16xf32>
    %58 = arith.select %56, %57, %54 : vector<16x16xi1>, vector<16x16xf32>
    %cst_38 = arith.constant dense<0xFF800000> : vector<16xf32>
    %59 = vector.multi_reduction <maximumf>, %58, %cst_38 [1] : vector<16x16xf32> to vector<16xf32>
    %60 = vector.shape_cast %59 : vector<16xf32> to vector<16x1xf32>
    %61 = vector.broadcast %60 : vector<16x1xf32> to vector<16x16xf32>
    %62 = arith.subf %58, %61 : vector<16x16xf32>
    %63 = math.exp %62 : vector<16x16xf32>
    %cst_39 = arith.constant dense<0.000000e+00> : vector<16xf32>
    %64 = vector.multi_reduction <add>, %63, %cst_39 [1] : vector<16x16xf32> to vector<16xf32>
    %65 = vector.shape_cast %64 : vector<16xf32> to vector<16x1xf32>
    %66 = tpu.reciprocal %65 {approx = true} : vector<16x1xf32> -> vector<16x1xf32>
    %67 = vector.broadcast %66 : vector<16x1xf32> to vector<16x16xf32>
    %68 = arith.mulf %63, %67 : vector<16x16xf32>
    %cst_40 = arith.constant dense<0.000000e+00> : vector<16x32xf32>
    %69 = tpu.matmul %68, %51, %cst_40 {dimension_numbers = #tpu.dot_dimension_numbers<[1], [0], [0], [1], [0, 0, 1, 1], [], []>} : vector<16x16xf32>, vector<16x32xf32>, vector<16x32xf32> -> vector<16x32xf32>
    %70 = vector.extract_strided_slice %43 {offsets = [0, 0], sizes = [32, 128], strides = [1, 1]} : vector<128x128xf32> to vector<32x128xf32>
    %cst_41 = arith.constant dense<0.000000e+00> : vector<16x128xf32>
    %71 = tpu.matmul %69, %70, %cst_41 {dimension_numbers = #tpu.dot_dimension_numbers<[1], [0], [0], [1], [0, 0, 1, 1], [], []>} : vector<16x32xf32>, vector<32x128xf32>, vector<16x128xf32> -> vector<16x128xf32>
    %72 = arith.addf %48, %71 : vector<16x128xf32>
    %73 = vector.extract_strided_slice %32 {offsets = [0, 32], sizes = [16, 32], strides = [1, 1]} : vector<16x128xf32> to vector<16x32xf32>
    %74 = vector.extract_strided_slice %37 {offsets = [0, 32], sizes = [16, 32], strides = [1, 1]} : vector<16x128xf32> to vector<16x32xf32>
    %75 = vector.extract_strided_slice %42 {offsets = [0, 32], sizes = [16, 32], strides = [1, 1]} : vector<16x128xf32> to vector<16x32xf32>
    %cst_42 = arith.constant dense<0.000000e+00> : vector<16x16xf32>
    %76 = tpu.matmul %73, %74, %cst_42 {dimension_numbers = #tpu.dot_dimension_numbers<[1], [1], [0], [0], [0, 0, 1, 0], [], []>} : vector<16x32xf32>, vector<16x32xf32>, vector<16x16xf32> -> vector<16x16xf32>
    %cst_43 = arith.constant 0.176776692 : f32
    %77 = vector.broadcast %cst_43 : f32 to vector<16x16xf32>
    %78 = arith.mulf %76, %77 : vector<16x16xf32>
    %cst_44 = arith.constant 0.000000e+00 : f32
    %79 = vector.broadcast %cst_44 : f32 to vector<16x16xf32>
    %80 = arith.cmpf oeq, %45, %79 : vector<16x16xf32>
    %cst_45 = arith.constant -1.000000e+09 : f32
    %81 = vector.broadcast %cst_45 : f32 to vector<16x16xf32>
    %82 = arith.select %80, %81, %78 : vector<16x16xi1>, vector<16x16xf32>
    %cst_46 = arith.constant dense<0xFF800000> : vector<16xf32>
    %83 = vector.multi_reduction <maximumf>, %82, %cst_46 [1] : vector<16x16xf32> to vector<16xf32>
    %84 = vector.shape_cast %83 : vector<16xf32> to vector<16x1xf32>
    %85 = vector.broadcast %84 : vector<16x1xf32> to vector<16x16xf32>
    %86 = arith.subf %82, %85 : vector<16x16xf32>
    %87 = math.exp %86 : vector<16x16xf32>
    %cst_47 = arith.constant dense<0.000000e+00> : vector<16xf32>
    %88 = vector.multi_reduction <add>, %87, %cst_47 [1] : vector<16x16xf32> to vector<16xf32>
    %89 = vector.shape_cast %88 : vector<16xf32> to vector<16x1xf32>
    %90 = tpu.reciprocal %89 {approx = true} : vector<16x1xf32> -> vector<16x1xf32>
    %91 = vector.broadcast %90 : vector<16x1xf32> to vector<16x16xf32>
    %92 = arith.mulf %87, %91 : vector<16x16xf32>
    %cst_48 = arith.constant dense<0.000000e+00> : vector<16x32xf32>
    %93 = tpu.matmul %92, %75, %cst_48 {dimension_numbers = #tpu.dot_dimension_numbers<[1], [0], [0], [1], [0, 0, 1, 1], [], []>} : vector<16x16xf32>, vector<16x32xf32>, vector<16x32xf32> -> vector<16x32xf32>
    %94 = vector.extract_strided_slice %43 {offsets = [32, 0], sizes = [32, 128], strides = [1, 1]} : vector<128x128xf32> to vector<32x128xf32>
    %cst_49 = arith.constant dense<0.000000e+00> : vector<16x128xf32>
    %95 = tpu.matmul %93, %94, %cst_49 {dimension_numbers = #tpu.dot_dimension_numbers<[1], [0], [0], [1], [0, 0, 1, 1], [], []>} : vector<16x32xf32>, vector<32x128xf32>, vector<16x128xf32> -> vector<16x128xf32>
    %96 = arith.addf %72, %95 : vector<16x128xf32>
    %97 = vector.extract_strided_slice %32 {offsets = [0, 64], sizes = [16, 32], strides = [1, 1]} : vector<16x128xf32> to vector<16x32xf32>
    %98 = vector.extract_strided_slice %37 {offsets = [0, 64], sizes = [16, 32], strides = [1, 1]} : vector<16x128xf32> to vector<16x32xf32>
    %99 = vector.extract_strided_slice %42 {offsets = [0, 64], sizes = [16, 32], strides = [1, 1]} : vector<16x128xf32> to vector<16x32xf32>
    %cst_50 = arith.constant dense<0.000000e+00> : vector<16x16xf32>
    %100 = tpu.matmul %97, %98, %cst_50 {dimension_numbers = #tpu.dot_dimension_numbers<[1], [1], [0], [0], [0, 0, 1, 0], [], []>} : vector<16x32xf32>, vector<16x32xf32>, vector<16x16xf32> -> vector<16x16xf32>
    %cst_51 = arith.constant 0.176776692 : f32
    %101 = vector.broadcast %cst_51 : f32 to vector<16x16xf32>
    %102 = arith.mulf %100, %101 : vector<16x16xf32>
    %cst_52 = arith.constant 0.000000e+00 : f32
    %103 = vector.broadcast %cst_52 : f32 to vector<16x16xf32>
    %104 = arith.cmpf oeq, %45, %103 : vector<16x16xf32>
    %cst_53 = arith.constant -1.000000e+09 : f32
    %105 = vector.broadcast %cst_53 : f32 to vector<16x16xf32>
    %106 = arith.select %104, %105, %102 : vector<16x16xi1>, vector<16x16xf32>
    %cst_54 = arith.constant dense<0xFF800000> : vector<16xf32>
    %107 = vector.multi_reduction <maximumf>, %106, %cst_54 [1] : vector<16x16xf32> to vector<16xf32>
    %108 = vector.shape_cast %107 : vector<16xf32> to vector<16x1xf32>
    %109 = vector.broadcast %108 : vector<16x1xf32> to vector<16x16xf32>
    %110 = arith.subf %106, %109 : vector<16x16xf32>
    %111 = math.exp %110 : vector<16x16xf32>
    %cst_55 = arith.constant dense<0.000000e+00> : vector<16xf32>
    %112 = vector.multi_reduction <add>, %111, %cst_55 [1] : vector<16x16xf32> to vector<16xf32>
    %113 = vector.shape_cast %112 : vector<16xf32> to vector<16x1xf32>
    %114 = tpu.reciprocal %113 {approx = true} : vector<16x1xf32> -> vector<16x1xf32>
    %115 = vector.broadcast %114 : vector<16x1xf32> to vector<16x16xf32>
    %116 = arith.mulf %111, %115 : vector<16x16xf32>
    %cst_56 = arith.constant dense<0.000000e+00> : vector<16x32xf32>
    %117 = tpu.matmul %116, %99, %cst_56 {dimension_numbers = #tpu.dot_dimension_numbers<[1], [0], [0], [1], [0, 0, 1, 1], [], []>} : vector<16x16xf32>, vector<16x32xf32>, vector<16x32xf32> -> vector<16x32xf32>
    %118 = vector.extract_strided_slice %43 {offsets = [64, 0], sizes = [32, 128], strides = [1, 1]} : vector<128x128xf32> to vector<32x128xf32>
    %cst_57 = arith.constant dense<0.000000e+00> : vector<16x128xf32>
    %119 = tpu.matmul %117, %118, %cst_57 {dimension_numbers = #tpu.dot_dimension_numbers<[1], [0], [0], [1], [0, 0, 1, 1], [], []>} : vector<16x32xf32>, vector<32x128xf32>, vector<16x128xf32> -> vector<16x128xf32>
    %120 = arith.addf %96, %119 : vector<16x128xf32>
    %121 = vector.extract_strided_slice %32 {offsets = [0, 96], sizes = [16, 32], strides = [1, 1]} : vector<16x128xf32> to vector<16x32xf32>
    %122 = vector.extract_strided_slice %37 {offsets = [0, 96], sizes = [16, 32], strides = [1, 1]} : vector<16x128xf32> to vector<16x32xf32>
    %123 = vector.extract_strided_slice %42 {offsets = [0, 96], sizes = [16, 32], strides = [1, 1]} : vector<16x128xf32> to vector<16x32xf32>
    %cst_58 = arith.constant dense<0.000000e+00> : vector<16x16xf32>
    %124 = tpu.matmul %121, %122, %cst_58 {dimension_numbers = #tpu.dot_dimension_numbers<[1], [1], [0], [0], [0, 0, 1, 0], [], []>} : vector<16x32xf32>, vector<16x32xf32>, vector<16x16xf32> -> vector<16x16xf32>
    %cst_59 = arith.constant 0.176776692 : f32
    %125 = vector.broadcast %cst_59 : f32 to vector<16x16xf32>
    %126 = arith.mulf %124, %125 : vector<16x16xf32>
    %cst_60 = arith.constant 0.000000e+00 : f32
    %127 = vector.broadcast %cst_60 : f32 to vector<16x16xf32>
    %128 = arith.cmpf oeq, %45, %127 : vector<16x16xf32>
    %cst_61 = arith.constant -1.000000e+09 : f32
    %129 = vector.broadcast %cst_61 : f32 to vector<16x16xf32>
    %130 = arith.select %128, %129, %126 : vector<16x16xi1>, vector<16x16xf32>
    %cst_62 = arith.constant dense<0xFF800000> : vector<16xf32>
    %131 = vector.multi_reduction <maximumf>, %130, %cst_62 [1] : vector<16x16xf32> to vector<16xf32>
    %132 = vector.shape_cast %131 : vector<16xf32> to vector<16x1xf32>
    %133 = vector.broadcast %132 : vector<16x1xf32> to vector<16x16xf32>
    %134 = arith.subf %130, %133 : vector<16x16xf32>
    %135 = math.exp %134 : vector<16x16xf32>
    %cst_63 = arith.constant dense<0.000000e+00> : vector<16xf32>
    %136 = vector.multi_reduction <add>, %135, %cst_63 [1] : vector<16x16xf32> to vector<16xf32>
    %137 = vector.shape_cast %136 : vector<16xf32> to vector<16x1xf32>
    %138 = tpu.reciprocal %137 {approx = true} : vector<16x1xf32> -> vector<16x1xf32>
    %139 = vector.broadcast %138 : vector<16x1xf32> to vector<16x16xf32>
    %140 = arith.mulf %135, %139 : vector<16x16xf32>
    %cst_64 = arith.constant dense<0.000000e+00> : vector<16x32xf32>
    %141 = tpu.matmul %140, %123, %cst_64 {dimension_numbers = #tpu.dot_dimension_numbers<[1], [0], [0], [1], [0, 0, 1, 1], [], []>} : vector<16x16xf32>, vector<16x32xf32>, vector<16x32xf32> -> vector<16x32xf32>
    %142 = vector.extract_strided_slice %43 {offsets = [96, 0], sizes = [32, 128], strides = [1, 1]} : vector<128x128xf32> to vector<32x128xf32>
    %cst_65 = arith.constant dense<0.000000e+00> : vector<16x128xf32>
    %143 = tpu.matmul %141, %142, %cst_65 {dimension_numbers = #tpu.dot_dimension_numbers<[1], [0], [0], [1], [0, 0, 1, 1], [], []>} : vector<16x32xf32>, vector<32x128xf32>, vector<16x128xf32> -> vector<16x128xf32>
    %144 = arith.addf %120, %143 : vector<16x128xf32>
    %145 = arith.addf %1, %144 : vector<16x128xf32>
    %c0_66 = arith.constant 0 : index
    %c0_67 = arith.constant 0 : index
    %c0_68 = arith.constant 0 : index
    %146 = vector.load %arg14[%c0_66, %c0_67, %c0_68] : memref<1x16x128xf32, #tpu.memory_space<vmem>>, vector<1x16x128xf32>
    %147 = vector.shape_cast %146 : vector<1x16x128xf32> to vector<16x128xf32>
    %148 = vector.shape_cast %145 : vector<16x128xf32> to vector<1x16x128xf32>
    tpu.vector_store %arg14[%c0_66, %c0_67, %c0_68], %148 {strides = array<i32>} : memref<1x16x128xf32, #tpu.memory_space<vmem>>, vector<1x16x128xf32>,
    return
  }
  func.func @transform_0(%arg0: i32) -> (i32, i32, i32) {
    %c0_i32 = arith.constant 0 : i32
    %c0_i32_0 = arith.constant 0 : i32
    %c0_i32_1 = arith.constant 0 : i32
    return %arg0, %c0_i32, %c0_i32_0 : i32, i32, i32
  }
  func.func @transform_1(%arg0: i32) -> (i32, i32, i32) {
    %c0_i32 = arith.constant 0 : i32
    %c0_i32_0 = arith.constant 0 : i32
    %c0_i32_1 = arith.constant 0 : i32
    return %arg0, %c0_i32, %c0_i32_0 : i32, i32, i32
  }
  func.func @transform_2(%arg0: i32) -> (i32, i32, i32, i32) {
    %c0_i32 = arith.constant 0 : i32
    %c0_i32_0 = arith.constant 0 : i32
    %c0_i32_1 = arith.constant 0 : i32
    %c0_i32_2 = arith.constant 0 : i32
    return %arg0, %c0_i32, %c0_i32_0, %c0_i32_1 : i32, i32, i32, i32
  }
  func.func @transform_3(%arg0: i32) -> i32 {
    %c0_i32 = arith.constant 0 : i32
    %c0_i32_0 = arith.constant 0 : i32
    return %c0_i32 : i32
  }
  func.func @transform_4(%arg0: i32) -> i32 {
    %c0_i32 = arith.constant 0 : i32
    %c0_i32_0 = arith.constant 0 : i32
    return %c0_i32 : i32
  }
  func.func @transform_5(%arg0: i32) -> (i32, i32) {
    %c0_i32 = arith.constant 0 : i32
    %c0_i32_0 = arith.constant 0 : i32
    %c0_i32_1 = arith.constant 0 : i32
    return %c0_i32, %c0_i32_0 : i32, i32
  }
  func.func @transform_6(%arg0: i32) -> (i32, i32) {
    %c0_i32 = arith.constant 0 : i32
    %c0_i32_0 = arith.constant 0 : i32
    %c0_i32_1 = arith.constant 0 : i32
    return %c0_i32, %c0_i32_0 : i32, i32
  }
  func.func @transform_7(%arg0: i32) -> (i32, i32) {
    %c0_i32 = arith.constant 0 : i32
    %c0_i32_0 = arith.constant 0 : i32
    %c0_i32_1 = arith.constant 0 : i32
    return %c0_i32, %c0_i32_0 : i32, i32
  }
  func.func @transform_8(%arg0: i32) -> (i32, i32) {
    %c0_i32 = arith.constant 0 : i32
    %c0_i32_0 = arith.constant 0 : i32
    %c0_i32_1 = arith.constant 0 : i32
    return %c0_i32, %c0_i32_0 : i32, i32
  }
  func.func @transform_9(%arg0: i32) -> (i32, i32) {
    %c0_i32 = arith.constant 0 : i32
    %c0_i32_0 = arith.constant 0 : i32
    %c0_i32_1 = arith.constant 0 : i32
    return %c0_i32, %c0_i32_0 : i32, i32
  }
  func.func @transform_10(%arg0: i32) -> (i32, i32) {
    %c0_i32 = arith.constant 0 : i32
    %c0_i32_0 = arith.constant 0 : i32
    %c0_i32_1 = arith.constant 0 : i32
    return %c0_i32, %c0_i32_0 : i32, i32
  }
  func.func @transform_11(%arg0: i32) -> (i32, i32) {
    %c0_i32 = arith.constant 0 : i32
    %c0_i32_0 = arith.constant 0 : i32
    %c0_i32_1 = arith.constant 0 : i32
    return %c0_i32, %c0_i32_0 : i32, i32
  }
  func.func @transform_12(%arg0: i32) -> (i32, i32) {
    %c0_i32 = arith.constant 0 : i32
    %c0_i32_0 = arith.constant 0 : i32
    %c0_i32_1 = arith.constant 0 : i32
    return %c0_i32, %c0_i32_0 : i32, i32
  }
  func.func @transform_13(%arg0: i32) -> (i32, i32, i32) {
    %c0_i32 = arith.constant 0 : i32
    %c0_i32_0 = arith.constant 0 : i32
    %c0_i32_1 = arith.constant 0 : i32
    return %arg0, %c0_i32, %c0_i32_0 : i32, i32, i32
  }
}

module attributes {stable_mosaic.version = 11 : i64} {
  func.func @_attn_sublayer_kernel(%arg0: i32, %arg1: memref<1x16x128xf32, #tpu.memory_space<vmem>>, %arg2: memref<1x16x128xf32, #tpu.memory_space<vmem>>, %arg3: memref<1x1x16x16xf32, #tpu.memory_space<vmem>>, %arg4: memref<1xf32, #tpu.memory_space<smem>>, %arg5: memref<1xf32, #tpu.memory_space<smem>>, %arg6: memref<128x128xf32, #tpu.memory_space<vmem>>, %arg7: memref<1x128xf32, #tpu.memory_space<vmem>>, %arg8: memref<128x128xf32, #tpu.memory_space<vmem>>, %arg9: memref<1x128xf32, #tpu.memory_space<vmem>>, %arg10: memref<128x128xf32, #tpu.memory_space<vmem>>, %arg11: memref<1x128xf32, #tpu.memory_space<vmem>>, %arg12: memref<128x128xf32, #tpu.memory_space<vmem>>, %arg13: memref<1x128xf32, #tpu.memory_space<vmem>>, %arg14: memref<1x16x128xf32, #tpu.memory_space<vmem>>) attributes {dimension_semantics = [#tpu.dimension_semantics<parallel>], iteration_bounds = array<i64: 2>, scalar_prefetch = 0 : i64, scratch_operands = 0 : i64, tpu.core_type = #tpu.core_type<tc>, window_params = [{transform_indices = @transform_0, window_bounds = array<i64: 1, 16, 128>}, {transform_indices = @transform_1, window_bounds = array<i64: 1, 16, 128>}, {transform_indices = @transform_2, window_bounds = array<i64: 1, 1, 16, 16>}, {transform_indices = @transform_3, window_bounds = array<i64: 1>}, {transform_indices = @transform_4, window_bounds = array<i64: 1>}, {pipeline_mode = #tpu.pipeline_mode<synchronous>, transform_indices = @transform_5, window_bounds = array<i64: 128, 128>}, {pipeline_mode = #tpu.pipeline_mode<synchronous>, transform_indices = @transform_6, window_bounds = array<i64: 1, 128>}, {pipeline_mode = #tpu.pipeline_mode<synchronous>, transform_indices = @transform_7, window_bounds = array<i64: 128, 128>}, {pipeline_mode = #tpu.pipeline_mode<synchronous>, transform_indices = @transform_8, window_bounds = array<i64: 1, 128>}, {pipeline_mode = #tpu.pipeline_mode<synchronous>, transform_indices = @transform_9, window_bounds = array<i64: 128, 128>}, {pipeline_mode = #tpu.pipeline_mode<synchronous>, transform_indices = @transform_10, window_bounds = array<i64: 1, 128>}, {pipeline_mode = #tpu.pipeline_mode<synchronous>, transform_indices = @transform_11, window_bounds = array<i64: 128, 128>}, {pipeline_mode = #tpu.pipeline_mode<synchronous>, transform_indices = @transform_12, window_bounds = array<i64: 1, 128>}, {transform_indices = @transform_13, window_bounds = array<i64: 1, 16, 128>}]} {
    %c0 = arith.constant 0 : index
    %c0_0 = arith.constant 0 : index
    %c0_1 = arith.constant 0 : index
    %0 = vector.load %arg1[%c0, %c0_0, %c0_1] : memref<1x16x128xf32, #tpu.memory_space<vmem>>, vector<1x16x128xf32>
    %1 = vector.shape_cast %0 : vector<1x16x128xf32> to vector<16x128xf32>
    %cst = arith.constant dense<0.000000e+00> : vector<16xf32>
    %2 = vector.multi_reduction <add>, %1, %cst [1] : vector<16x128xf32> to vector<16xf32>
    %3 = vector.shape_cast %2 : vector<16xf32> to vector<16x1xf32>
    %cst_2 = arith.constant 1.280000e+02 : f32
    %4 = vector.broadcast %cst_2 : f32 to vector<16x1xf32>
    %5 = arith.divf %3, %4 : vector<16x1xf32>
    %6 = vector.broadcast %5 : vector<16x1xf32> to vector<16x128xf32>
    %7 = arith.subf %1, %6 : vector<16x128xf32>
    %8 = arith.mulf %7, %7 : vector<16x128xf32>
    %cst_3 = arith.constant dense<0.000000e+00> : vector<16xf32>
    %9 = vector.multi_reduction <add>, %8, %cst_3 [1] : vector<16x128xf32> to vector<16xf32>
    %10 = vector.shape_cast %9 : vector<16xf32> to vector<16x1xf32>
    %cst_4 = arith.constant 1.270000e+02 : f32
    %11 = vector.broadcast %cst_4 : f32 to vector<16x1xf32>
    %12 = arith.divf %10, %11 : vector<16x1xf32>
    %c0_5 = arith.constant 0 : index
    %13 = memref.load %arg4[%c0_5] : memref<1xf32, #tpu.memory_space<smem>>
    %14 = vector.broadcast %5 : vector<16x1xf32> to vector<16x128xf32>
    %15 = arith.subf %1, %14 : vector<16x128xf32>
    %16 = vector.broadcast %13 : f32 to vector<16x128xf32>
    %17 = arith.mulf %16, %15 : vector<16x128xf32>
    %18 = math.sqrt %12 : vector<16x1xf32>
    %cst_6 = arith.constant 9.99999997E-7 : f32
    %19 = vector.broadcast %cst_6 : f32 to vector<16x1xf32>
    %20 = arith.addf %18, %19 : vector<16x1xf32>
    %21 = vector.broadcast %20 : vector<16x1xf32> to vector<16x128xf32>
    %22 = arith.divf %17, %21 : vector<16x128xf32>
    %c0_7 = arith.constant 0 : index
    %23 = memref.load %arg5[%c0_7] : memref<1xf32, #tpu.memory_space<smem>>
    %24 = vector.broadcast %23 : f32 to vector<16x128xf32>
    %25 = arith.addf %22, %24 : vector<16x128xf32>
    %c0_8 = arith.constant 0 : index
    %c0_9 = arith.constant 0 : index
    %26 = vector.load %arg6[%c0_8, %c0_9] : memref<128x128xf32, #tpu.memory_space<vmem>>, vector<128x128xf32>
    %cst_10 = arith.constant dense<0.000000e+00> : vector<16x128xf32>
    %27 = tpu.matmul %25, %26, %cst_10 {dimension_numbers = #tpu.dot_dimension_numbers<[1], [0], [0], [1], [0, 0, 1, 1], [], []>} : vector<16x128xf32>, vector<128x128xf32>, vector<16x128xf32> -> vector<16x128xf32>
    %c0_11 = arith.constant 0 : index
    %c0_12 = arith.constant 0 : index
    %28 = vector.load %arg7[%c0_11, %c0_12] : memref<1x128xf32, #tpu.memory_space<vmem>>, vector<1x128xf32>
    %29 = vector.broadcast %28 : vector<1x128xf32> to vector<16x128xf32>
    %30 = arith.addf %27, %29 : vector<16x128xf32>
    %c0_13 = arith.constant 0 : index
    %c0_14 = arith.constant 0 : index
    %31 = vector.load %arg8[%c0_13, %c0_14] : memref<128x128xf32, #tpu.memory_space<vmem>>, vector<128x128xf32>
    %cst_15 = arith.constant dense<0.000000e+00> : vector<16x128xf32>
    %32 = tpu.matmul %25, %31, %cst_15 {dimension_numbers = #tpu.dot_dimension_numbers<[1], [0], [0], [1], [0, 0, 1, 1], [], []>} : vector<16x128xf32>, vector<128x128xf32>, vector<16x128xf32> -> vector<16x128xf32>
    %c0_16 = arith.constant 0 : index
    %c0_17 = arith.constant 0 : index
    %33 = vector.load %arg9[%c0_16, %c0_17] : memref<1x128xf32, #tpu.memory_space<vmem>>, vector<1x128xf32>
    %34 = vector.broadcast %33 : vector<1x128xf32> to vector<16x128xf32>
    %35 = arith.addf %32, %34 : vector<16x128xf32>
    %c0_18 = arith.constant 0 : index
    %c0_19 = arith.constant 0 : index
    %36 = vector.load %arg10[%c0_18, %c0_19] : memref<128x128xf32, #tpu.memory_space<vmem>>, vector<128x128xf32>
    %cst_20 = arith.constant dense<0.000000e+00> : vector<16x128xf32>
    %37 = tpu.matmul %25, %36, %cst_20 {dimension_numbers = #tpu.dot_dimension_numbers<[1], [0], [0], [1], [0, 0, 1, 1], [], []>} : vector<16x128xf32>, vector<128x128xf32>, vector<16x128xf32> -> vector<16x128xf32>
    %c0_21 = arith.constant 0 : index
    %c0_22 = arith.constant 0 : index
    %38 = vector.load %arg11[%c0_21, %c0_22] : memref<1x128xf32, #tpu.memory_space<vmem>>, vector<1x128xf32>
    %39 = vector.broadcast %38 : vector<1x128xf32> to vector<16x128xf32>
    %40 = arith.addf %37, %39 : vector<16x128xf32>
    %c0_23 = arith.constant 0 : index
    %c0_24 = arith.constant 0 : index
    %41 = vector.load %arg12[%c0_23, %c0_24] : memref<128x128xf32, #tpu.memory_space<vmem>>, vector<128x128xf32>
    %c0_25 = arith.constant 0 : index
    %c0_26 = arith.constant 0 : index
    %c0_27 = arith.constant 0 : index
    %c0_28 = arith.constant 0 : index
    %42 = vector.load %arg3[%c0_25, %c0_26, %c0_27, %c0_28] : memref<1x1x16x16xf32, #tpu.memory_space<vmem>>, vector<1x1x16x16xf32>
    %43 = vector.shape_cast %42 : vector<1x1x16x16xf32> to vector<16x16xf32>
    %c0_29 = arith.constant 0 : index
    %c0_30 = arith.constant 0 : index
    %44 = vector.load %arg13[%c0_29, %c0_30] : memref<1x128xf32, #tpu.memory_space<vmem>>, vector<1x128xf32>
    %45 = vector.shape_cast %44 : vector<1x128xf32> to vector<1x128xf32>
    %46 = vector.broadcast %45 : vector<1x128xf32> to vector<16x128xf32>
    %47 = vector.extract_strided_slice %30 {offsets = [0, 0], sizes = [16, 32], strides = [1, 1]} : vector<16x128xf32> to vector<16x32xf32>
    %48 = vector.extract_strided_slice %35 {offsets = [0, 0], sizes = [16, 32], strides = [1, 1]} : vector<16x128xf32> to vector<16x32xf32>
    %49 = vector.extract_strided_slice %40 {offsets = [0, 0], sizes = [16, 32], strides = [1, 1]} : vector<16x128xf32> to vector<16x32xf32>
    %cst_31 = arith.constant dense<0.000000e+00> : vector<16x16xf32>
    %50 = tpu.matmul %47, %48, %cst_31 {dimension_numbers = #tpu.dot_dimension_numbers<[1], [1], [0], [0], [0, 0, 1, 0], [], []>} : vector<16x32xf32>, vector<16x32xf32>, vector<16x16xf32> -> vector<16x16xf32>
    %cst_32 = arith.constant 0.176776692 : f32
    %51 = vector.broadcast %cst_32 : f32 to vector<16x16xf32>
    %52 = arith.mulf %50, %51 : vector<16x16xf32>
    %cst_33 = arith.constant 0.000000e+00 : f32
    %53 = vector.broadcast %cst_33 : f32 to vector<16x16xf32>
    %54 = arith.cmpf oeq, %43, %53 : vector<16x16xf32>
    %cst_34 = arith.constant -1.000000e+09 : f32
    %55 = vector.broadcast %cst_34 : f32 to vector<16x16xf32>
    %56 = arith.select %54, %55, %52 : vector<16x16xi1>, vector<16x16xf32>
    %cst_35 = arith.constant dense<0xFF800000> : vector<16xf32>
    %57 = vector.multi_reduction <maximumf>, %56, %cst_35 [1] : vector<16x16xf32> to vector<16xf32>
    %58 = vector.shape_cast %57 : vector<16xf32> to vector<16x1xf32>
    %59 = vector.broadcast %58 : vector<16x1xf32> to vector<16x16xf32>
    %60 = arith.subf %56, %59 : vector<16x16xf32>
    %61 = math.exp %60 : vector<16x16xf32>
    %cst_36 = arith.constant dense<0.000000e+00> : vector<16xf32>
    %62 = vector.multi_reduction <add>, %61, %cst_36 [1] : vector<16x16xf32> to vector<16xf32>
    %63 = vector.shape_cast %62 : vector<16xf32> to vector<16x1xf32>
    %64 = tpu.reciprocal %63 {approx = true} : vector<16x1xf32> -> vector<16x1xf32>
    %65 = vector.broadcast %64 : vector<16x1xf32> to vector<16x16xf32>
    %66 = arith.mulf %61, %65 : vector<16x16xf32>
    %cst_37 = arith.constant dense<0.000000e+00> : vector<16x32xf32>
    %67 = tpu.matmul %66, %49, %cst_37 {dimension_numbers = #tpu.dot_dimension_numbers<[1], [0], [0], [1], [0, 0, 1, 1], [], []>} : vector<16x16xf32>, vector<16x32xf32>, vector<16x32xf32> -> vector<16x32xf32>
    %68 = vector.extract_strided_slice %41 {offsets = [0, 0], sizes = [32, 128], strides = [1, 1]} : vector<128x128xf32> to vector<32x128xf32>
    %cst_38 = arith.constant dense<0.000000e+00> : vector<16x128xf32>
    %69 = tpu.matmul %67, %68, %cst_38 {dimension_numbers = #tpu.dot_dimension_numbers<[1], [0], [0], [1], [0, 0, 1, 1], [], []>} : vector<16x32xf32>, vector<32x128xf32>, vector<16x128xf32> -> vector<16x128xf32>
    %70 = arith.addf %46, %69 : vector<16x128xf32>
    %71 = vector.extract_strided_slice %30 {offsets = [0, 32], sizes = [16, 32], strides = [1, 1]} : vector<16x128xf32> to vector<16x32xf32>
    %72 = vector.extract_strided_slice %35 {offsets = [0, 32], sizes = [16, 32], strides = [1, 1]} : vector<16x128xf32> to vector<16x32xf32>
    %73 = vector.extract_strided_slice %40 {offsets = [0, 32], sizes = [16, 32], strides = [1, 1]} : vector<16x128xf32> to vector<16x32xf32>
    %cst_39 = arith.constant dense<0.000000e+00> : vector<16x16xf32>
    %74 = tpu.matmul %71, %72, %cst_39 {dimension_numbers = #tpu.dot_dimension_numbers<[1], [1], [0], [0], [0, 0, 1, 0], [], []>} : vector<16x32xf32>, vector<16x32xf32>, vector<16x16xf32> -> vector<16x16xf32>
    %cst_40 = arith.constant 0.176776692 : f32
    %75 = vector.broadcast %cst_40 : f32 to vector<16x16xf32>
    %76 = arith.mulf %74, %75 : vector<16x16xf32>
    %cst_41 = arith.constant 0.000000e+00 : f32
    %77 = vector.broadcast %cst_41 : f32 to vector<16x16xf32>
    %78 = arith.cmpf oeq, %43, %77 : vector<16x16xf32>
    %cst_42 = arith.constant -1.000000e+09 : f32
    %79 = vector.broadcast %cst_42 : f32 to vector<16x16xf32>
    %80 = arith.select %78, %79, %76 : vector<16x16xi1>, vector<16x16xf32>
    %cst_43 = arith.constant dense<0xFF800000> : vector<16xf32>
    %81 = vector.multi_reduction <maximumf>, %80, %cst_43 [1] : vector<16x16xf32> to vector<16xf32>
    %82 = vector.shape_cast %81 : vector<16xf32> to vector<16x1xf32>
    %83 = vector.broadcast %82 : vector<16x1xf32> to vector<16x16xf32>
    %84 = arith.subf %80, %83 : vector<16x16xf32>
    %85 = math.exp %84 : vector<16x16xf32>
    %cst_44 = arith.constant dense<0.000000e+00> : vector<16xf32>
    %86 = vector.multi_reduction <add>, %85, %cst_44 [1] : vector<16x16xf32> to vector<16xf32>
    %87 = vector.shape_cast %86 : vector<16xf32> to vector<16x1xf32>
    %88 = tpu.reciprocal %87 {approx = true} : vector<16x1xf32> -> vector<16x1xf32>
    %89 = vector.broadcast %88 : vector<16x1xf32> to vector<16x16xf32>
    %90 = arith.mulf %85, %89 : vector<16x16xf32>
    %cst_45 = arith.constant dense<0.000000e+00> : vector<16x32xf32>
    %91 = tpu.matmul %90, %73, %cst_45 {dimension_numbers = #tpu.dot_dimension_numbers<[1], [0], [0], [1], [0, 0, 1, 1], [], []>} : vector<16x16xf32>, vector<16x32xf32>, vector<16x32xf32> -> vector<16x32xf32>
    %92 = vector.extract_strided_slice %41 {offsets = [32, 0], sizes = [32, 128], strides = [1, 1]} : vector<128x128xf32> to vector<32x128xf32>
    %cst_46 = arith.constant dense<0.000000e+00> : vector<16x128xf32>
    %93 = tpu.matmul %91, %92, %cst_46 {dimension_numbers = #tpu.dot_dimension_numbers<[1], [0], [0], [1], [0, 0, 1, 1], [], []>} : vector<16x32xf32>, vector<32x128xf32>, vector<16x128xf32> -> vector<16x128xf32>
    %94 = arith.addf %70, %93 : vector<16x128xf32>
    %95 = vector.extract_strided_slice %30 {offsets = [0, 64], sizes = [16, 32], strides = [1, 1]} : vector<16x128xf32> to vector<16x32xf32>
    %96 = vector.extract_strided_slice %35 {offsets = [0, 64], sizes = [16, 32], strides = [1, 1]} : vector<16x128xf32> to vector<16x32xf32>
    %97 = vector.extract_strided_slice %40 {offsets = [0, 64], sizes = [16, 32], strides = [1, 1]} : vector<16x128xf32> to vector<16x32xf32>
    %cst_47 = arith.constant dense<0.000000e+00> : vector<16x16xf32>
    %98 = tpu.matmul %95, %96, %cst_47 {dimension_numbers = #tpu.dot_dimension_numbers<[1], [1], [0], [0], [0, 0, 1, 0], [], []>} : vector<16x32xf32>, vector<16x32xf32>, vector<16x16xf32> -> vector<16x16xf32>
    %cst_48 = arith.constant 0.176776692 : f32
    %99 = vector.broadcast %cst_48 : f32 to vector<16x16xf32>
    %100 = arith.mulf %98, %99 : vector<16x16xf32>
    %cst_49 = arith.constant 0.000000e+00 : f32
    %101 = vector.broadcast %cst_49 : f32 to vector<16x16xf32>
    %102 = arith.cmpf oeq, %43, %101 : vector<16x16xf32>
    %cst_50 = arith.constant -1.000000e+09 : f32
    %103 = vector.broadcast %cst_50 : f32 to vector<16x16xf32>
    %104 = arith.select %102, %103, %100 : vector<16x16xi1>, vector<16x16xf32>
    %cst_51 = arith.constant dense<0xFF800000> : vector<16xf32>
    %105 = vector.multi_reduction <maximumf>, %104, %cst_51 [1] : vector<16x16xf32> to vector<16xf32>
    %106 = vector.shape_cast %105 : vector<16xf32> to vector<16x1xf32>
    %107 = vector.broadcast %106 : vector<16x1xf32> to vector<16x16xf32>
    %108 = arith.subf %104, %107 : vector<16x16xf32>
    %109 = math.exp %108 : vector<16x16xf32>
    %cst_52 = arith.constant dense<0.000000e+00> : vector<16xf32>
    %110 = vector.multi_reduction <add>, %109, %cst_52 [1] : vector<16x16xf32> to vector<16xf32>
    %111 = vector.shape_cast %110 : vector<16xf32> to vector<16x1xf32>
    %112 = tpu.reciprocal %111 {approx = true} : vector<16x1xf32> -> vector<16x1xf32>
    %113 = vector.broadcast %112 : vector<16x1xf32> to vector<16x16xf32>
    %114 = arith.mulf %109, %113 : vector<16x16xf32>
    %cst_53 = arith.constant dense<0.000000e+00> : vector<16x32xf32>
    %115 = tpu.matmul %114, %97, %cst_53 {dimension_numbers = #tpu.dot_dimension_numbers<[1], [0], [0], [1], [0, 0, 1, 1], [], []>} : vector<16x16xf32>, vector<16x32xf32>, vector<16x32xf32> -> vector<16x32xf32>
    %116 = vector.extract_strided_slice %41 {offsets = [64, 0], sizes = [32, 128], strides = [1, 1]} : vector<128x128xf32> to vector<32x128xf32>
    %cst_54 = arith.constant dense<0.000000e+00> : vector<16x128xf32>
    %117 = tpu.matmul %115, %116, %cst_54 {dimension_numbers = #tpu.dot_dimension_numbers<[1], [0], [0], [1], [0, 0, 1, 1], [], []>} : vector<16x32xf32>, vector<32x128xf32>, vector<16x128xf32> -> vector<16x128xf32>
    %118 = arith.addf %94, %117 : vector<16x128xf32>
    %119 = vector.extract_strided_slice %30 {offsets = [0, 96], sizes = [16, 32], strides = [1, 1]} : vector<16x128xf32> to vector<16x32xf32>
    %120 = vector.extract_strided_slice %35 {offsets = [0, 96], sizes = [16, 32], strides = [1, 1]} : vector<16x128xf32> to vector<16x32xf32>
    %121 = vector.extract_strided_slice %40 {offsets = [0, 96], sizes = [16, 32], strides = [1, 1]} : vector<16x128xf32> to vector<16x32xf32>
    %cst_55 = arith.constant dense<0.000000e+00> : vector<16x16xf32>
    %122 = tpu.matmul %119, %120, %cst_55 {dimension_numbers = #tpu.dot_dimension_numbers<[1], [1], [0], [0], [0, 0, 1, 0], [], []>} : vector<16x32xf32>, vector<16x32xf32>, vector<16x16xf32> -> vector<16x16xf32>
    %cst_56 = arith.constant 0.176776692 : f32
    %123 = vector.broadcast %cst_56 : f32 to vector<16x16xf32>
    %124 = arith.mulf %122, %123 : vector<16x16xf32>
    %cst_57 = arith.constant 0.000000e+00 : f32
    %125 = vector.broadcast %cst_57 : f32 to vector<16x16xf32>
    %126 = arith.cmpf oeq, %43, %125 : vector<16x16xf32>
    %cst_58 = arith.constant -1.000000e+09 : f32
    %127 = vector.broadcast %cst_58 : f32 to vector<16x16xf32>
    %128 = arith.select %126, %127, %124 : vector<16x16xi1>, vector<16x16xf32>
    %cst_59 = arith.constant dense<0xFF800000> : vector<16xf32>
    %129 = vector.multi_reduction <maximumf>, %128, %cst_59 [1] : vector<16x16xf32> to vector<16xf32>
    %130 = vector.shape_cast %129 : vector<16xf32> to vector<16x1xf32>
    %131 = vector.broadcast %130 : vector<16x1xf32> to vector<16x16xf32>
    %132 = arith.subf %128, %131 : vector<16x16xf32>
    %133 = math.exp %132 : vector<16x16xf32>
    %cst_60 = arith.constant dense<0.000000e+00> : vector<16xf32>
    %134 = vector.multi_reduction <add>, %133, %cst_60 [1] : vector<16x16xf32> to vector<16xf32>
    %135 = vector.shape_cast %134 : vector<16xf32> to vector<16x1xf32>
    %136 = tpu.reciprocal %135 {approx = true} : vector<16x1xf32> -> vector<16x1xf32>
    %137 = vector.broadcast %136 : vector<16x1xf32> to vector<16x16xf32>
    %138 = arith.mulf %133, %137 : vector<16x16xf32>
    %cst_61 = arith.constant dense<0.000000e+00> : vector<16x32xf32>
    %139 = tpu.matmul %138, %121, %cst_61 {dimension_numbers = #tpu.dot_dimension_numbers<[1], [0], [0], [1], [0, 0, 1, 1], [], []>} : vector<16x16xf32>, vector<16x32xf32>, vector<16x32xf32> -> vector<16x32xf32>
    %140 = vector.extract_strided_slice %41 {offsets = [96, 0], sizes = [32, 128], strides = [1, 1]} : vector<128x128xf32> to vector<32x128xf32>
    %cst_62 = arith.constant dense<0.000000e+00> : vector<16x128xf32>
    %141 = tpu.matmul %139, %140, %cst_62 {dimension_numbers = #tpu.dot_dimension_numbers<[1], [0], [0], [1], [0, 0, 1, 1], [], []>} : vector<16x32xf32>, vector<32x128xf32>, vector<16x128xf32> -> vector<16x128xf32>
    %142 = arith.addf %118, %141 : vector<16x128xf32>
    %143 = arith.addf %1, %142 : vector<16x128xf32>
    %c0_63 = arith.constant 0 : index
    %c0_64 = arith.constant 0 : index
    %c0_65 = arith.constant 0 : index
    %144 = vector.load %arg14[%c0_63, %c0_64, %c0_65] : memref<1x16x128xf32, #tpu.memory_space<vmem>>, vector<1x16x128xf32>
    %145 = vector.shape_cast %144 : vector<1x16x128xf32> to vector<16x128xf32>
    %146 = vector.shape_cast %143 : vector<16x128xf32> to vector<1x16x128xf32>
    tpu.vector_store %arg14[%c0_63, %c0_64, %c0_65], %146 {strides = array<i32>} : memref<1x16x128xf32, #tpu.memory_space<vmem>>, vector<1x16x128xf32>,
    return
  }
  func.func @transform_0(%arg0: i32) -> (i32, i32, i32) {
    %c0_i32 = arith.constant 0 : i32
    %c0_i32_0 = arith.constant 0 : i32
    %c0_i32_1 = arith.constant 0 : i32
    return %arg0, %c0_i32, %c0_i32_0 : i32, i32, i32
  }
  func.func @transform_1(%arg0: i32) -> (i32, i32, i32) {
    %c0_i32 = arith.constant 0 : i32
    %c0_i32_0 = arith.constant 0 : i32
    %c0_i32_1 = arith.constant 0 : i32
    return %arg0, %c0_i32, %c0_i32_0 : i32, i32, i32
  }
  func.func @transform_2(%arg0: i32) -> (i32, i32, i32, i32) {
    %c0_i32 = arith.constant 0 : i32
    %c0_i32_0 = arith.constant 0 : i32
    %c0_i32_1 = arith.constant 0 : i32
    %c0_i32_2 = arith.constant 0 : i32
    return %arg0, %c0_i32, %c0_i32_0, %c0_i32_1 : i32, i32, i32, i32
  }
  func.func @transform_3(%arg0: i32) -> i32 {
    %c0_i32 = arith.constant 0 : i32
    %c0_i32_0 = arith.constant 0 : i32
    return %c0_i32 : i32
  }
  func.func @transform_4(%arg0: i32) -> i32 {
    %c0_i32 = arith.constant 0 : i32
    %c0_i32_0 = arith.constant 0 : i32
    return %c0_i32 : i32
  }
  func.func @transform_5(%arg0: i32) -> (i32, i32) {
    %c0_i32 = arith.constant 0 : i32
    %c0_i32_0 = arith.constant 0 : i32
    %c0_i32_1 = arith.constant 0 : i32
    return %c0_i32, %c0_i32_0 : i32, i32
  }
  func.func @transform_6(%arg0: i32) -> (i32, i32) {
    %c0_i32 = arith.constant 0 : i32
    %c0_i32_0 = arith.constant 0 : i32
    %c0_i32_1 = arith.constant 0 : i32
    return %c0_i32, %c0_i32_0 : i32, i32
  }
  func.func @transform_7(%arg0: i32) -> (i32, i32) {
    %c0_i32 = arith.constant 0 : i32
    %c0_i32_0 = arith.constant 0 : i32
    %c0_i32_1 = arith.constant 0 : i32
    return %c0_i32, %c0_i32_0 : i32, i32
  }
  func.func @transform_8(%arg0: i32) -> (i32, i32) {
    %c0_i32 = arith.constant 0 : i32
    %c0_i32_0 = arith.constant 0 : i32
    %c0_i32_1 = arith.constant 0 : i32
    return %c0_i32, %c0_i32_0 : i32, i32
  }
  func.func @transform_9(%arg0: i32) -> (i32, i32) {
    %c0_i32 = arith.constant 0 : i32
    %c0_i32_0 = arith.constant 0 : i32
    %c0_i32_1 = arith.constant 0 : i32
    return %c0_i32, %c0_i32_0 : i32, i32
  }
  func.func @transform_10(%arg0: i32) -> (i32, i32) {
    %c0_i32 = arith.constant 0 : i32
    %c0_i32_0 = arith.constant 0 : i32
    %c0_i32_1 = arith.constant 0 : i32
    return %c0_i32, %c0_i32_0 : i32, i32
  }
  func.func @transform_11(%arg0: i32) -> (i32, i32) {
    %c0_i32 = arith.constant 0 : i32
    %c0_i32_0 = arith.constant 0 : i32
    %c0_i32_1 = arith.constant 0 : i32
    return %c0_i32, %c0_i32_0 : i32, i32
  }
  func.func @transform_12(%arg0: i32) -> (i32, i32) {
    %c0_i32 = arith.constant 0 : i32
    %c0_i32_0 = arith.constant 0 : i32
    %c0_i32_1 = arith.constant 0 : i32
    return %c0_i32, %c0_i32_0 : i32, i32
  }
  func.func @transform_13(%arg0: i32) -> (i32, i32, i32) {
    %c0_i32 = arith.constant 0 : i32
    %c0_i32_0 = arith.constant 0 : i32
    %c0_i32_1 = arith.constant 0 : i32
    return %arg0, %c0_i32, %c0_i32_0 : i32, i32, i32
  }
}

module attributes {stable_mosaic.version = 11 : i64} {
  func.func @_ffn_sublayer_kernel(%arg0: i32, %arg1: memref<1x16x128xf32, #tpu.memory_space<vmem>>, %arg2: memref<1xf32, #tpu.memory_space<smem>>, %arg3: memref<1xf32, #tpu.memory_space<smem>>, %arg4: memref<128x256xf32, #tpu.memory_space<vmem>>, %arg5: memref<1x256xf32, #tpu.memory_space<vmem>>, %arg6: memref<256x128xf32, #tpu.memory_space<vmem>>, %arg7: memref<1x128xf32, #tpu.memory_space<vmem>>, %arg8: memref<1x16x128xf32, #tpu.memory_space<vmem>>) attributes {dimension_semantics = [#tpu.dimension_semantics<parallel>], iteration_bounds = array<i64: 2>, scalar_prefetch = 0 : i64, scratch_operands = 0 : i64, tpu.core_type = #tpu.core_type<tc>, window_params = [{transform_indices = @transform_0, window_bounds = array<i64: 1, 16, 128>}, {transform_indices = @transform_1, window_bounds = array<i64: 1>}, {transform_indices = @transform_2, window_bounds = array<i64: 1>}, {pipeline_mode = #tpu.pipeline_mode<synchronous>, transform_indices = @transform_3, window_bounds = array<i64: 128, 256>}, {pipeline_mode = #tpu.pipeline_mode<synchronous>, transform_indices = @transform_4, window_bounds = array<i64: 1, 256>}, {pipeline_mode = #tpu.pipeline_mode<synchronous>, transform_indices = @transform_5, window_bounds = array<i64: 256, 128>}, {pipeline_mode = #tpu.pipeline_mode<synchronous>, transform_indices = @transform_6, window_bounds = array<i64: 1, 128>}, {transform_indices = @transform_7, window_bounds = array<i64: 1, 16, 128>}]} {
    %c0 = arith.constant 0 : index
    %c0_0 = arith.constant 0 : index
    %c0_1 = arith.constant 0 : index
    %0 = vector.load %arg1[%c0, %c0_0, %c0_1] : memref<1x16x128xf32, #tpu.memory_space<vmem>>, vector<1x16x128xf32>
    %1 = vector.shape_cast %0 : vector<1x16x128xf32> to vector<16x128xf32>
    %cst = arith.constant dense<0.000000e+00> : vector<16xf32>
    %2 = vector.multi_reduction <add>, %1, %cst [1] : vector<16x128xf32> to vector<16xf32>
    %3 = vector.shape_cast %2 : vector<16xf32> to vector<16x1xf32>
    %cst_2 = arith.constant 1.280000e+02 : f32
    %4 = vector.broadcast %cst_2 : f32 to vector<16x1xf32>
    %5 = arith.divf %3, %4 : vector<16x1xf32>
    %6 = vector.broadcast %5 : vector<16x1xf32> to vector<16x128xf32>
    %7 = arith.subf %1, %6 : vector<16x128xf32>
    %8 = arith.mulf %7, %7 : vector<16x128xf32>
    %cst_3 = arith.constant dense<0.000000e+00> : vector<16xf32>
    %9 = vector.multi_reduction <add>, %8, %cst_3 [1] : vector<16x128xf32> to vector<16xf32>
    %10 = vector.shape_cast %9 : vector<16xf32> to vector<16x1xf32>
    %cst_4 = arith.constant 1.270000e+02 : f32
    %11 = vector.broadcast %cst_4 : f32 to vector<16x1xf32>
    %12 = arith.divf %10, %11 : vector<16x1xf32>
    %c0_5 = arith.constant 0 : index
    %13 = memref.load %arg2[%c0_5] : memref<1xf32, #tpu.memory_space<smem>>
    %14 = vector.broadcast %5 : vector<16x1xf32> to vector<16x128xf32>
    %15 = arith.subf %1, %14 : vector<16x128xf32>
    %16 = vector.broadcast %13 : f32 to vector<16x128xf32>
    %17 = arith.mulf %16, %15 : vector<16x128xf32>
    %18 = math.sqrt %12 : vector<16x1xf32>
    %cst_6 = arith.constant 9.99999997E-7 : f32
    %19 = vector.broadcast %cst_6 : f32 to vector<16x1xf32>
    %20 = arith.addf %18, %19 : vector<16x1xf32>
    %21 = vector.broadcast %20 : vector<16x1xf32> to vector<16x128xf32>
    %22 = arith.divf %17, %21 : vector<16x128xf32>
    %c0_7 = arith.constant 0 : index
    %23 = memref.load %arg3[%c0_7] : memref<1xf32, #tpu.memory_space<smem>>
    %24 = vector.broadcast %23 : f32 to vector<16x128xf32>
    %25 = arith.addf %22, %24 : vector<16x128xf32>
    %c0_8 = arith.constant 0 : index
    %c0_9 = arith.constant 0 : index
    %26 = vector.load %arg4[%c0_8, %c0_9] : memref<128x256xf32, #tpu.memory_space<vmem>>, vector<128x256xf32>
    %cst_10 = arith.constant dense<0.000000e+00> : vector<16x256xf32>
    %27 = tpu.matmul %25, %26, %cst_10 {dimension_numbers = #tpu.dot_dimension_numbers<[1], [0], [0], [1], [0, 0, 1, 1], [], []>} : vector<16x128xf32>, vector<128x256xf32>, vector<16x256xf32> -> vector<16x256xf32>
    %c0_11 = arith.constant 0 : index
    %c0_12 = arith.constant 0 : index
    %28 = vector.load %arg5[%c0_11, %c0_12] : memref<1x256xf32, #tpu.memory_space<vmem>>, vector<1x256xf32>
    %29 = vector.broadcast %28 : vector<1x256xf32> to vector<16x256xf32>
    %30 = arith.addf %27, %29 : vector<16x256xf32>
    %cst_13 = arith.constant 0.000000e+00 : f32
    %31 = vector.broadcast %cst_13 : f32 to vector<16x256xf32>
    %32 = arith.maximumf %30, %31 : vector<16x256xf32>
    %c0_14 = arith.constant 0 : index
    %c0_15 = arith.constant 0 : index
    %33 = vector.load %arg6[%c0_14, %c0_15] : memref<256x128xf32, #tpu.memory_space<vmem>>, vector<256x128xf32>
    %cst_16 = arith.constant dense<0.000000e+00> : vector<16x128xf32>
    %34 = tpu.matmul %32, %33, %cst_16 {dimension_numbers = #tpu.dot_dimension_numbers<[1], [0], [0], [1], [0, 0, 1, 1], [], []>} : vector<16x256xf32>, vector<256x128xf32>, vector<16x128xf32> -> vector<16x128xf32>
    %c0_17 = arith.constant 0 : index
    %c0_18 = arith.constant 0 : index
    %35 = vector.load %arg7[%c0_17, %c0_18] : memref<1x128xf32, #tpu.memory_space<vmem>>, vector<1x128xf32>
    %36 = vector.broadcast %35 : vector<1x128xf32> to vector<16x128xf32>
    %37 = arith.addf %34, %36 : vector<16x128xf32>
    %38 = arith.addf %1, %37 : vector<16x128xf32>
    %c0_19 = arith.constant 0 : index
    %c0_20 = arith.constant 0 : index
    %c0_21 = arith.constant 0 : index
    %39 = vector.load %arg8[%c0_19, %c0_20, %c0_21] : memref<1x16x128xf32, #tpu.memory_space<vmem>>, vector<1x16x128xf32>
    %40 = vector.shape_cast %39 : vector<1x16x128xf32> to vector<16x128xf32>
    %41 = vector.shape_cast %38 : vector<16x128xf32> to vector<1x16x128xf32>
    tpu.vector_store %arg8[%c0_19, %c0_20, %c0_21], %41 {strides = array<i32>} : memref<1x16x128xf32, #tpu.memory_space<vmem>>, vector<1x16x128xf32>,
    return
  }
  func.func @transform_0(%arg0: i32) -> (i32, i32, i32) {
    %c0_i32 = arith.constant 0 : i32
    %c0_i32_0 = arith.constant 0 : i32
    %c0_i32_1 = arith.constant 0 : i32
    return %arg0, %c0_i32, %c0_i32_0 : i32, i32, i32
  }
  func.func @transform_1(%arg0: i32) -> i32 {
    %c0_i32 = arith.constant 0 : i32
    %c0_i32_0 = arith.constant 0 : i32
    return %c0_i32 : i32
  }
  func.func @transform_2(%arg0: i32) -> i32 {
    %c0_i32 = arith.constant 0 : i32
    %c0_i32_0 = arith.constant 0 : i32
    return %c0_i32 : i32
  }
  func.func @transform_3(%arg0: i32) -> (i32, i32) {
    %c0_i32 = arith.constant 0 : i32
    %c0_i32_0 = arith.constant 0 : i32
    %c0_i32_1 = arith.constant 0 : i32
    return %c0_i32, %c0_i32_0 : i32, i32
  }
  func.func @transform_4(%arg0: i32) -> (i32, i32) {
    %c0_i32 = arith.constant 0 : i32
    %c0_i32_0 = arith.constant 0 : i32
    %c0_i32_1 = arith.constant 0 : i32
    return %c0_i32, %c0_i32_0 : i32, i32
  }
  func.func @transform_5(%arg0: i32) -> (i32, i32) {
    %c0_i32 = arith.constant 0 : i32
    %c0_i32_0 = arith.constant 0 : i32
    %c0_i32_1 = arith.constant 0 : i32
    return %c0_i32, %c0_i32_0 : i32, i32
  }
  func.func @transform_6(%arg0: i32) -> (i32, i32) {
    %c0_i32 = arith.constant 0 : i32
    %c0_i32_0 = arith.constant 0 : i32
    %c0_i32_1 = arith.constant 0 : i32
    return %c0_i32, %c0_i32_0 : i32, i32
  }
  func.func @transform_7(%arg0: i32) -> (i32, i32, i32) {
    %c0_i32 = arith.constant 0 : i32
    %c0_i32_0 = arith.constant 0 : i32
    %c0_i32_1 = arith.constant 0 : i32
    return %arg0, %c0_i32, %c0_i32_0 : i32, i32, i32
  }
}

module attributes {stable_mosaic.version = 11 : i64} {
  func.func @_layernorm_kernel(%arg0: i32, %arg1: memref<32x128xf32, #tpu.memory_space<vmem>>, %arg2: memref<1xf32, #tpu.memory_space<smem>>, %arg3: memref<1xf32, #tpu.memory_space<smem>>, %arg4: memref<32x128xf32, #tpu.memory_space<vmem>>) attributes {dimension_semantics = [#tpu.dimension_semantics<parallel>], iteration_bounds = array<i64: 1>, scalar_prefetch = 0 : i64, scratch_operands = 0 : i64, tpu.core_type = #tpu.core_type<tc>, window_params = [{transform_indices = @transform_0, window_bounds = array<i64: 32, 128>}, {transform_indices = @transform_1, window_bounds = array<i64: 1>}, {transform_indices = @transform_2, window_bounds = array<i64: 1>}, {transform_indices = @transform_3, window_bounds = array<i64: 32, 128>}]} {
    %c0 = arith.constant 0 : index
    %c0_0 = arith.constant 0 : index
    %0 = vector.load %arg1[%c0, %c0_0] : memref<32x128xf32, #tpu.memory_space<vmem>>, vector<32x128xf32>
    %cst = arith.constant dense<0.000000e+00> : vector<32xf32>
    %1 = vector.multi_reduction <add>, %0, %cst [1] : vector<32x128xf32> to vector<32xf32>
    %2 = vector.shape_cast %1 : vector<32xf32> to vector<32x1xf32>
    %cst_1 = arith.constant 1.280000e+02 : f32
    %3 = vector.broadcast %cst_1 : f32 to vector<32x1xf32>
    %4 = arith.divf %2, %3 : vector<32x1xf32>
    %5 = vector.broadcast %4 : vector<32x1xf32> to vector<32x128xf32>
    %6 = arith.subf %0, %5 : vector<32x128xf32>
    %7 = arith.mulf %6, %6 : vector<32x128xf32>
    %cst_2 = arith.constant dense<0.000000e+00> : vector<32xf32>
    %8 = vector.multi_reduction <add>, %7, %cst_2 [1] : vector<32x128xf32> to vector<32xf32>
    %9 = vector.shape_cast %8 : vector<32xf32> to vector<32x1xf32>
    %cst_3 = arith.constant 1.270000e+02 : f32
    %10 = vector.broadcast %cst_3 : f32 to vector<32x1xf32>
    %11 = arith.divf %9, %10 : vector<32x1xf32>
    %c0_4 = arith.constant 0 : index
    %12 = memref.load %arg2[%c0_4] : memref<1xf32, #tpu.memory_space<smem>>
    %13 = vector.broadcast %4 : vector<32x1xf32> to vector<32x128xf32>
    %14 = arith.subf %0, %13 : vector<32x128xf32>
    %15 = vector.broadcast %12 : f32 to vector<32x128xf32>
    %16 = arith.mulf %15, %14 : vector<32x128xf32>
    %17 = math.sqrt %11 : vector<32x1xf32>
    %cst_5 = arith.constant 9.99999997E-7 : f32
    %18 = vector.broadcast %cst_5 : f32 to vector<32x1xf32>
    %19 = arith.addf %17, %18 : vector<32x1xf32>
    %20 = vector.broadcast %19 : vector<32x1xf32> to vector<32x128xf32>
    %21 = arith.divf %16, %20 : vector<32x128xf32>
    %c0_6 = arith.constant 0 : index
    %22 = memref.load %arg3[%c0_6] : memref<1xf32, #tpu.memory_space<smem>>
    %23 = vector.broadcast %22 : f32 to vector<32x128xf32>
    %24 = arith.addf %21, %23 : vector<32x128xf32>
    %c0_7 = arith.constant 0 : index
    %c0_8 = arith.constant 0 : index
    %25 = vector.load %arg4[%c0_7, %c0_8] : memref<32x128xf32, #tpu.memory_space<vmem>>, vector<32x128xf32>
    tpu.vector_store %arg4[%c0_7, %c0_8], %24 {strides = array<i32>} : memref<32x128xf32, #tpu.memory_space<vmem>>, vector<32x128xf32>,
    return
  }
  func.func @transform_0(%arg0: i32) -> (i32, i32) {
    %c0_i32 = arith.constant 0 : i32
    %c0_i32_0 = arith.constant 0 : i32
    return %arg0, %c0_i32 : i32, i32
  }
  func.func @transform_1(%arg0: i32) -> i32 {
    %c0_i32 = arith.constant 0 : i32
    %c0_i32_0 = arith.constant 0 : i32
    return %c0_i32 : i32
  }
  func.func @transform_2(%arg0: i32) -> i32 {
    %c0_i32 = arith.constant 0 : i32
    %c0_i32_0 = arith.constant 0 : i32
    return %c0_i32 : i32
  }
  func.func @transform_3(%arg0: i32) -> (i32, i32) {
    %c0_i32 = arith.constant 0 : i32
    %c0_i32_0 = arith.constant 0 : i32
    return %arg0, %c0_i32 : i32, i32
  }
}

</mosaic_0001>

<bundles_post_ra>
// kernel: decoder_forward.9
= control target key start
LH: loop header
LB: loop body
LE: loop exit
PB: predicated region body
PF: predicated region fallthrough
CT: control target
= control target key end

     0   :  { %s751_s28 = smov 0   ;;  %s995_s0 = inlined_call_operand.vmem [shape: f32[2,16,128], index: 0, kind: input, shape index: {}]   ;;  %s996_s1 = inlined_call_operand.<no memory space> [shape: f32[1], index: 1, kind: input, shape index: {}]   ;;  %s997_s2 = inlined_call_operand.<no memory space> [shape: f32[1], index: 2, kind: input, shape index: {}]   ;;  %s998_s3 = inlined_call_operand.vmem [shape: f32[128,256], index: 3, kind: input, shape index: {}]   ;;  %s999_s4 = inlined_call_operand.vmem [shape: f32[1,256], index: 4, kind: input, shape index: {}]   ;;  %s1000_s5 = inlined_call_operand.vmem [shape: f32[256,128], index: 5, kind: input, shape index: {}]   ;;  %s1001_s6 = inlined_call_operand.vmem [shape: f32[1,128], index: 6, kind: input, shape index: {}]   ;;  %s1002_s7 = inlined_call_operand.vmem [shape: f32[2,16,128], index: 7, kind: output, shape index: {}]  }
   0x1   :  { %12 = sst [smem:[#allocation2]] %s996_s1 }
   0x2   :  { %13 = sst [smem:[#allocation3]] %s997_s2 }
   0x3 LB: > { %s627_s29 = sadd.s32 4294967295, %s702_s28   ;;  %p631_p0 = scmp.ge.s32.totalorder %s702_s28, 1  ;;  %s702_s28 = sphi %s751_s28, %s19_s28  }
   0x4   : > { %p239_p1 = scmp.lt.s32.totalorder %s702_s28, 3 }
   0x6   : > { %p240_p2 = pnand %p631_p0, %p239_p1 }
   0x7   : > { %p271_p3 = scmp.lt.s32.totalorder (!%p240_p2), %s627_s29, 1  ;;  %s301_s11 = sld [smem:[#allocation2]] (!%p240_p2) }
   0x8   : > { %243 = sbr.rel (%p240_p2) target bundleno = 745 (0x2e9), region = 48  ;;  %s325_s12 = sld [smem:[#allocation3]] (!%p240_p2) }
   0xd   : > { %s1004_s29 = smov (!%p271_p3, %s627_s29), 1  ;;  %v360_v10 = vld [vmem:[%s998_s3 + $0xf8] sm:$0xff]  ;;  %v359_v11 = vld [vmem:[%s998_s3 + $0xf0] sm:$0xff]  ;;  %v358_v12 = vld [vmem:[%s998_s3 + $0xe8] sm:$0xff]  ;;  %v704_v31 = vmov 0.0  }
   0xe   : > { %s639_s1 = sshll.u32 %s1004_s29, 4  ;;  %373 = vmatprep.subr.mxu0 %v360_v10  ;;  %v357_v13 = vld [vmem:[%s998_s3 + $0xe0] sm:$0xff]  ;;  %v356_v14 = vld [vmem:[%s998_s3 + $0xd8] sm:$0xff]  ;;  %v355_v15 = vld [vmem:[%s998_s3 + $0xd0] sm:$0xff]  ;;  %437 = vmatprep.mubr.f32.mxu0 %v704_v31 }
   0xf   : > { %s275_s8 = scalar_lea.vmem %s995_s0, %s639_s1  ;;  %374 = vmatpush1.msra.mxu0 %v359_v11  ;;  %v354_v16 = vld [vmem:[%s998_s3 + $0xc8] sm:$0xff]  ;;  %v353_v17 = vld [vmem:[%s998_s3 + $0xc0] sm:$0xff]  ;;  %v352_v18 = vld [vmem:[%s998_s3 + $0xb8] sm:$0xff]  ;;  %s280_s13 = scalar_lea.vmem %s1002_s7, %s639_s1 }
  0x10   : > { %v767_v0 = vld [vmem:[%s275_s8] sm:$0xff]  ;;  %v770_v1 = vld [vmem:[%s275_s8 + $0x8] sm:$0xff]  ;;  %375 = vmatprep.subr.mxu0 %v358_v12  ;;  %v351_v19 = vld [vmem:[%s998_s3 + $0xb0] sm:$0xff] }
  0x11   : > { %283 = vadd.xlane.f32.xlu0 %v767_v0  ;;  %376 = vmatpush1.msra.mxu0 %v357_v13  ;;  %v350_v20 = vld [vmem:[%s998_s3 + $0xa8] sm:$0xff]  ;;  %v349_v21 = vld [vmem:[%s998_s3 + $0xa0] sm:$0xff]  ;;  %v348_v22 = vld [vmem:[%s998_s3 + $0x98] sm:$0xff] }
  0x12   : > { %377 = vmatprep.subr.mxu0 %v356_v14  ;;  %v347_v23 = vld [vmem:[%s998_s3 + $0x90] sm:$0xff]  ;;  %v346_v24 = vld [vmem:[%s998_s3 + $0x88] sm:$0xff]  ;;  %v345_v25 = vld [vmem:[%s998_s3 + $0x80] sm:$0xff] }
  0x13   : > { %378 = vmatpush1.msra.mxu0 %v355_v15  ;;  %v344_v26 = vld [vmem:[%s998_s3 + $0x78] sm:$0xff]  ;;  %v343_v27 = vld [vmem:[%s998_s3 + $0x70] sm:$0xff]  ;;  %v342_v28 = vld [vmem:[%s998_s3 + $0x68] sm:$0xff] }
  0x14   : > { %379 = vmatprep.subr.mxu0 %v354_v16  ;;  %v341_v29 = vld [vmem:[%s998_s3 + $0x60] sm:$0xff]  ;;  %v340_v30 = vld [vmem:[%s998_s3 + $0x58] sm:$0xff]  ;;  %v339_v32 = vld [vmem:[%s998_s3 + $0x50] sm:$0xff] }
  0x15   : > { %285 = vadd.xlane.f32.xlu0 %v770_v1  ;;  %380 = vmatpush1.msra.mxu0 %v353_v17  ;;  %v338_v33 = vld [vmem:[%s998_s3 + $0x48] sm:$0xff]  ;;  %v337_v34 = vld [vmem:[%s998_s3 + $0x40] sm:$0xff]  ;;  %v336_v35 = vld [vmem:[%s998_s3 + $0x38] sm:$0xff] }
  0x16   : > { %381 = vmatprep.subr.mxu0 %v352_v18  ;;  %v335_v36 = vld [vmem:[%s998_s3 + $0x30] sm:$0xff]  ;;  %v334_v37 = vld [vmem:[%s998_s3 + $0x28] sm:$0xff]  ;;  %v333_v38 = vld [vmem:[%s998_s3 + $0x20] sm:$0xff] }
  0x17   : > { %382 = vmatpush1.msra.mxu0 %v351_v19  ;;  %v332_v39 = vld [vmem:[%s998_s3 + $0x18] sm:$0xff]  ;;  %v331_v40 = vld [vmem:[%s998_s3 + $0x10] sm:$0xff]  ;;  %v330_v41 = vld [vmem:[%s998_s3 + $0x8] sm:$0xff] }
  0x18   : > { %383 = vmatprep.subr.mxu0 %v350_v20  ;;  %v329_v42 = vld [vmem:[%s998_s3] sm:$0xff]  ;;  %v485_v43 = vld [vmem:[%s1000_s5 + $0xf8] sm:$0xff]  ;;  %v484_v45 = vld [vmem:[%s1000_s5 + $0xf0] sm:$0xff] }
  0x19   : > { %384 = vmatpush1.msra.mxu0 %v349_v21  ;;  %v469_v44 = vld [vmem:[%s1000_s5 + $0x78] sm:$0xff]  ;;  %641 = vmatprep.subr.mxu1 %v485_v43  ;;  %v468_v46 = vld [vmem:[%s1000_s5 + $0x70] sm:$0xff]  ;;  %v483_v47 = vld [vmem:[%s1000_s5 + $0xe8] sm:$0xff] }
  0x1a   : > { %385 = vmatprep.subr.mxu0 %v348_v22  ;;  %642 = vmatpush3.msra.mxu1 %v469_v44  ;;  %v467_v48 = vld [vmem:[%s1000_s5 + $0x68] sm:$0xff]  ;;  %v482_v49 = vld [vmem:[%s1000_s5 + $0xe0] sm:$0xff]  ;;  %v481_v51 = vld [vmem:[%s1000_s5 + $0xd8] sm:$0xff] }
  0x1b   : > { %386 = vmatpush1.msra.mxu0 %v347_v23  ;;  %643 = vmatprep.subr.mxu1 %v484_v45  ;;  %v466_v50 = vld [vmem:[%s1000_s5 + $0x60] sm:$0xff]  ;;  %v465_v52 = vld [vmem:[%s1000_s5 + $0x58] sm:$0xff]  ;;  %v480_v53 = vld [vmem:[%s1000_s5 + $0xd0] sm:$0xff]  ;;  %v302_v23 = vstv %s301_s11 }
  0x1c   : > { %387 = vmatprep.subr.mxu0 %v346_v24  ;;  %644 = vmatpush3.msra.mxu1 %v468_v46  ;;  %v464_v54 = vld [vmem:[%s1000_s5 + $0x50] sm:$0xff]  ;;  %v479_v55 = vld [vmem:[%s1000_s5 + $0xc8] sm:$0xff]  ;;  %v478_v57 = vld [vmem:[%s1000_s5 + $0xc0] sm:$0xff] }
  0x1d   : > { %388 = vmatpush1.msra.mxu0 %v345_v25  ;;  %645 = vmatprep.subr.mxu1 %v483_v47  ;;  %v463_v56 = vld [vmem:[%s1000_s5 + $0x48] sm:$0xff]  ;;  %v462_v58 = vld [vmem:[%s1000_s5 + $0x40] sm:$0xff]  ;;  %v477_v59 = vld [vmem:[%s1000_s5 + $0xb8] sm:$0xff] }
  0x1e   : > { %389 = vmatprep.subr.mxu0 %v344_v26  ;;  %646 = vmatpush3.msra.mxu1 %v467_v48  ;;  %v461_v60 = vld [vmem:[%s1000_s5 + $0x38] sm:$0xff]  ;;  %v476_v61 = vld [vmem:[%s1000_s5 + $0xb0] sm:$0xff]  ;;  %v475_v63 = vld [vmem:[%s1000_s5 + $0xa8] sm:$0xff]  ;;  %v326_v26 = vstv %s325_s12 }
  0x1f   : > { %390 = vmatpush1.msra.mxu0 %v343_v27  ;;  %647 = vmatprep.subr.mxu1 %v482_v49  ;;  %v460_v62 = vld [vmem:[%s1000_s5 + $0x30] sm:$0xff] }
  0x20   : > { %391 = vmatprep.subr.mxu0 %v342_v28  ;;  %648 = vmatpush3.msra.mxu1 %v466_v50 }
  0x21   : > { %392 = vmatpush1.msra.mxu0 %v341_v29  ;;  %649 = vmatprep.subr.mxu1 %v481_v51 }
  0x22   : > { %393 = vmatprep.subr.mxu0 %v340_v30  ;;  %650 = vmatpush3.msra.mxu1 %v465_v52 }
  0x23   : > { %394 = vmatpush1.msra.mxu0 %v339_v32  ;;  %651 = vmatprep.subr.mxu1 %v480_v53 }
  0x24   : > { %395 = vmatprep.subr.mxu0 %v338_v33  ;;  %652 = vmatpush3.msra.mxu1 %v464_v54 }
  0x25   : > { %396 = vmatpush1.msra.mxu0 %v337_v34  ;;  %653 = vmatprep.subr.mxu1 %v479_v55  ;;  %v473_v34 = vld [vmem:[%s1000_s5 + $0x98] sm:$0xff] }
  0x26   : > { %397 = vmatprep.subr.mxu0 %v336_v35  ;;  %654 = vmatpush3.msra.mxu1 %v463_v56  ;;  %v471_v35 = vld [vmem:[%s1000_s5 + $0x88] sm:$0xff] }
  0x27   : > { %398 = vmatpush1.msra.mxu0 %v335_v36  ;;  %655 = vmatprep.subr.mxu1 %v478_v57  ;;  %v455_v36 = vld [vmem:[%s1000_s5 + $0x8] sm:$0xff] }
  0x28   : > { %399 = vmatprep.subr.mxu0 %v334_v37  ;;  %656 = vmatpush3.msra.mxu1 %v462_v58  ;;  %v470_v37 = vld [vmem:[%s1000_s5 + $0x80] sm:$0xff] }
  0x29   : > { %400 = vmatpush1.msra.mxu0 %v333_v38  ;;  %657 = vmatprep.subr.mxu1 %v477_v59  ;;  %v454_v38 = vld [vmem:[%s1000_s5] sm:$0xff] }
  0x2a   : > { %401 = vmatprep.subr.mxu0 %v332_v39  ;;  %658 = vmatpush3.msra.mxu1 %v461_v60  ;;  %v363_v39 = vlaneseq  ;;  %v636_v59 = vld [vmem:[%s1001_s6] ss:$0 sm:$0xff] }
  0x2b   : > { %402 = vmatpush1.msra.mxu0 %v331_v40  ;;  %659 = vmatprep.subr.mxu1 %v476_v61 }
  0x2c   : > { %403 = vmatprep.subr.mxu0 %v330_v41  ;;  %660 = vmatpush3.msra.mxu1 %v460_v62  ;;  %v364_v40 = vshrl.u32 %v363_v39, 7 }
  0x2d   : > { %404 = vmatpush1.msra.mxu0 %v329_v42  ;;  %661 = vmatprep.subr.mxu1 %v475_v63  ;;  %v361_v42 = vld [vmem:[%s999_s4] sm:$0x3] }
  0x2e   : > { %v365_v41 = vsub.s32 0, %v364_v40  ;;  %v369_v43 = vsub.s32 1, %v364_v40 }
  0x30   : > { %v366_v44 = vrot.slane %v361_v42, %v365_v41  ;;  %v370_v45 = vrot.slane %v361_v42, %v369_v43 }
  0x9a   : > { %v284_v2 = vpop.xlane.xlu0 %283 }
  0x9b   : > { %v288_v3 = vmul.f32 0.0078125, %v284_v2  ;;  %v459_v2 = vld [vmem:[%s1000_s5 + $0x28] sm:$0xff] }
  0x9c   : > { %662 = vmatpush3.msra.mxu1 %v459_v2 }
  0x9d   : > { %v774_v4 = vsub.f32 %v767_v0, %v288_v3  ;;  %v474_v3 = vld [vmem:[%s1000_s5 + $0xa0] sm:$0xff] }
  0x9e   : > { %v286_v5 = vpop.xlane.xlu0 %285  ;;  %663 = vmatprep.subr.mxu1 %v474_v3 }
  0x9f   : > { %v289_v6 = vmul.f32 0.0078125, %v286_v5  ;;  %v292_v7 = vmul.f32 %v774_v4, %v774_v4  ;;  %v458_v5 = vld [vmem:[%s1000_s5 + $0x20] sm:$0xff]  ;;  %v303_v24 = vmul.f32 %v302_v23, %v774_v4  ;;  %v457_v4 = vld [vmem:[%s1000_s5 + $0x18] sm:$0xff] }
  0xa0   : > { %664 = vmatpush3.msra.mxu1 %v458_v5 }
  0xa1   : > { %v779_v8 = vsub.f32 %v770_v1, %v289_v6  ;;  %294 = vadd.xlane.f32.xlu1 %v292_v7  ;;  %665 = vmatprep.subr.mxu1 %v473_v34 }
  0xa2   : > { %666 = vmatpush3.msra.mxu1 %v457_v4 }
  0xa3   : > { %v293_v9 = vmul.f32 %v779_v8, %v779_v8  ;;  %v304_v28 = vmul.f32 %v302_v23, %v779_v8  ;;  %v472_v8 = vld [vmem:[%s1000_s5 + $0x90] sm:$0xff] }
  0xa4   : > { %667 = vmatprep.subr.mxu1 %v472_v8 }
  0xa5   : > { %296 = vadd.xlane.f32.xlu1 %v293_v9 }
 0x12a   : > { %v295_v6 = vpop.xlane.xlu1 %294 }
 0x12b   : > { %v299_v7 = vmul.f32 0.007874016, %v295_v6 }
 0x12d   : > { %688 = vrsqrt.f32 %v299_v7  ;;  %vm307_vm0 = vcmp.eq.f32.partialorder %v299_v7, inf  ;;  %v310_v13 = vand.u32 2147483648, %v299_v7  ;;  %vm309_vm1 = vcmp.eq.f32.partialorder %v299_v7, 0.0 }
 0x12e   : > { %v297_v9 = vpop.xlane.xlu1 %296 }
 0x12f   : > { %v300_v10 = vmul.f32 0.007874016, %v297_v9 }
 0x131   : > { %690 = vrsqrt.f32 %v300_v10  ;;  %vm314_vm2 = vcmp.eq.f32.partialorder %v300_v10, inf  ;;  %v317_v19 = vand.u32 2147483648, %v300_v10  ;;  %vm316_vm3 = vcmp.eq.f32.partialorder %v300_v10, 0.0 }
 0x13a   : > { %v689_v11 = vpop.eup %688 }
 0x13b   : > { %v306_v12 = vmul.f32 %v689_v11, %v299_v7 }
 0x13d   : > { %v308_v14 = vsel %vm307_vm0, %v299_v7, %v306_v12 }
 0x13e   : > { %v691_v15 = vpop.eup %690  ;;  %v311_v16 = vsel %vm309_vm1, %v310_v13, %v308_v14 }
 0x13f   : > { %v313_v17 = vmul.f32 %v691_v15, %v300_v10  ;;  %v319_v18 = vadd.f32 1e-06, %v311_v16 }
 0x141   : > { %v315_v20 = vsel %vm314_vm2, %v300_v10, %v313_v17  ;;  %692 = vrcp.f32 %v319_v18 }
 0x142   : > { %v318_v21 = vsel %vm316_vm3, %v317_v19, %v315_v20 }
 0x143   : > { %v320_v22 = vadd.f32 1e-06, %v318_v21 }
 0x145   : > { %694 = vrcp.f32 %v320_v22 }
 0x14e   : > { %v693_v25 = vpop.eup %692 }
 0x14f   : > { %v322_v27 = vmul.f32 %v693_v25, %v303_v24 }
 0x151   : > { %v327_v29 = vadd.f32 %v326_v26, %v322_v27 }
 0x152   : > { %v695_v30 = vpop.eup %694 }
 0x153   : > { %438 = vmatmul.mubr.f32.vlgmr.msra.gmra.mxu0 %v327_v29  ;;  %v324_v32 = vmul.f32 %v695_v30, %v304_v28 }
 0x154   : > { %443 = vmatprep.mubr.f32.mxu0 %v704_v31  ;;  %v456_v31 = vld [vmem:[%s1000_s5 + $0x10] sm:$0xff] }
 0x155   : > { %v328_v33 = vadd.f32 %v326_v26, %v324_v32  ;;  %668 = vmatpush3.msra.mxu1 %v456_v31 }
 0x156   : > { %669 = vmatprep.subr.mxu1 %v471_v35 }
 0x157   : > { %444 = vmatmul.mubr.f32.gmra.mxu0 %v328_v33  ;;  %670 = vmatpush3.msra.mxu1 %v455_v36 }
 0x158   : > { %671 = vmatprep.subr.mxu1 %v470_v37 }
 0x159   : > { %672 = vmatpush3.msra.mxu1 %v454_v38 }
 0x213   : > { %v439_v46 = vpop.f32.mrf.mxu0 }
 0x214   : > { %v440_v47 = vadd.f32 %v439_v46, %v366_v44 }
 0x215   : > { %v441_v48 = vpop.f32.mrf.mxu0 }
 0x216   : > { %v442_v49 = vadd.f32 %v441_v48, %v370_v45  ;;  %v450_v52 = vmax.f32 %v440_v47, 0.0 }
 0x217   : > { %v445_v50 = vpop.f32.mrf.mxu0 }
 0x218   : > { %v451_v51 = vmax.f32 %v442_v49, 0.0  ;;  %v446_v53 = vadd.f32 %v445_v50, %v366_v44 }
 0x219   : > { %v447_v54 = vpop.f32.mrf.mxu0 }
 0x21a   : > { %v448_v55 = vadd.f32 %v447_v54, %v370_v45  ;;  %557 = vmatprep.mubr.f32.mxu1 %v451_v51  ;;  %v452_v57 = vmax.f32 %v446_v53, 0.0 }
 0x21b   : > { %558 = vmatmul.mubr.f32.vlgmr.msra.gmra.mxu1 %v450_v52 }
 0x21c   : > { %v453_v56 = vmax.f32 %v448_v55, 0.0 }
 0x21e   : > { %562 = vmatprep.mubr.f32.mxu1 %v453_v56 }
 0x21f   : > { %563 = vmatmul.mubr.f32.gmra.mxu1 %v452_v57 }
 0x2db   : > { %v673_v58 = vpop.f32.mrf.mxu1 }
 0x2dd   : > { %v674_v60 = vpop.f32.mrf.mxu1 }
 0x2de   : > { %v675_v61 = vadd.f32 %v674_v60, %v673_v58 }
 0x2df   : > { %v676_v62 = vpop.f32.mrf.mxu1 }
 0x2e0   : > { %v560_v63 = vadd.f32 %v675_v61, %v636_v59 }
 0x2e1   : > { %v677_v2 = vpop.f32.mrf.mxu1 }
 0x2e2   : > { %v568_v3 = vadd.f32 %v560_v63, %v767_v0  ;;  %v678_v5 = vadd.f32 %v677_v2, %v676_v62 }
 0x2e4   : > { %570 = vst [vmem:[%s280_s13] sm:$0xff] %v568_v3  ;;  %v565_v6 = vadd.f32 %v678_v5, %v636_v59 }
 0x2e6   : > { %v569_v7 = vadd.f32 %v565_v6, %v770_v1 }
 0x2e8   : > { %571 = vst [vmem:[%s280_s13 + $0x8] sm:$0xff] %v569_v7 }
 0x2e9 PF: > { %s19_s28 = sadd.s32 1, %s702_s28  }
 0x2ea   : > { %p16_p4 = scmp.ge.s32.totalorder %s19_s28, 4  }
 0x2ec   :  { %18 = sbr.rel (!%p16_p4) target bundleno = 3 (0x3), region = 78 }

// kernel: decoder_forward.10
= control target key start
LH: loop header
LB: loop body
LE: loop exit
PB: predicated region body
PF: predicated region fallthrough
CT: control target
= control target key end

     0   :  { %s2584_s28 = smov 0   ;;  %s2977_s0 = inlined_call_operand.vmem [shape: f32[2,16,128], index: 0, kind: input, shape index: {}, may-alias: {0,1}]   ;;  %s2978_s1 = inlined_call_operand.vmem [shape: f32[2,16,128], index: 1, kind: input, shape index: {}, may-alias: {0,1}]   ;;  %s2979_s2 = inlined_call_operand.vmem [shape: f32[2,1,16,16], index: 2, kind: input, shape index: {}]   ;;  %s2980_s3 = inlined_call_operand.<no memory space> [shape: f32[1], index: 3, kind: input, shape index: {}]   ;;  %s2981_s4 = inlined_call_operand.<no memory space> [shape: f32[1], index: 4, kind: input, shape index: {}]   ;;  %s2982_s5 = inlined_call_operand.vmem [shape: f32[128,128], index: 5, kind: input, shape index: {}]   ;;  %s2983_s6 = inlined_call_operand.vmem [shape: f32[1,128], index: 6, kind: input, shape index: {}]   ;;  %s2984_s7 = inlined_call_operand.vmem [shape: f32[128,128], index: 7, kind: input, shape index: {}]   ;;  %s2985_s8 = inlined_call_operand.vmem [shape: f32[1,128], index: 8, kind: input, shape index: {}]   ;;  %s2986_s9 = inlined_call_operand.vmem [shape: f32[128,128], index: 9, kind: input, shape index: {}]   ;;  %s2987_s10 = inlined_call_operand.vmem [shape: f32[1,128], index: 10, kind: input, shape index: {}]   ;;  %s2988_s11 = inlined_call_operand.vmem [shape: f32[128,128], index: 11, kind: input, shape index: {}]   ;;  %s2989_s12 = inlined_call_operand.vmem [shape: f32[1,128], index: 12, kind: input, shape index: {}]   ;;  %s2990_s13 = inlined_call_operand.vmem [shape: f32[2,16,128], index: 13, kind: output, shape index: {}]  }
   0x1   :  { %18 = sst [smem:[#allocation2]] %s2980_s3 }
   0x2   :  { %19 = sst [smem:[#allocation3]] %s2981_s4 }
   0x3 LB: > { %s2077_s29 = sadd.s32 4294967295, %s2503_s28   ;;  %p2081_p0 = scmp.ge.s32.totalorder %s2503_s28, 1  ;;  %s2503_s28 = sphi %s2584_s28, %s25_s28  }
   0x4   : > { %p409_p1 = scmp.lt.s32.totalorder %s2503_s28, 3 }
   0x6   : > { %p410_p2 = pnand %p2081_p0, %p409_p1 }
   0x7   : > { %p463_p3 = scmp.lt.s32.totalorder (!%p410_p2), %s2077_s29, 1  ;;  %s503_s4 = sld [smem:[#allocation2]] (!%p410_p2) }
   0x8   : > { %413 = sbr.rel (%p410_p2) target bundleno = 2900 (0xb54), region = 72  ;;  %s527_s30 = sld [smem:[#allocation3]] (!%p410_p2) }
   0x9   : > { %s2505_s19 = smov (!%p410_p2), 96  }
   0xd   : > { %s2992_s29 = smov (!%p463_p3, %s2077_s29), 1  ;;  %v546_v10 = vld [vmem:[%s2982_s5 + $0x78] sm:$0xff]  ;;  %v545_v12 = vld [vmem:[%s2982_s5 + $0x70] sm:$0xff]  ;;  %v544_v14 = vld [vmem:[%s2982_s5 + $0x68] sm:$0xff]  ;;  %v504_v59 = vstv %s503_s4  ;;  %vm850_vm4 = vcmask 261120   ;;  %vm944_vm6 = vcmask 130048  }
   0xe   : > { %s2592_s3 = sshll.u32 %s2992_s29, 4  ;;  %2239 = vmatprep.subr.mxu0 %v546_v10  ;;  %v644_v11 = vld [vmem:[%s2984_s7 + $0x78] sm:$0xff]  ;;  %v643_v13 = vld [vmem:[%s2984_s7 + $0x70] sm:$0xff]  ;;  %v642_v15 = vld [vmem:[%s2984_s7 + $0x68] sm:$0xff]  ;;  %v528_v62 = vstv %s527_s30  ;;  %s2506_s29 = smov 64  }
   0xf   : > { %s2598_s1 = scalar_lea.vmem %s2977_s0, %s2592_s3  ;;  %2240 = vmatpush3.msra.mxu0 %v546_v10  ;;  %2274 = vmatprep.subr.mxu1 %v644_v11  ;;  %v543_v16 = vld [vmem:[%s2982_s5 + $0x60] sm:$0xff]  ;;  %v542_v18 = vld [vmem:[%s2982_s5 + $0x58] sm:$0xff]  ;;  %v541_v20 = vld [vmem:[%s2982_s5 + $0x50] sm:$0xff]  ;;  %s477_s18 = scalar_lea.vmem %s2979_s2, %s2592_s3 }
  0x10   : > { %v483_v0 = vld [vmem:[%s2598_s1] sm:$0xff]  ;;  %v484_v1 = vld [vmem:[%s2598_s1 + $0x8] sm:$0xff]  ;;  %2241 = vmatprep.subr.mxu0 %v545_v12  ;;  %2275 = vmatpush3.msra.mxu1 %v644_v11  ;;  %v640_v19 = vld [vmem:[%s2984_s7 + $0x58] sm:$0xff]  ;;  %s2507_s4 = smov 32   ;;  %s482_s24 = scalar_lea.vmem %s2990_s13, %s2592_s3 }
  0x11   : > { %485 = vadd.xlane.f32.xlu0 %v483_v0  ;;  %2242 = vmatpush3.msra.mxu0 %v545_v12  ;;  %v641_v17 = vld [vmem:[%s2984_s7 + $0x60] sm:$0xff]  ;;  %v639_v21 = vld [vmem:[%s2984_s7 + $0x50] sm:$0xff]  ;;  %v540_v22 = vld [vmem:[%s2982_s5 + $0x48] sm:$0xff] }
  0x12   : > { %2276 = vmatprep.subr.mxu1 %v643_v13  ;;  %2243 = vmatprep.subr.mxu0 %v544_v14  ;;  %v638_v23 = vld [vmem:[%s2984_s7 + $0x48] sm:$0xff]  ;;  %v539_v24 = vld [vmem:[%s2982_s5 + $0x40] sm:$0xff]  ;;  %v538_v26 = vld [vmem:[%s2982_s5 + $0x38] sm:$0xff] }
  0x13   : > { %2277 = vmatpush3.msra.mxu1 %v643_v13  ;;  %2244 = vmatpush3.msra.mxu0 %v544_v14  ;;  %v637_v25 = vld [vmem:[%s2984_s7 + $0x40] sm:$0xff]  ;;  %v636_v27 = vld [vmem:[%s2984_s7 + $0x38] sm:$0xff]  ;;  %v537_v28 = vld [vmem:[%s2982_s5 + $0x30] sm:$0xff] }
  0x14   : > { %2278 = vmatprep.subr.mxu1 %v642_v15  ;;  %2245 = vmatprep.subr.mxu0 %v543_v16  ;;  %v635_v29 = vld [vmem:[%s2984_s7 + $0x30] sm:$0xff]  ;;  %v536_v30 = vld [vmem:[%s2982_s5 + $0x28] sm:$0xff]  ;;  %v535_v32 = vld [vmem:[%s2982_s5 + $0x20] sm:$0xff] }
  0x15   : > { %487 = vadd.xlane.f32.xlu0 %v484_v1  ;;  %2279 = vmatpush3.msra.mxu1 %v642_v15  ;;  %v634_v31 = vld [vmem:[%s2984_s7 + $0x28] sm:$0xff]  ;;  %v633_v33 = vld [vmem:[%s2984_s7 + $0x20] sm:$0xff]  ;;  %v534_v34 = vld [vmem:[%s2982_s5 + $0x18] sm:$0xff] }
  0x16   : > { %2246 = vmatpush3.msra.mxu0 %v543_v16  ;;  %2280 = vmatprep.subr.mxu1 %v641_v17  ;;  %v632_v35 = vld [vmem:[%s2984_s7 + $0x18] sm:$0xff]  ;;  %v533_v36 = vld [vmem:[%s2982_s5 + $0x10] sm:$0xff]  ;;  %v532_v38 = vld [vmem:[%s2982_s5 + $0x8] sm:$0xff] }
  0x17   : > { %2247 = vmatprep.subr.mxu0 %v542_v18  ;;  %2281 = vmatpush3.msra.mxu1 %v641_v17  ;;  %v631_v37 = vld [vmem:[%s2984_s7 + $0x10] sm:$0xff]  ;;  %v630_v39 = vld [vmem:[%s2984_s7 + $0x8] sm:$0xff]  ;;  %v531_v40 = vld [vmem:[%s2982_s5] sm:$0xff] }
  0x18   : > { %2248 = vmatpush3.msra.mxu0 %v542_v18  ;;  %2282 = vmatprep.subr.mxu1 %v640_v19  ;;  %v629_v41 = vld [vmem:[%s2984_s7] sm:$0xff]  ;;  %v742_v42 = vld [vmem:[%s2986_s9 + $0x78] sm:$0xff]  ;;  %v736_v10 = vld [vmem:[%s2986_s9 + $0x48] sm:$0xff] }
  0x19   : > { %2249 = vmatprep.subr.mxu0 %v541_v20  ;;  %2283 = vmatpush3.msra.mxu1 %v640_v19  ;;  %v735_v11 = vld [vmem:[%s2986_s9 + $0x40] sm:$0xff]  ;;  %v734_v12 = vld [vmem:[%s2986_s9 + $0x38] sm:$0xff]  ;;  %v733_v13 = vld [vmem:[%s2986_s9 + $0x30] sm:$0xff] }
  0x1a   : > { %2250 = vmatpush3.msra.mxu0 %v541_v20  ;;  %2284 = vmatprep.subr.mxu1 %v639_v21  ;;  %v732_v14 = vld [vmem:[%s2986_s9 + $0x28] sm:$0xff]  ;;  %v731_v15 = vld [vmem:[%s2986_s9 + $0x20] sm:$0xff]  ;;  %v730_v16 = vld [vmem:[%s2986_s9 + $0x18] sm:$0xff] }
  0x1b   : > { %2251 = vmatprep.subr.mxu0 %v540_v22  ;;  %2285 = vmatpush3.msra.mxu1 %v639_v21  ;;  %v729_v17 = vld [vmem:[%s2986_s9 + $0x10] sm:$0xff]  ;;  %v728_v18 = vld [vmem:[%s2986_s9 + $0x8] sm:$0xff]  ;;  %v727_v19 = vld [vmem:[%s2986_s9] sm:$0xff] }
  0x1c   : > { %2252 = vmatpush3.msra.mxu0 %v540_v22  ;;  %2286 = vmatprep.subr.mxu1 %v638_v23  ;;  %v2089_v20 = vld [vmem:[%s2985_s8] ss:$0 sm:$0xff] }
  0x1d   : > { %2253 = vmatprep.subr.mxu0 %v539_v24  ;;  %2287 = vmatpush3.msra.mxu1 %v638_v23 }
  0x1e   : > { %2254 = vmatpush3.msra.mxu0 %v539_v24  ;;  %2288 = vmatprep.subr.mxu1 %v637_v25  ;;  %v2088_v24 = vld [vmem:[%s2983_s6] ss:$0 sm:$0xff] }
  0x1f   : > { %2255 = vmatprep.subr.mxu0 %v538_v26  ;;  %2289 = vmatpush3.msra.mxu1 %v637_v25 }
  0x20   : > { %2256 = vmatpush3.msra.mxu0 %v538_v26  ;;  %2290 = vmatprep.subr.mxu1 %v636_v27 }
  0x21   : > { %2257 = vmatprep.subr.mxu0 %v537_v28  ;;  %2291 = vmatpush3.msra.mxu1 %v636_v27 }
  0x22   : > { %2258 = vmatpush3.msra.mxu0 %v537_v28  ;;  %2292 = vmatprep.subr.mxu1 %v635_v29 }
  0x23   : > { %2259 = vmatprep.subr.mxu0 %v536_v30  ;;  %2293 = vmatpush3.msra.mxu1 %v635_v29 }
  0x24   : > { %2260 = vmatpush3.msra.mxu0 %v536_v30  ;;  %2294 = vmatprep.subr.mxu1 %v634_v31  ;;  %v2090_v30 = vld [vmem:[%s2987_s10] ss:$0 sm:$0xff] }
  0x25   : > { %2261 = vmatprep.subr.mxu0 %v535_v32  ;;  %2295 = vmatpush3.msra.mxu1 %v634_v31 }
  0x26   : > { %2262 = vmatpush3.msra.mxu0 %v535_v32  ;;  %2296 = vmatprep.subr.mxu1 %v633_v33 }
  0x27   : > { %2263 = vmatprep.subr.mxu0 %v534_v34  ;;  %2297 = vmatpush3.msra.mxu1 %v633_v33 }
  0x28   : > { %2264 = vmatpush3.msra.mxu0 %v534_v34  ;;  %2298 = vmatprep.subr.mxu1 %v632_v35 }
  0x29   : > { %2265 = vmatprep.subr.mxu0 %v533_v36  ;;  %2299 = vmatpush3.msra.mxu1 %v632_v35  ;;  %v2797_v35 = vld [vmem:[%s477_s18 + $0x8] sm:$0xff] }
  0x2a   : > { %2266 = vmatpush3.msra.mxu0 %v533_v36  ;;  %2300 = vmatprep.subr.mxu1 %v631_v37  ;;  %v2799_v36 = vld [vmem:[%s477_s18] sm:$0xff]  ;;  %vm941_vm5 = vcmp.eq.f32.partialorder %v2797_v35, 0.0 }
  0x2b   : > { %2267 = vmatprep.subr.mxu0 %v532_v38  ;;  %2301 = vmatpush3.msra.mxu1 %v631_v37  ;;  %vm940_vm7 = vcmp.eq.f32.partialorder %v2799_v36, 0.0  ;;  %v836_v36 = vld [vmem:[%s2988_s11 + $0x58] sm:$0xff] }
  0x2c   : > { %2268 = vmatpush3.msra.mxu0 %v532_v38  ;;  %2302 = vmatprep.subr.mxu1 %v630_v39 }
  0x2d   : > { %2269 = vmatprep.subr.mxu0 %v531_v40  ;;  %2303 = vmatpush3.msra.mxu1 %v630_v39 }
  0x2e   : > { %2270 = vmatpush3.msra.mxu0 %v531_v40  ;;  %2304 = vmatprep.subr.mxu1 %v629_v41 }
  0x2f   : > { %2305 = vmatpush3.msra.mxu1 %v629_v41  ;;  %2309 = vmatprep.subr.mxu0 %v742_v42 }
  0x9a   : > { %v486_v2 = vpop.xlane.xlu0 %485 }
  0x9b   : > { %v490_v3 = vmul.f32 0.0078125, %v486_v2 }
  0x9d   : > { %v2602_v4 = vsub.f32 %v483_v0, %v490_v3 }
  0x9e   : > { %v488_v5 = vpop.xlane.xlu0 %487 }
  0x9f   : > { %v491_v6 = vmul.f32 0.0078125, %v488_v5  ;;  %v494_v7 = vmul.f32 %v2602_v4, %v2602_v4  ;;  %v505_v60 = vmul.f32 %v504_v59, %v2602_v4  ;;  %v740_v4 = vld [vmem:[%s2986_s9 + $0x68] sm:$0xff] }
  0xa1   : > { %v2606_v8 = vsub.f32 %v484_v1, %v491_v6  ;;  %496 = vadd.xlane.f32.xlu1 %v494_v7  ;;  %v741_v6 = vld [vmem:[%s2986_s9 + $0x70] sm:$0xff]  ;;  %v739_v7 = vld [vmem:[%s2986_s9 + $0x60] sm:$0xff] }
  0xa3   : > { %v495_v9 = vmul.f32 %v2606_v8, %v2606_v8  ;;  %v506_v0 = vmul.f32 %v504_v59, %v2606_v8  ;;  %v738_v8 = vld [vmem:[%s2986_s9 + $0x58] sm:$0xff] }
  0xa5   : > { %498 = vadd.xlane.f32.xlu1 %v495_v9  ;;  %v737_v9 = vld [vmem:[%s2986_s9 + $0x50] sm:$0xff] }
 0x12a   : > { %v497_v43 = vpop.xlane.xlu1 %496 }
 0x12b   : > { %v501_v44 = vmul.f32 0.007874016, %v497_v43 }
 0x12d   : > { %2455 = vrsqrt.f32 %v501_v44  ;;  %vm509_vm0 = vcmp.eq.f32.partialorder %v501_v44, inf  ;;  %v512_v49 = vand.u32 2147483648, %v501_v44  ;;  %vm511_vm1 = vcmp.eq.f32.partialorder %v501_v44, 0.0 }
 0x12e   : > { %v499_v45 = vpop.xlane.xlu1 %498 }
 0x12f   : > { %v502_v46 = vmul.f32 0.007874016, %v499_v45 }
 0x131   : > { %2457 = vrsqrt.f32 %v502_v46  ;;  %vm516_vm2 = vcmp.eq.f32.partialorder %v502_v46, inf  ;;  %v519_v55 = vand.u32 2147483648, %v502_v46  ;;  %vm518_vm3 = vcmp.eq.f32.partialorder %v502_v46, 0.0 }
 0x13a   : > { %v2456_v47 = vpop.eup %2455 }
 0x13b   : > { %v508_v48 = vmul.f32 %v2456_v47, %v501_v44 }
 0x13d   : > { %v510_v50 = vsel %vm509_vm0, %v501_v44, %v508_v48 }
 0x13e   : > { %v2458_v51 = vpop.eup %2457  ;;  %v513_v52 = vsel %vm511_vm1, %v512_v49, %v510_v50 }
 0x13f   : > { %v515_v53 = vmul.f32 %v2458_v51, %v502_v46  ;;  %v521_v54 = vadd.f32 1e-06, %v513_v52 }
 0x141   : > { %v517_v56 = vsel %vm516_vm2, %v502_v46, %v515_v53  ;;  %2459 = vrcp.f32 %v521_v54 }
 0x142   : > { %v520_v57 = vsel %vm518_vm3, %v519_v55, %v517_v56  ;;  %v828_v55 = vld [vmem:[%s2988_s11 + $0x18] sm:$0xff] }
 0x143   : > { %v522_v58 = vadd.f32 1e-06, %v520_v57 }
 0x145   : > { %2461 = vrcp.f32 %v522_v58 }
 0x14e   : > { %v2460_v61 = vpop.eup %2459 }
 0x14f   : > { %v524_v63 = vmul.f32 %v2460_v61, %v505_v60 }
 0x151   : > { %v529_v1 = vadd.f32 %v528_v62, %v524_v63  ;;  %v826_v63 = vld [vmem:[%s2988_s11 + $0x8] sm:$0xff] }
 0x152   : > { %v2462_v2 = vpop.eup %2461 }
 0x153   : > { %2271 = vmatprep.mubr.f32.mxu0 %v529_v1  ;;  %2306 = vmatprep.mubr.f32.mxu1 %v529_v1  ;;  %v526_v3 = vmul.f32 %v2462_v2, %v506_v0  ;;  %v825_v0 = vld [vmem:[%s2988_s11] sm:$0xff] }
 0x155   : > { %v530_v5 = vadd.f32 %v528_v62, %v526_v3  ;;  %v827_v62 = vld [vmem:[%s2988_s11 + $0x10] sm:$0xff] }
 0x157   : > { %2272 = vmatmul.mubr.f32.vlgmr.msra.gmra.mxu0 %v530_v5  ;;  %2307 = vmatmul.mubr.f32.vlgmr.msra.gmra.mxu1 %v530_v5 }
 0x158   : > { %2310 = vmatpush3.msra.mxu0 %v742_v42  ;;  %2341 = vmatprep.mubr.f32.mxu0 %v529_v1 }
 0x159   : > { %2311 = vmatprep.subr.mxu0 %v741_v6 }
 0x15a   : > { %2312 = vmatpush3.msra.mxu0 %v741_v6 }
 0x15b   : > { %2313 = vmatprep.subr.mxu0 %v740_v4 }
 0x15c   : > { %2314 = vmatpush3.msra.mxu0 %v740_v4 }
 0x15d   : > { %2315 = vmatprep.subr.mxu0 %v739_v7 }
 0x15e   : > { %2316 = vmatpush3.msra.mxu0 %v739_v7 }
 0x15f   : > { %2317 = vmatprep.subr.mxu0 %v738_v8 }
 0x160   : > { %2318 = vmatpush3.msra.mxu0 %v738_v8 }
 0x161   : > { %2319 = vmatprep.subr.mxu0 %v737_v9 }
 0x162   : > { %2320 = vmatpush3.msra.mxu0 %v737_v9 }
 0x163   : > { %2321 = vmatprep.subr.mxu0 %v736_v10 }
 0x164   : > { %2322 = vmatpush3.msra.mxu0 %v736_v10 }
 0x165   : > { %2323 = vmatprep.subr.mxu0 %v735_v11 }
 0x166   : > { %2324 = vmatpush3.msra.mxu0 %v735_v11 }
 0x167   : > { %2325 = vmatprep.subr.mxu0 %v734_v12 }
 0x168   : > { %2326 = vmatpush3.msra.mxu0 %v734_v12 }
 0x169   : > { %2327 = vmatprep.subr.mxu0 %v733_v13 }
 0x16a   : > { %2328 = vmatpush3.msra.mxu0 %v733_v13 }
 0x16b   : > { %2329 = vmatprep.subr.mxu0 %v732_v14 }
 0x16c   : > { %2330 = vmatpush3.msra.mxu0 %v732_v14 }
 0x16d   : > { %2331 = vmatprep.subr.mxu0 %v731_v15 }
 0x16e   : > { %2332 = vmatpush3.msra.mxu0 %v731_v15 }
 0x16f   : > { %2333 = vmatprep.subr.mxu0 %v730_v16 }
 0x170   : > { %2334 = vmatpush3.msra.mxu0 %v730_v16 }
 0x171   : > { %2335 = vmatprep.subr.mxu0 %v729_v17 }
 0x172   : > { %2336 = vmatpush3.msra.mxu0 %v729_v17 }
 0x173   : > { %2337 = vmatprep.subr.mxu0 %v728_v18 }
 0x174   : > { %2338 = vmatpush3.msra.mxu0 %v728_v18 }
 0x175   : > { %2339 = vmatprep.subr.mxu0 %v727_v19 }
 0x176   : > { %2340 = vmatpush3.msra.mxu0 %v727_v19 }
 0x177   : > { %2342 = vmatmul.mubr.f32.vlgmr.msra.gmra.mxu0 %v530_v5 }
 0x217   : > { %v2273_v21 = vpop.f32.mrf.mxu0  ;;  %v2308_v22 = vpop.f32.mrf.mxu1 }
 0x218   : > { %v2759_v23 = vadd.f32 %v2308_v22, %v2089_v20  ;;  %v2778_v29 = vadd.f32 %v2273_v21, %v2088_v24 }
 0x219   : > { %v620_v25 = vpop.f32.mrf.mxu0  ;;  %v718_v26 = vpop.f32.mrf.mxu1 }
 0x21a   : > { %v2764_v27 = vadd.f32 %v2088_v24, %v620_v25  ;;  %v2766_v28 = vadd.f32 %v2089_v20, %v718_v26  ;;  %2344 = vmatprep.subr.msk.mxu1 %vm850_vm4, %v2759_v23 }
 0x21b   : > { %2345 = vmatpush3.xpose.msk.msra.mxu1 %vm850_vm4, %v2759_v23 }
 0x21c   : > { %2346 = vmatprep.subr.msk.mxu1 %vm850_vm4, %v2766_v28  ;;  %2348 = vmatprep.mubr.msk.f32.mxu1 %vm850_vm4, %v2764_v27 }
 0x21f   : > { %2347 = vmatpush3.xpose.msk.msra.mxu1 %vm850_vm4, %v2766_v28 }
 0x222   : > { %2349 = vmatmul.mubr.msk.f32.vlgmr.msra.gmra.mxu1 %vm850_vm4, %v2778_v29 }
 0x237   : > { %v2343_v31 = vpop.f32.mrf.mxu0 }
 0x238   : > { %v2785_v32 = vadd.f32 %v2343_v31, %v2090_v30  ;;  %v830_v31 = vld [vmem:[%s2988_s11 + $0x28] sm:$0xff] }
 0x239   : > { %v816_v33 = vpop.f32.mrf.mxu0 }
 0x23a   : > { %v2787_v34 = vadd.f32 %v2090_v30, %v816_v33  ;;  %2351 = vmatprep.subr.mxu1 %v2785_v32  ;;  %v829_v33 = vld [vmem:[%s2988_s11 + $0x20] sm:$0xff] }
 0x23b   : > { %2352 = vmatpush3.msra.mxu1 %v2785_v32 }
 0x23c   : > { %2353 = vmatprep.subr.mxu1 %v2787_v34 }
 0x23d   : > { %2354 = vmatpush3.msra.mxu1 %v2787_v34 }
 0x23e   : > { %2358 = vmatprep.subr.mxu1 %v828_v55 }
 0x2e2   : > { %v2350_v37 = vpop.f32.mrf.mxu1 }
 0x2e3   : > { %v939_v38 = vmul.f32 0.17677669, %v2350_v37 }
 0x2e4   : > { %v929_v39 = vpop.f32.mrf.mxu1 }
 0x2e5   : > { %v938_v40 = vmul.f32 0.17677669, %v929_v39  ;;  %v943_v41 = vsel %vm941_vm5, -1e+09, %v939_v38 }
 0x2e6   : > { %v948_v42 = vsel %vm944_vm6, %v943_v41, -inf }
 0x2e7   : > { %949 = vmax.xlane.f32.xlu1 %v948_v42  ;;  %v942_v43 = vsel %vm940_vm7, -1e+09, %v938_v40 }
 0x2e8   : > { %v945_v44 = vsel %vm944_vm6, %v942_v43, -inf }
 0x2e9   : > { %946 = vmax.xlane.f32.xlu0 %v945_v44 }
 0x370   : > { %v950_v45 = vpop.xlane.xlu1 %949 }
 0x371   : > { %v952_v46 = vsub.f32 %v943_v41, %v950_v45 }
 0x372   : > { %v947_v47 = vpop.xlane.xlu0 %946 }
 0x373   : > { %v955_v48 = vmul.f32 1.442695, %v952_v46  ;;  %v951_v49 = vsub.f32 %v942_v43, %v947_v47 }
 0x375   : > { %2463 = vpow2.f32 %v955_v48  ;;  %v953_v50 = vmul.f32 1.442695, %v951_v49 }
 0x377   : > { %2465 = vpow2.f32 %v953_v50 }
 0x382   : > { %v2464_v51 = vpop.eup %2463 }
 0x383   : > { %v960_v52 = vsel %vm944_vm6, %v2464_v51, 0.0 }
 0x384   : > { %v2466_v53 = vpop.eup %2465  ;;  %961 = vadd.xlane.f32.xlu1 %v960_v52 }
 0x385   : > { %v957_v54 = vsel %vm944_vm6, %v2466_v53, 0.0 }
 0x386   : > { %958 = vadd.xlane.f32.xlu0 %v957_v54 }
 0x395   : > { %1135 = vrot.lane.b32.xlu1 %v2766_v28, %s2505_s19 }
 0x399   : > { %1131 = vrot.lane.b32.xlu1 %v2764_v27, %s2505_s19 }
 0x39c   : > { %1137 = vrot.lane.b32.xlu0 %v2759_v23, %s2505_s19 }
 0x39d   : > { %1133 = vrot.lane.b32.xlu1 %v2778_v29, %s2505_s19 }
 0x40d   : > { %v962_v56 = vpop.xlane.xlu1 %961 }
 0x40e   : > { %2467 = vrcp.f32 %v962_v56 }
 0x40f   : > { %v959_v57 = vpop.xlane.xlu0 %958 }
 0x410   : > { %2469 = vrcp.f32 %v959_v57 }
 0x411   : > { %v1136_v2 = vpop.permute.xlu1 %1135 }
 0x413   : > { %v1138_v1 = vpop.permute.xlu0 %1137 }
 0x415   : > { %v1132_v6 = vpop.permute.xlu1 %1131 }
 0x419   : > { %v1134_v4 = vpop.permute.xlu1 %1133 }
 0x41b   : > { %v2468_v58 = vpop.eup %2467 }
 0x41c   : > { %v966_v61 = vmul.f32 %v2468_v58, %v2464_v51 }
 0x41d   : > { %v2470_v59 = vpop.eup %2469 }
 0x41e   : > { %v965_v60 = vmul.f32 %v2470_v59, %v2466_v53 }
 0x420   : > { %2355 = vmatprep.mubr.msk.f32.mxu1 %vm944_vm6, %v965_v60 }
 0x421   : > { %2356 = vmatmul.mubr.msk.f32.vlgmr.msra.gmra.mxu1 %vm944_vm6, %v966_v61 }
 0x422   : > { %2359 = vmatpush3.msra.mxu1 %v828_v55 }
 0x423   : > { %2360 = vmatprep.subr.mxu1 %v827_v62 }
 0x424   : > { %2361 = vmatpush3.msra.mxu1 %v827_v62 }
 0x425   : > { %2362 = vmatprep.subr.mxu1 %v826_v63 }
 0x426   : > { %2363 = vmatpush3.msra.mxu1 %v826_v63 }
 0x427   : > { %2364 = vmatprep.subr.mxu1 %v825_v0 }
 0x428   : > { %2365 = vmatpush3.msra.mxu1 %v825_v0 }
 0x429   : > { %2369 = vmatprep.subr.msk.mxu1 %vm850_vm4, %v1138_v1 }
 0x4e1   : > { %v2357_v3 = vpop.f32.mrf.mxu1 }
 0x4e3   : > { %v1039_v5 = vpop.f32.mrf.mxu1 }
 0x4e4   : > { %2366 = vmatprep.mubr.msk.f32.mxu1 %vm850_vm4, %v1039_v5 }
 0x4e5   : > { %2367 = vmatmul.mubr.msk.f32.vlgmr.msra.gmra.mxu1 %vm850_vm4, %v2357_v3 }
 0x4e6   : > { %2370 = vmatpush3.xpose.msk.msra.mxu1 %vm850_vm4, %v1138_v1  ;;  %2373 = vmatprep.mubr.msk.f32.mxu1 %vm850_vm4, %v1132_v6 }
 0x4e7   : > { %2371 = vmatprep.subr.msk.mxu1 %vm850_vm4, %v1136_v2 }
 0x4ea   : > { %2372 = vmatpush3.xpose.msk.msra.mxu1 %vm850_vm4, %v1136_v2 }
 0x4ed   : > { %2374 = vmatmul.mubr.msk.f32.vlgmr.msra.gmra.mxu1 %vm850_vm4, %v1134_v4 }
 0x5a5   : > { %v2841_v7 = vpop.f32.mrf.mxu1 }
 0x5a7   : > { %v2843_v8 = vpop.f32.mrf.mxu1 }
 0x5ad   : > { %v2375_v9 = vpop.f32.mrf.mxu1 }
 0x5ae   : > { %v1223_v10 = vmul.f32 0.17677669, %v2375_v9  ;;  %v2091_v9 = vld [vmem:[%s2989_s12] ss:$0 sm:$0xff] }
 0x5af   : > { %v1213_v11 = vpop.f32.mrf.mxu1 }
 0x5b0   : > { %v1222_v12 = vmul.f32 0.17677669, %v1213_v11  ;;  %v1225_v13 = vsel %vm941_vm5, -1e+09, %v1223_v10  ;;  %v1130_v10 = vadd.f32 %v2841_v7, %v2091_v9 }
 0x5b1   : > { %v1229_v14 = vsel %vm944_vm6, %v1225_v13, -inf }
 0x5b2   : > { %1230 = vmax.xlane.f32.xlu1 %v1229_v14  ;;  %v1224_v15 = vsel %vm940_vm7, -1e+09, %v1222_v12  ;;  %v1129_v12 = vadd.f32 %v2091_v9, %v2843_v8 }
 0x5b3   : > { %v1226_v16 = vsel %vm944_vm6, %v1224_v15, -inf }
 0x5b4   : > { %1227 = vmax.xlane.f32.xlu0 %v1226_v16 }
 0x5c3   : > { %1250 = vrot.lane.b32.xlu1 %v2787_v34, %s2505_s19 }
 0x5c7   : > { %1426 = vrot.lane.b32.xlu1 %v2759_v23, %s2506_s29 }
 0x5cb   : > { %1424 = vrot.lane.b32.xlu1 %v2766_v28, %s2506_s29 }
 0x5cf   : > { %1422 = vrot.lane.b32.xlu1 %v2778_v29, %s2506_s29 }
 0x5d3   : > { %1711 = vrot.lane.b32.xlu1 %v2766_v28, %s2507_s4  ;;  %v832_v28 = vld [vmem:[%s2988_s11 + $0x38] sm:$0xff] }
 0x5d4   : > { %2383 = vmatprep.subr.mxu0 %v832_v28 }
 0x5d5   : > { %2384 = vmatpush3.msra.mxu0 %v832_v28 }
 0x5d7   : > { %1709 = vrot.lane.b32.xlu1 %v2778_v29, %s2507_s4  ;;  %v831_v29 = vld [vmem:[%s2988_s11 + $0x30] sm:$0xff] }
 0x5d8   : > { %2385 = vmatprep.subr.mxu0 %v831_v29 }
 0x5d9   : > { %2386 = vmatpush3.msra.mxu0 %v831_v29 }
 0x5da   : > { %2387 = vmatprep.subr.mxu0 %v830_v31 }
 0x5db   : > { %2388 = vmatpush3.msra.mxu0 %v830_v31  ;;  %v835_v31 = vld [vmem:[%s2988_s11 + $0x50] sm:$0xff] }
 0x5dc   : > { %2389 = vmatprep.subr.mxu0 %v829_v33 }
 0x5dd   : > { %2390 = vmatpush3.msra.mxu0 %v829_v33 }
 0x63b   : > { %v1231_v17 = vpop.xlane.xlu1 %1230 }
 0x63c   : > { %v1233_v18 = vsub.f32 %v1225_v13, %v1231_v17 }
 0x63d   : > { %v1228_v19 = vpop.xlane.xlu0 %1227 }
 0x63e   : > { %v1236_v20 = vmul.f32 1.442695, %v1233_v18  ;;  %v1232_v21 = vsub.f32 %v1224_v15, %v1228_v19 }
 0x63f   : > { %v1251_v39 = vpop.permute.xlu1 %1250 }
 0x640   : > { %2471 = vpow2.f32 %v1236_v20  ;;  %v1234_v22 = vmul.f32 1.442695, %v1232_v21 }
 0x642   : > { %2473 = vpow2.f32 %v1234_v22 }
 0x643   : > { %v1427_v41 = vpop.permute.xlu1 %1426 }
 0x647   : > { %v1425_v46 = vpop.permute.xlu1 %1424 }
 0x64b   : > { %v1423_v47 = vpop.permute.xlu1 %1422 }
 0x64d   : > { %v2472_v24 = vpop.eup %2471 }
 0x64e   : > { %v1241_v25 = vsel %vm944_vm6, %v2472_v24, 0.0 }
 0x64f   : > { %v2474_v26 = vpop.eup %2473  ;;  %1242 = vadd.xlane.f32.xlu0 %v1241_v25  ;;  %v1712_v51 = vpop.permute.xlu1 %1711 }
 0x650   : > { %v1238_v30 = vsel %vm944_vm6, %v2474_v26, 0.0 }
 0x653   : > { %1239 = vadd.xlane.f32.xlu0 %v1238_v30  ;;  %v1710_v55 = vpop.permute.xlu1 %1709 }
 0x669   : > { %1252 = vrot.lane.b32.xlu0 %v2785_v32, %s2505_s19 }
 0x66d   : > { %1420 = vrot.lane.b32.xlu0 %v2764_v27, %s2506_s29 }
 0x671   : > { %1713 = vrot.lane.b32.xlu0 %v2759_v23, %s2507_s4 }
 0x675   : > { %1707 = vrot.lane.b32.xlu0 %v2764_v27, %s2507_s4 }
 0x6d8   : > { %v1243_v37 = vpop.xlane.xlu0 %1242 }
 0x6d9   : > { %2475 = vrcp.f32 %v1243_v37 }
 0x6dc   : > { %v1240_v38 = vpop.xlane.xlu0 %1239 }
 0x6dd   : > { %2477 = vrcp.f32 %v1240_v38 }
 0x6e0   : > { %v1253_v40 = vpop.permute.xlu0 %1252 }
 0x6e1   : > { %2376 = vmatprep.subr.mxu1 %v1253_v40 }
 0x6e2   : > { %2377 = vmatpush3.msra.mxu1 %v1253_v40 }
 0x6e3   : > { %2378 = vmatprep.subr.mxu1 %v1251_v39 }
 0x6e4   : > { %2379 = vmatpush3.msra.mxu1 %v1251_v39  ;;  %v1421_v42 = vpop.permute.xlu0 %1420 }
 0x6e5   : > { %2394 = vmatprep.subr.msk.mxu1 %vm850_vm4, %v1427_v41 }
 0x6e6   : > { %v2476_v44 = vpop.eup %2475 }
 0x6e7   : > { %v1247_v45 = vmul.f32 %v2476_v44, %v2472_v24  ;;  %v834_v44 = vld [vmem:[%s2988_s11 + $0x48] sm:$0xff] }
 0x6e8   : > { %v1714_v43 = vpop.permute.xlu0 %1713 }
 0x6e9   : > { %2419 = vmatprep.subr.msk.mxu0 %vm850_vm4, %v1714_v43 }
 0x6ea   : > { %v2478_v23 = vpop.eup %2477 }
 0x6eb   : > { %v1246_v27 = vmul.f32 %v2478_v23, %v2474_v26  ;;  %v833_v23 = vld [vmem:[%s2988_s11 + $0x40] sm:$0xff] }
 0x6ec   : > { %v1708_v50 = vpop.permute.xlu0 %1707 }
 0x6ed   : > { %2380 = vmatprep.mubr.msk.f32.mxu1 %vm944_vm6, %v1246_v27 }
 0x6ee   : > { %2381 = vmatmul.mubr.msk.f32.vlgmr.msra.gmra.mxu1 %vm944_vm6, %v1247_v45 }
 0x6ef   : > { %2395 = vmatpush3.xpose.msk.msra.mxu1 %vm850_vm4, %v1427_v41  ;;  %2398 = vmatprep.mubr.msk.f32.mxu1 %vm850_vm4, %v1421_v42 }
 0x6f0   : > { %2396 = vmatprep.subr.msk.mxu1 %vm850_vm4, %v1425_v46 }
 0x6f3   : > { %2397 = vmatpush3.xpose.msk.msra.mxu1 %vm850_vm4, %v1425_v46 }
 0x6f6   : > { %2399 = vmatmul.mubr.msk.f32.vlgmr.msra.gmra.mxu1 %vm850_vm4, %v1423_v47 }
 0x7ae   : > { %v2382_v48 = vpop.f32.mrf.mxu1 }
 0x7b0   : > { %v1328_v49 = vpop.f32.mrf.mxu1 }
 0x7b1   : > { %2391 = vmatprep.mubr.msk.f32.mxu0 %vm850_vm4, %v1328_v49 }
 0x7b2   : > { %2392 = vmatmul.mubr.msk.f32.vlgmr.msra.gmra.mxu0 %vm850_vm4, %v2382_v48 }
 0x7b3   : > { %2420 = vmatpush3.xpose.msk.msra.mxu0 %vm850_vm4, %v1714_v43  ;;  %2423 = vmatprep.mubr.msk.f32.mxu0 %vm850_vm4, %v1708_v50 }
 0x7b4   : > { %2421 = vmatprep.subr.msk.mxu0 %vm850_vm4, %v1712_v51 }
 0x7b6   : > { %v2400_v52 = vpop.f32.mrf.mxu1 }
 0x7b7   : > { %v1512_v53 = vmul.f32 0.17677669, %v2400_v52  ;;  %2422 = vmatpush3.xpose.msk.msra.mxu0 %vm850_vm4, %v1712_v51 }
 0x7b8   : > { %v1502_v54 = vpop.f32.mrf.mxu1 }
 0x7b9   : > { %v1511_v56 = vmul.f32 0.17677669, %v1502_v54  ;;  %v1514_v57 = vsel %vm941_vm5, -1e+09, %v1512_v53  ;;  %v840_v54 = vld [vmem:[%s2988_s11 + $0x78] sm:$0xff] }
 0x7ba   : > { %2424 = vmatmul.mubr.msk.f32.vlgmr.msra.gmra.mxu0 %vm850_vm4, %v1710_v55  ;;  %v1518_v58 = vsel %vm944_vm6, %v1514_v57, -inf  ;;  %v839_v55 = vld [vmem:[%s2988_s11 + $0x70] sm:$0xff]  ;;  %2433 = vmatprep.subr.mxu0 %v840_v54 }
 0x7bb   : > { %1519 = vmax.xlane.f32.xlu1 %v1518_v58  ;;  %v1513_v59 = vsel %vm940_vm7, -1e+09, %v1511_v56  ;;  %2434 = vmatpush3.msra.mxu0 %v840_v54  ;;  %v838_v56 = vld [vmem:[%s2988_s11 + $0x68] sm:$0xff] }
 0x7bc   : > { %v1515_v60 = vsel %vm944_vm6, %v1513_v59, -inf  ;;  %2435 = vmatprep.subr.mxu0 %v839_v55 }
 0x7bd   : > { %1516 = vmax.xlane.f32.xlu0 %v1515_v60  ;;  %2436 = vmatpush3.msra.mxu0 %v839_v55 }
 0x7be   : > { %2437 = vmatprep.subr.mxu0 %v838_v56 }
 0x7bf   : > { %2438 = vmatpush3.msra.mxu0 %v838_v56 }
 0x7cc   : > { %1537 = vrot.lane.b32.xlu1 %v2787_v34, %s2506_s29 }
 0x844   : > { %v1520_v61 = vpop.xlane.xlu1 %1519 }
 0x845   : > { %v1522_v62 = vsub.f32 %v1514_v57, %v1520_v61  ;;  %v837_v57 = vld [vmem:[%s2988_s11 + $0x60] sm:$0xff] }
 0x846   : > { %v1517_v63 = vpop.xlane.xlu0 %1516  ;;  %2439 = vmatprep.subr.mxu0 %v837_v57 }
 0x847   : > { %v1525_v0 = vmul.f32 1.442695, %v1522_v62  ;;  %v1521_v1 = vsub.f32 %v1513_v59, %v1517_v63  ;;  %2440 = vmatpush3.msra.mxu0 %v837_v57 }
 0x848   : > { %v1538_v26 = vpop.permute.xlu1 %1537 }
 0x849   : > { %2479 = vpow2.f32 %v1525_v0  ;;  %v1523_v2 = vmul.f32 1.442695, %v1521_v1 }
 0x84b   : > { %2481 = vpow2.f32 %v1523_v2 }
 0x856   : > { %v2480_v3 = vpop.eup %2479 }
 0x857   : > { %v1530_v5 = vsel %vm944_vm6, %v2480_v3, 0.0 }
 0x858   : > { %v2482_v6 = vpop.eup %2481  ;;  %1531 = vadd.xlane.f32.xlu0 %v1530_v5 }
 0x859   : > { %v1527_v4 = vsel %vm944_vm6, %v2482_v6, 0.0 }
 0x85c   : > { %1528 = vadd.xlane.f32.xlu0 %v1527_v4  ;;  %v2496_v4 = vld [vmem:[%s2598_s1] sm:$0xff] }
 0x872   : > { %1539 = vrot.lane.b32.xlu0 %v2785_v32, %s2506_s29  ;;  %v2393_v11 = vpop.f32.mrf.mxu0 }
 0x873   : > { %v2918_v13 = vadd.f32 %v2393_v11, %v1130_v10 }
 0x874   : > { %v1409_v14 = vpop.f32.mrf.mxu0 }
 0x875   : > { %v2920_v15 = vadd.f32 %v1409_v14, %v1129_v12 }
 0x87a   : > { %v2425_v16 = vpop.f32.mrf.mxu0 }
 0x87b   : > { %v1799_v7 = vmul.f32 0.17677669, %v2425_v16 }
 0x87c   : > { %v1789_v17 = vpop.f32.mrf.mxu0 }
 0x87d   : > { %v1798_v18 = vmul.f32 0.17677669, %v1789_v17  ;;  %v1801_v21 = vsel %vm941_vm5, -1e+09, %v1799_v7 }
 0x87e   : > { %v1805_v8 = vsel %vm944_vm6, %v1801_v21, -inf }
 0x87f   : > { %v1800_v19 = vsel %vm940_vm7, -1e+09, %v1798_v18 }
 0x880   : > { %v1802_v20 = vsel %vm944_vm6, %v1800_v19, -inf }
 0x881   : > { %1803 = vmax.xlane.f32.xlu1 %v1802_v20 }
 0x891   : > { %1806 = vmax.xlane.f32.xlu0 %v1805_v8 }
 0x8e1   : > { %v1532_v22 = vpop.xlane.xlu0 %1531 }
 0x8e2   : > { %2483 = vrcp.f32 %v1532_v22 }
 0x8e5   : > { %v1529_v24 = vpop.xlane.xlu0 %1528 }
 0x8e6   : > { %2485 = vrcp.f32 %v1529_v24 }
 0x8e9   : > { %v1540_v25 = vpop.permute.xlu0 %1539 }
 0x8ea   : > { %2401 = vmatprep.subr.mxu1 %v1540_v25 }
 0x8eb   : > { %2402 = vmatpush3.msra.mxu1 %v1540_v25 }
 0x8ec   : > { %2403 = vmatprep.subr.mxu1 %v1538_v26 }
 0x8ed   : > { %2404 = vmatpush3.msra.mxu1 %v1538_v26 }
 0x8ee   : > { %2408 = vmatprep.subr.mxu1 %v836_v36 }
 0x8ef   : > { %v2484_v35 = vpop.eup %2483 }
 0x8f0   : > { %v1536_v29 = vmul.f32 %v2484_v35, %v2480_v3  ;;  %v2495_v3 = vld [vmem:[%s2598_s1 + $0x8] sm:$0xff] }
 0x8f3   : > { %v2486_v30 = vpop.eup %2485 }
 0x8f4   : > { %v1535_v28 = vmul.f32 %v2486_v30, %v2482_v6 }
 0x8f6   : > { %2405 = vmatprep.mubr.msk.f32.mxu1 %vm944_vm6, %v1535_v28 }
 0x8f7   : > { %2406 = vmatmul.mubr.msk.f32.vlgmr.msra.gmra.mxu1 %vm944_vm6, %v1536_v29 }
 0x8f8   : > { %2409 = vmatpush3.msra.mxu1 %v836_v36 }
 0x8f9   : > { %2410 = vmatprep.subr.mxu1 %v835_v31 }
 0x8fa   : > { %2411 = vmatpush3.msra.mxu1 %v835_v31 }
 0x8fb   : > { %2412 = vmatprep.subr.mxu1 %v834_v44 }
 0x8fc   : > { %2413 = vmatpush3.msra.mxu1 %v834_v44 }
 0x8fd   : > { %2414 = vmatprep.subr.mxu1 %v833_v23 }
 0x8fe   : > { %2415 = vmatpush3.msra.mxu1 %v833_v23 }
 0x90a   : > { %v1804_v33 = vpop.xlane.xlu1 %1803 }
 0x90b   : > { %v1808_v37 = vsub.f32 %v1800_v19, %v1804_v33 }
 0x90d   : > { %v1810_v38 = vmul.f32 1.442695, %v1808_v37 }
 0x90f   : > { %2487 = vpow2.f32 %v1810_v38 }
 0x91a   : > { %v1807_v39 = vpop.xlane.xlu0 %1806 }
 0x91b   : > { %v1809_v40 = vsub.f32 %v1801_v21, %v1807_v39 }
 0x91c   : > { %v2488_v41 = vpop.eup %2487 }
 0x91d   : > { %v1812_v42 = vmul.f32 1.442695, %v1809_v40  ;;  %v1814_v43 = vsel %vm944_vm6, %v2488_v41, 0.0 }
 0x91e   : > { %1815 = vadd.xlane.f32.xlu0 %v1814_v43 }
 0x91f   : > { %2489 = vpow2.f32 %v1812_v42 }
 0x92c   : > { %v2490_v27 = vpop.eup %2489 }
 0x92d   : > { %v1817_v45 = vsel %vm944_vm6, %v2490_v27, 0.0 }
 0x92e   : > { %1818 = vadd.xlane.f32.xlu1 %v1817_v45 }
 0x934   : > { %1826 = vrot.lane.b32.xlu0 %v2785_v32, %s2507_s4 }
 0x93f   : > { %1824 = vrot.lane.b32.xlu1 %v2787_v34, %s2507_s4 }
 0x9a7   : > { %v1816_v46 = vpop.xlane.xlu0 %1815 }
 0x9a8   : > { %2491 = vrcp.f32 %v1816_v46 }
 0x9ab   : > { %v1827_v47 = vpop.permute.xlu0 %1826 }
 0x9ac   : > { %2426 = vmatprep.subr.mxu1 %v1827_v47 }
 0x9b5   : > { %v2492_v48 = vpop.eup %2491 }
 0x9b6   : > { %v1822_v52 = vmul.f32 %v2492_v48, %v2488_v41 }
 0x9b7   : > { %v2407_v49 = vpop.f32.mrf.mxu1  ;;  %v1819_v50 = vpop.xlane.xlu1 %1818 }
 0x9b8   : > { %2493 = vrcp.f32 %v1819_v50 }
 0x9b9   : > { %v1615_v51 = vpop.f32.mrf.mxu1 }
 0x9ba   : > { %2416 = vmatprep.mubr.msk.f32.mxu1 %vm850_vm4, %v1615_v51 }
 0x9bb   : > { %2417 = vmatmul.mubr.msk.f32.vlgmr.msra.gmra.mxu1 %vm850_vm4, %v2407_v49  ;;  %v1825_v53 = vpop.permute.xlu1 %1824 }
 0x9bc   : > { %2427 = vmatpush3.msra.mxu1 %v1827_v47  ;;  %2430 = vmatprep.mubr.msk.f32.mxu1 %vm944_vm6, %v1822_v52 }
 0x9bd   : > { %2428 = vmatprep.subr.mxu1 %v1825_v53 }
 0x9be   : > { %2429 = vmatpush3.msra.mxu1 %v1825_v53 }
 0x9c5   : > { %v2494_v32 = vpop.eup %2493 }
 0x9c6   : > { %v1823_v34 = vmul.f32 %v2494_v32, %v2490_v27 }
 0x9c8   : > { %2431 = vmatmul.mubr.msk.f32.vlgmr.msra.gmra.mxu1 %vm944_vm6, %v1823_v34 }
 0xa7b   : > { %v2418_v58 = vpop.f32.mrf.mxu1 }
 0xa7c   : > { %v1706_v59 = vadd.f32 %v2418_v58, %v2918_v13 }
 0xa7d   : > { %v1696_v60 = vpop.f32.mrf.mxu1 }
 0xa7e   : > { %v1705_v61 = vadd.f32 %v1696_v60, %v2920_v15 }
 0xa88   : > { %v2432_v62 = vpop.f32.mrf.mxu1 }
 0xa8a   : > { %v1902_v63 = vpop.f32.mrf.mxu1 }
 0xa8b   : > { %2441 = vmatprep.mubr.msk.f32.mxu0 %vm850_vm4, %v1902_v63 }
 0xa8c   : > { %2442 = vmatmul.mubr.msk.f32.vlgmr.msra.gmra.mxu0 %vm850_vm4, %v2432_v62 }
 0xb4c   : > { %v2443_v0 = vpop.f32.mrf.mxu0 }
 0xb4d   : > { %v1993_v1 = vadd.f32 %v2443_v0, %v1706_v59 }
 0xb4e   : > { %v1983_v2 = vpop.f32.mrf.mxu0 }
 0xb4f   : > { %v1995_v5 = vadd.f32 %v2495_v3, %v1993_v1  ;;  %v1992_v6 = vadd.f32 %v1983_v2, %v1705_v61 }
 0xb51   : > { %1997 = vst [vmem:[%s482_s24 + $0x8] sm:$0xff] %v1995_v5  ;;  %v1994_v9 = vadd.f32 %v2496_v4, %v1992_v6 }
 0xb53   : > { %1996 = vst [vmem:[%s482_s24] sm:$0xff] %v1994_v9 }
 0xb54 PF: > { %s25_s28 = sadd.s32 1, %s2503_s28  }
 0xb55   : > { %p22_p4 = scmp.ge.s32.totalorder %s25_s28, 4  }
 0xb57   :  { %24 = sbr.rel (!%p22_p4) target bundleno = 3 (0x3), region = 108 }

// kernel: decoder_forward.8
= control target key start
LH: loop header
LB: loop body
LE: loop exit
PB: predicated region body
PF: predicated region fallthrough
CT: control target
= control target key end

     0   :  { %s2589_s29 = smov 0   ;;  %s2990_s0 = inlined_call_operand.vmem [shape: f32[2,16,128], index: 0, kind: input, shape index: {}]   ;;  %s2991_s1 = inlined_call_operand.vmem [shape: f32[2,16,128], index: 1, kind: input, shape index: {}]   ;;  %s2992_s2 = inlined_call_operand.vmem [shape: f32[2,1,16,16], index: 2, kind: input, shape index: {}]   ;;  %s2993_s3 = inlined_call_operand.<no memory space> [shape: f32[1], index: 3, kind: input, shape index: {}]   ;;  %s2994_s4 = inlined_call_operand.<no memory space> [shape: f32[1], index: 4, kind: input, shape index: {}]   ;;  %s2995_s5 = inlined_call_operand.vmem [shape: f32[128,128], index: 5, kind: input, shape index: {}]   ;;  %s2996_s6 = inlined_call_operand.vmem [shape: f32[1,128], index: 6, kind: input, shape index: {}]   ;;  %s2997_s7 = inlined_call_operand.vmem [shape: f32[128,128], index: 7, kind: input, shape index: {}]   ;;  %s2998_s8 = inlined_call_operand.vmem [shape: f32[1,128], index: 8, kind: input, shape index: {}]   ;;  %s2999_s9 = inlined_call_operand.vmem [shape: f32[128,128], index: 9, kind: input, shape index: {}]   ;;  %s3000_s10 = inlined_call_operand.vmem [shape: f32[1,128], index: 10, kind: input, shape index: {}]   ;;  %s3001_s11 = inlined_call_operand.vmem [shape: f32[128,128], index: 11, kind: input, shape index: {}]   ;;  %s3002_s12 = inlined_call_operand.vmem [shape: f32[1,128], index: 12, kind: input, shape index: {}]   ;;  %s3003_s13 = inlined_call_operand.vmem [shape: f32[2,16,128], index: 13, kind: output, shape index: {}]  }
   0x1   :  { %18 = sst [smem:[#allocation2]] %s2993_s3 }
   0x2   :  { %19 = sst [smem:[#allocation3]] %s2994_s4 }
   0x3 LB: > { %s2079_s30 = sadd.s32 4294967295, %s2508_s29   ;;  %p2083_p0 = scmp.ge.s32.totalorder %s2508_s29, 1  ;;  %s2508_s29 = sphi %s2589_s29, %s25_s29  }
   0x4   : > { %p409_p1 = scmp.lt.s32.totalorder %s2508_s29, 3 }
   0x6   : > { %p410_p2 = pnand %p2083_p0, %p409_p1 }
   0x7   : > { %p463_p3 = scmp.lt.s32.totalorder (!%p410_p2), %s2079_s30, 1  ;;  %s503_s19 = sld [smem:[#allocation2]] (!%p410_p2) }
   0x8   : > { %413 = sbr.rel (%p410_p2) target bundleno = 2895 (0xb4f), region = 72  ;;  %s2510_s28 = smov (!%p410_p2), 96  }
   0x9   : > { %s2511_s23 = smov (!%p410_p2), 64   ;;  %s2512_s24 = smov (!%p410_p2), 32  }
   0xd   : > { %s3005_s30 = smov (!%p463_p3, %s2079_s30), 1  ;;  %v646_v10 = vld [vmem:[%s2997_s7 + $0x78] sm:$0xff]  ;;  %v645_v11 = vld [vmem:[%s2997_s7 + $0x70] sm:$0xff]  ;;  %v644_v12 = vld [vmem:[%s2997_s7 + $0x68] sm:$0xff]  ;;  %v504_v60 = vstv %s503_s19  ;;  %vm852_vm4 = vcmask 261120   ;;  %vm946_vm6 = vcmask 130048  }
   0xe   : > { %s2597_s3 = sshll.u32 %s3005_s30, 4  ;;  %2279 = vmatprep.subr.mxu1 %v646_v10  ;;  %v643_v13 = vld [vmem:[%s2997_s7 + $0x60] sm:$0xff]  ;;  %v642_v14 = vld [vmem:[%s2997_s7 + $0x58] sm:$0xff]  ;;  %v641_v16 = vld [vmem:[%s2997_s7 + $0x50] sm:$0xff] }
   0xf   : > { %s2603_s15 = scalar_lea.vmem %s2990_s0, %s2597_s3  ;;  %2280 = vmatpush3.msra.mxu1 %v646_v10  ;;  %v548_v15 = vld [vmem:[%s2995_s5 + $0x78] sm:$0xff]  ;;  %v547_v17 = vld [vmem:[%s2995_s5 + $0x70] sm:$0xff]  ;;  %v640_v18 = vld [vmem:[%s2997_s7 + $0x48] sm:$0xff]  ;;  %s472_s20 = scalar_lea.vmem %s2991_s1, %s2597_s3 }
  0x10   : > { %v483_v0 = vld [vmem:[%s2603_s15] sm:$0xff]  ;;  %v484_v1 = vld [vmem:[%s2603_s15 + $0x8] sm:$0xff]  ;;  %2281 = vmatprep.subr.mxu1 %v645_v11  ;;  %2244 = vmatprep.subr.mxu0 %v548_v15  ;;  %v638_v22 = vld [vmem:[%s2997_s7 + $0x38] sm:$0xff]  ;;  %s477_s27 = scalar_lea.vmem %s2992_s2, %s2597_s3  ;;  %s482_s21 = scalar_lea.vmem %s3003_s13, %s2597_s3 }
  0x11   : > { %485 = vadd.xlane.f32.xlu0 %v483_v0  ;;  %2282 = vmatpush3.msra.mxu1 %v645_v11  ;;  %v546_v19 = vld [vmem:[%s2995_s5 + $0x68] sm:$0xff]  ;;  %v639_v20 = vld [vmem:[%s2997_s7 + $0x40] sm:$0xff]  ;;  %v544_v23 = vld [vmem:[%s2995_s5 + $0x58] sm:$0xff] }
  0x12   : > { %2283 = vmatprep.subr.mxu1 %v644_v12  ;;  %2245 = vmatpush3.msra.mxu0 %v548_v15  ;;  %v545_v21 = vld [vmem:[%s2995_s5 + $0x60] sm:$0xff]  ;;  %v637_v24 = vld [vmem:[%s2997_s7 + $0x30] sm:$0xff]  ;;  %v636_v26 = vld [vmem:[%s2997_s7 + $0x28] sm:$0xff] }
  0x13   : > { %2284 = vmatpush3.msra.mxu1 %v644_v12  ;;  %2246 = vmatprep.subr.mxu0 %v547_v17  ;;  %v543_v25 = vld [vmem:[%s2995_s5 + $0x50] sm:$0xff]  ;;  %v542_v27 = vld [vmem:[%s2995_s5 + $0x48] sm:$0xff]  ;;  %v635_v28 = vld [vmem:[%s2997_s7 + $0x20] sm:$0xff] }
  0x14   : > { %2285 = vmatprep.subr.mxu1 %v643_v13  ;;  %2247 = vmatpush3.msra.mxu0 %v547_v17  ;;  %v541_v29 = vld [vmem:[%s2995_s5 + $0x40] sm:$0xff]  ;;  %v634_v30 = vld [vmem:[%s2997_s7 + $0x18] sm:$0xff]  ;;  %v633_v32 = vld [vmem:[%s2997_s7 + $0x10] sm:$0xff] }
  0x15   : > { %487 = vadd.xlane.f32.xlu0 %v484_v1  ;;  %2286 = vmatpush3.msra.mxu1 %v643_v13  ;;  %v540_v31 = vld [vmem:[%s2995_s5 + $0x38] sm:$0xff]  ;;  %v539_v33 = vld [vmem:[%s2995_s5 + $0x30] sm:$0xff]  ;;  %v632_v34 = vld [vmem:[%s2997_s7 + $0x8] sm:$0xff] }
  0x16   : > { %2287 = vmatprep.subr.mxu1 %v642_v14  ;;  %2248 = vmatprep.subr.mxu0 %v546_v19  ;;  %v538_v35 = vld [vmem:[%s2995_s5 + $0x28] sm:$0xff]  ;;  %v631_v36 = vld [vmem:[%s2997_s7] sm:$0xff]  ;;  %v536_v40 = vld [vmem:[%s2995_s5 + $0x18] sm:$0xff] }
  0x17   : > { %2288 = vmatpush3.msra.mxu1 %v642_v14  ;;  %2249 = vmatpush3.msra.mxu0 %v546_v19  ;;  %v531_v37 = vld [vmem:[%s472_s20] sm:$0xff]  ;;  %v2703_v39 = vld [vmem:[%s472_s20 + $0x8] sm:$0xff]  ;;  %v535_v41 = vld [vmem:[%s2995_s5 + $0x10] sm:$0xff]  ;;  %s527_s20 = sld [smem:[#allocation3]] }
  0x18   : > { %2289 = vmatprep.subr.mxu1 %v641_v16  ;;  %2250 = vmatprep.subr.mxu0 %v545_v21  ;;  %v537_v38 = vld [vmem:[%s2995_s5 + $0x20] sm:$0xff]  ;;  %v534_v42 = vld [vmem:[%s2995_s5 + $0x8] sm:$0xff]  ;;  %v743_v17 = vld [vmem:[%s2999_s9 + $0x70] sm:$0xff] }
  0x19   : > { %2290 = vmatpush3.msra.mxu1 %v641_v16  ;;  %2251 = vmatpush3.msra.mxu0 %v545_v21  ;;  %v533_v43 = vld [vmem:[%s2995_s5] sm:$0xff]  ;;  %v744_v16 = vld [vmem:[%s2999_s9 + $0x78] sm:$0xff]  ;;  %v739_v21 = vld [vmem:[%s2999_s9 + $0x50] sm:$0xff] }
  0x1a   : > { %2291 = vmatprep.subr.mxu1 %v640_v18  ;;  %2252 = vmatprep.subr.mxu0 %v544_v23  ;;  %v2092_v12 = vld [vmem:[%s2996_s6] ss:$0 sm:$0xff] }
  0x1b   : > { %2292 = vmatpush3.msra.mxu1 %v640_v18  ;;  %2253 = vmatpush3.msra.mxu0 %v544_v23  ;;  %v742_v18 = vld [vmem:[%s2999_s9 + $0x68] sm:$0xff]  ;;  %v741_v19 = vld [vmem:[%s2999_s9 + $0x60] sm:$0xff] }
  0x1c   : > { %2293 = vmatprep.subr.mxu1 %v639_v20  ;;  %2254 = vmatprep.subr.mxu0 %v543_v25  ;;  %v737_v23 = vld [vmem:[%s2999_s9 + $0x40] sm:$0xff] }
  0x1d   : > { %2294 = vmatpush3.msra.mxu1 %v639_v20  ;;  %2255 = vmatpush3.msra.mxu0 %v543_v25  ;;  %v528_v63 = vstv %s527_s20  ;;  %v740_v20 = vld [vmem:[%s2999_s9 + $0x58] sm:$0xff]  ;;  %v735_v25 = vld [vmem:[%s2999_s9 + $0x30] sm:$0xff] }
  0x1e   : > { %2295 = vmatprep.subr.mxu1 %v638_v22  ;;  %2256 = vmatprep.subr.mxu0 %v542_v27 }
  0x1f   : > { %2296 = vmatpush3.msra.mxu1 %v638_v22  ;;  %2257 = vmatpush3.msra.mxu0 %v542_v27  ;;  %v738_v22 = vld [vmem:[%s2999_s9 + $0x48] sm:$0xff]  ;;  %v733_v27 = vld [vmem:[%s2999_s9 + $0x20] sm:$0xff] }
  0x20   : > { %2297 = vmatprep.subr.mxu1 %v637_v24  ;;  %2258 = vmatprep.subr.mxu0 %v541_v29 }
  0x21   : > { %2298 = vmatpush3.msra.mxu1 %v637_v24  ;;  %2259 = vmatpush3.msra.mxu0 %v541_v29  ;;  %v736_v24 = vld [vmem:[%s2999_s9 + $0x38] sm:$0xff]  ;;  %v731_v29 = vld [vmem:[%s2999_s9 + $0x10] sm:$0xff] }
  0x22   : > { %2299 = vmatprep.subr.mxu1 %v636_v26  ;;  %2260 = vmatprep.subr.mxu0 %v540_v31 }
  0x23   : > { %2300 = vmatpush3.msra.mxu1 %v636_v26  ;;  %2261 = vmatpush3.msra.mxu0 %v540_v31  ;;  %v734_v26 = vld [vmem:[%s2999_s9 + $0x28] sm:$0xff]  ;;  %v729_v31 = vld [vmem:[%s2999_s9] sm:$0xff] }
  0x24   : > { %2301 = vmatprep.subr.mxu1 %v635_v28  ;;  %2262 = vmatprep.subr.mxu0 %v539_v33 }
  0x25   : > { %2302 = vmatpush3.msra.mxu1 %v635_v28  ;;  %2263 = vmatpush3.msra.mxu0 %v539_v33  ;;  %v732_v28 = vld [vmem:[%s2999_s9 + $0x18] sm:$0xff]  ;;  %v2801_v33 = vld [vmem:[%s477_s27] sm:$0xff] }
  0x26   : > { %2303 = vmatprep.subr.mxu1 %v634_v30  ;;  %2264 = vmatprep.subr.mxu0 %v538_v35  ;;  %vm942_vm7 = vcmp.eq.f32.partialorder %v2801_v33, 0.0  ;;  %v838_v33 = vld [vmem:[%s3001_s11 + $0x58] sm:$0xff] }
  0x27   : > { %2304 = vmatpush3.msra.mxu1 %v634_v30  ;;  %2265 = vmatpush3.msra.mxu0 %v538_v35  ;;  %v730_v30 = vld [vmem:[%s2999_s9 + $0x8] sm:$0xff] }
  0x28   : > { %2305 = vmatprep.subr.mxu1 %v633_v32  ;;  %2311 = vmatprep.mubr.f32.mxu1 %v531_v37 }
  0x29   : > { %2306 = vmatpush3.msra.mxu1 %v633_v32  ;;  %2266 = vmatprep.subr.mxu0 %v537_v38  ;;  %v2799_v32 = vld [vmem:[%s477_s27 + $0x8] sm:$0xff] }
  0x2a   : > { %2307 = vmatprep.subr.mxu1 %v632_v34  ;;  %2267 = vmatpush3.msra.mxu0 %v537_v38  ;;  %vm943_vm5 = vcmp.eq.f32.partialorder %v2799_v32, 0.0 }
  0x2b   : > { %2308 = vmatpush3.msra.mxu1 %v632_v34  ;;  %2268 = vmatprep.subr.mxu0 %v536_v40 }
  0x2c   : > { %2309 = vmatprep.subr.mxu1 %v631_v36  ;;  %2269 = vmatpush3.msra.mxu0 %v536_v40 }
  0x2d   : > { %2310 = vmatpush3.msra.mxu1 %v631_v36  ;;  %2270 = vmatprep.subr.mxu0 %v535_v41 }
  0x2e   : > { %2312 = vmatmul.mubr.f32.vlgmr.msra.gmra.mxu1 %v2703_v39  ;;  %2271 = vmatpush3.msra.mxu0 %v535_v41 }
  0x2f   : > { %2272 = vmatprep.subr.mxu0 %v534_v42 }
  0x30   : > { %2273 = vmatpush3.msra.mxu0 %v534_v42 }
  0x31   : > { %2274 = vmatprep.subr.mxu0 %v533_v43 }
  0x32   : > { %2275 = vmatpush3.msra.mxu0 %v533_v43 }
  0x33   : > { %2314 = vmatprep.subr.mxu0 %v744_v16 }
  0x9a   : > { %v486_v2 = vpop.xlane.xlu0 %485 }
  0x9b   : > { %v490_v3 = vmul.f32 0.0078125, %v486_v2 }
  0x9d   : > { %v2607_v4 = vsub.f32 %v483_v0, %v490_v3 }
  0x9e   : > { %v488_v5 = vpop.xlane.xlu0 %487 }
  0x9f   : > { %v491_v6 = vmul.f32 0.0078125, %v488_v5  ;;  %v494_v7 = vmul.f32 %v2607_v4, %v2607_v4  ;;  %v505_v61 = vmul.f32 %v504_v60, %v2607_v4 }
  0xa1   : > { %v2611_v8 = vsub.f32 %v484_v1, %v491_v6  ;;  %496 = vadd.xlane.f32.xlu1 %v494_v7  ;;  %v2093_v7 = vld [vmem:[%s2998_s8] ss:$0 sm:$0xff] }
  0xa3   : > { %v495_v9 = vmul.f32 %v2611_v8, %v2611_v8  ;;  %v506_v1 = vmul.f32 %v504_v60, %v2611_v8 }
  0xa5   : > { %498 = vadd.xlane.f32.xlu1 %v495_v9 }
  0xee   : > { %v2313_v9 = vpop.f32.mrf.mxu1 }
  0xef   : > { %v2723_v10 = vadd.f32 %v2313_v9, %v2093_v7 }
  0xf0   : > { %v720_v4 = vpop.f32.mrf.mxu1 }
  0xf1   : > { %2349 = vmatprep.subr.msk.mxu1 %vm852_vm4, %v2723_v10  ;;  %v2727_v8 = vadd.f32 %v2093_v7, %v720_v4 }
  0xf2   : > { %2350 = vmatpush3.xpose.msk.msra.mxu1 %vm852_vm4, %v2723_v10 }
  0xf3   : > { %2351 = vmatprep.subr.msk.mxu1 %vm852_vm4, %v2727_v8 }
  0xf6   : > { %2352 = vmatpush3.xpose.msk.msra.mxu1 %vm852_vm4, %v2727_v8 }
 0x12a   : > { %v497_v44 = vpop.xlane.xlu1 %496 }
 0x12b   : > { %v501_v45 = vmul.f32 0.007874016, %v497_v44 }
 0x12d   : > { %2460 = vrsqrt.f32 %v501_v45  ;;  %vm509_vm0 = vcmp.eq.f32.partialorder %v501_v45, inf  ;;  %v512_v50 = vand.u32 2147483648, %v501_v45  ;;  %vm511_vm1 = vcmp.eq.f32.partialorder %v501_v45, 0.0 }
 0x12e   : > { %v499_v46 = vpop.xlane.xlu1 %498 }
 0x12f   : > { %v502_v47 = vmul.f32 0.007874016, %v499_v46 }
 0x131   : > { %2462 = vrsqrt.f32 %v502_v47  ;;  %vm516_vm2 = vcmp.eq.f32.partialorder %v502_v47, inf  ;;  %v519_v56 = vand.u32 2147483648, %v502_v47  ;;  %vm518_vm3 = vcmp.eq.f32.partialorder %v502_v47, 0.0 }
 0x13a   : > { %v2461_v48 = vpop.eup %2460 }
 0x13b   : > { %v508_v49 = vmul.f32 %v2461_v48, %v501_v45 }
 0x13d   : > { %v510_v51 = vsel %vm509_vm0, %v501_v45, %v508_v49 }
 0x13e   : > { %v2463_v52 = vpop.eup %2462  ;;  %v513_v53 = vsel %vm511_vm1, %v512_v50, %v510_v51 }
 0x13f   : > { %v515_v54 = vmul.f32 %v2463_v52, %v502_v47  ;;  %v521_v55 = vadd.f32 1e-06, %v513_v53  ;;  %v2094_v53 = vld [vmem:[%s3000_s10] ss:$0 sm:$0xff] }
 0x141   : > { %v517_v57 = vsel %vm516_vm2, %v502_v47, %v515_v54  ;;  %2464 = vrcp.f32 %v521_v55 }
 0x142   : > { %v520_v58 = vsel %vm518_vm3, %v519_v56, %v517_v57  ;;  %v830_v57 = vld [vmem:[%s3001_s11 + $0x18] sm:$0xff] }
 0x143   : > { %v522_v59 = vadd.f32 1e-06, %v520_v58 }
 0x145   : > { %2466 = vrcp.f32 %v522_v59 }
 0x14e   : > { %v2465_v62 = vpop.eup %2464 }
 0x14f   : > { %v524_v0 = vmul.f32 %v2465_v62, %v505_v61 }
 0x151   : > { %v529_v2 = vadd.f32 %v528_v63, %v524_v0  ;;  %v829_v0 = vld [vmem:[%s3001_s11 + $0x10] sm:$0xff] }
 0x152   : > { %v2467_v3 = vpop.eup %2466 }
 0x153   : > { %v526_v5 = vmul.f32 %v2467_v3, %v506_v1  ;;  %2276 = vmatprep.mubr.f32.mxu0 %v529_v2  ;;  %v828_v1 = vld [vmem:[%s3001_s11 + $0x8] sm:$0xff]  ;;  %v827_v2 = vld [vmem:[%s3001_s11] sm:$0xff] }
 0x155   : > { %v530_v6 = vadd.f32 %v528_v63, %v526_v5 }
 0x157   : > { %2277 = vmatmul.mubr.f32.vlgmr.msra.gmra.mxu0 %v530_v6 }
 0x158   : > { %2346 = vmatprep.mubr.f32.mxu0 %v531_v37  ;;  %2315 = vmatpush3.msra.mxu0 %v744_v16 }
 0x159   : > { %2316 = vmatprep.subr.mxu0 %v743_v17 }
 0x15a   : > { %2317 = vmatpush3.msra.mxu0 %v743_v17 }
 0x15b   : > { %2318 = vmatprep.subr.mxu0 %v742_v18 }
 0x15c   : > { %2319 = vmatpush3.msra.mxu0 %v742_v18 }
 0x15d   : > { %2320 = vmatprep.subr.mxu0 %v741_v19 }
 0x15e   : > { %2321 = vmatpush3.msra.mxu0 %v741_v19 }
 0x15f   : > { %2322 = vmatprep.subr.mxu0 %v740_v20 }
 0x160   : > { %2323 = vmatpush3.msra.mxu0 %v740_v20 }
 0x161   : > { %2324 = vmatprep.subr.mxu0 %v739_v21 }
 0x162   : > { %2325 = vmatpush3.msra.mxu0 %v739_v21 }
 0x163   : > { %2326 = vmatprep.subr.mxu0 %v738_v22 }
 0x164   : > { %2327 = vmatpush3.msra.mxu0 %v738_v22 }
 0x165   : > { %2328 = vmatprep.subr.mxu0 %v737_v23 }
 0x166   : > { %2329 = vmatpush3.msra.mxu0 %v737_v23 }
 0x167   : > { %2330 = vmatprep.subr.mxu0 %v736_v24 }
 0x168   : > { %2331 = vmatpush3.msra.mxu0 %v736_v24 }
 0x169   : > { %2332 = vmatprep.subr.mxu0 %v735_v25 }
 0x16a   : > { %2333 = vmatpush3.msra.mxu0 %v735_v25 }
 0x16b   : > { %2334 = vmatprep.subr.mxu0 %v734_v26 }
 0x16c   : > { %2335 = vmatpush3.msra.mxu0 %v734_v26 }
 0x16d   : > { %2336 = vmatprep.subr.mxu0 %v733_v27 }
 0x16e   : > { %2337 = vmatpush3.msra.mxu0 %v733_v27 }
 0x16f   : > { %2338 = vmatprep.subr.mxu0 %v732_v28 }
 0x170   : > { %2339 = vmatpush3.msra.mxu0 %v732_v28 }
 0x171   : > { %2340 = vmatprep.subr.mxu0 %v731_v29 }
 0x172   : > { %2341 = vmatpush3.msra.mxu0 %v731_v29 }
 0x173   : > { %2342 = vmatprep.subr.mxu0 %v730_v30 }
 0x174   : > { %2343 = vmatpush3.msra.mxu0 %v730_v30 }
 0x175   : > { %2344 = vmatprep.subr.mxu0 %v729_v31 }
 0x176   : > { %2345 = vmatpush3.msra.mxu0 %v729_v31 }
 0x177   : > { %2347 = vmatmul.mubr.f32.vlgmr.msra.gmra.mxu0 %v2703_v39 }
 0x217   : > { %v2278_v11 = vpop.f32.mrf.mxu0 }
 0x218   : > { %v2740_v15 = vadd.f32 %v2278_v11, %v2092_v12 }
 0x219   : > { %v622_v13 = vpop.f32.mrf.mxu0 }
 0x21a   : > { %v2738_v14 = vadd.f32 %v2092_v12, %v622_v13 }
 0x21c   : > { %2353 = vmatprep.mubr.msk.f32.mxu1 %vm852_vm4, %v2738_v14 }
 0x21d   : > { %2354 = vmatmul.mubr.msk.f32.vlgmr.msra.gmra.mxu1 %vm852_vm4, %v2740_v15 }
 0x237   : > { %v2348_v52 = vpop.f32.mrf.mxu0 }
 0x238   : > { %v2818_v54 = vadd.f32 %v2348_v52, %v2094_v53 }
 0x239   : > { %v818_v55 = vpop.f32.mrf.mxu0 }
 0x23a   : > { %v2820_v56 = vadd.f32 %v2094_v53, %v818_v55  ;;  %2356 = vmatprep.subr.mxu1 %v2818_v54 }
 0x23b   : > { %2357 = vmatpush3.msra.mxu1 %v2818_v54 }
 0x23c   : > { %2358 = vmatprep.subr.mxu1 %v2820_v56 }
 0x23d   : > { %2359 = vmatpush3.msra.mxu1 %v2820_v56 }
 0x23e   : > { %2363 = vmatprep.subr.mxu1 %v830_v57 }
 0x2dd   : > { %v2355_v34 = vpop.f32.mrf.mxu1 }
 0x2de   : > { %v941_v35 = vmul.f32 0.17677669, %v2355_v34 }
 0x2df   : > { %v931_v36 = vpop.f32.mrf.mxu1 }
 0x2e0   : > { %v940_v37 = vmul.f32 0.17677669, %v931_v36  ;;  %v945_v38 = vsel %vm943_vm5, -1e+09, %v941_v35  ;;  %v832_v35 = vld [vmem:[%s3001_s11 + $0x28] sm:$0xff]  ;;  %v831_v36 = vld [vmem:[%s3001_s11 + $0x20] sm:$0xff] }
 0x2e1   : > { %v950_v39 = vsel %vm946_vm6, %v945_v38, -inf }
 0x2e2   : > { %951 = vmax.xlane.f32.xlu1 %v950_v39  ;;  %v944_v40 = vsel %vm942_vm7, -1e+09, %v940_v37 }
 0x2e3   : > { %v947_v41 = vsel %vm946_vm6, %v944_v40, -inf }
 0x2e4   : > { %948 = vmax.xlane.f32.xlu0 %v947_v41 }
 0x36b   : > { %v952_v42 = vpop.xlane.xlu1 %951 }
 0x36c   : > { %v954_v43 = vsub.f32 %v945_v38, %v952_v42 }
 0x36d   : > { %v949_v44 = vpop.xlane.xlu0 %948 }
 0x36e   : > { %v957_v45 = vmul.f32 1.442695, %v954_v43  ;;  %v953_v46 = vsub.f32 %v944_v40, %v949_v44 }
 0x370   : > { %2468 = vpow2.f32 %v957_v45  ;;  %v955_v47 = vmul.f32 1.442695, %v953_v46 }
 0x372   : > { %2470 = vpow2.f32 %v955_v47 }
 0x37d   : > { %v2469_v48 = vpop.eup %2468 }
 0x37e   : > { %v962_v49 = vsel %vm946_vm6, %v2469_v48, 0.0 }
 0x37f   : > { %v2471_v50 = vpop.eup %2470  ;;  %963 = vadd.xlane.f32.xlu1 %v962_v49 }
 0x380   : > { %v959_v51 = vsel %vm946_vm6, %v2471_v50, 0.0 }
 0x381   : > { %960 = vadd.xlane.f32.xlu0 %v959_v51 }
 0x390   : > { %1137 = vrot.lane.b32.xlu1 %v2727_v8, %s2510_s28 }
 0x394   : > { %1133 = vrot.lane.b32.xlu1 %v2738_v14, %s2510_s28 }
 0x397   : > { %1139 = vrot.lane.b32.xlu0 %v2723_v10, %s2510_s28 }
 0x398   : > { %1135 = vrot.lane.b32.xlu1 %v2740_v15, %s2510_s28 }
 0x408   : > { %v964_v58 = vpop.xlane.xlu1 %963 }
 0x409   : > { %2472 = vrcp.f32 %v964_v58 }
 0x40a   : > { %v961_v59 = vpop.xlane.xlu0 %960 }
 0x40b   : > { %2474 = vrcp.f32 %v961_v59 }
 0x40c   : > { %v1138_v5 = vpop.permute.xlu1 %1137 }
 0x40e   : > { %v1140_v3 = vpop.permute.xlu0 %1139 }
 0x410   : > { %v1134_v9 = vpop.permute.xlu1 %1133 }
 0x414   : > { %v1136_v4 = vpop.permute.xlu1 %1135 }
 0x416   : > { %v2473_v60 = vpop.eup %2472 }
 0x417   : > { %v968_v63 = vmul.f32 %v2473_v60, %v2469_v48 }
 0x418   : > { %v2475_v61 = vpop.eup %2474 }
 0x419   : > { %v967_v62 = vmul.f32 %v2475_v61, %v2471_v50 }
 0x41b   : > { %2360 = vmatprep.mubr.msk.f32.mxu1 %vm946_vm6, %v967_v62 }
 0x41c   : > { %2361 = vmatmul.mubr.msk.f32.vlgmr.msra.gmra.mxu1 %vm946_vm6, %v968_v63 }
 0x41d   : > { %2364 = vmatpush3.msra.mxu1 %v830_v57 }
 0x41e   : > { %2365 = vmatprep.subr.mxu1 %v829_v0 }
 0x41f   : > { %2366 = vmatpush3.msra.mxu1 %v829_v0 }
 0x420   : > { %2367 = vmatprep.subr.mxu1 %v828_v1 }
 0x421   : > { %2368 = vmatpush3.msra.mxu1 %v828_v1 }
 0x422   : > { %2369 = vmatprep.subr.mxu1 %v827_v2 }
 0x423   : > { %2370 = vmatpush3.msra.mxu1 %v827_v2 }
 0x424   : > { %2374 = vmatprep.subr.msk.mxu1 %vm852_vm4, %v1140_v3 }
 0x4dc   : > { %v2362_v6 = vpop.f32.mrf.mxu1 }
 0x4de   : > { %v1041_v7 = vpop.f32.mrf.mxu1 }
 0x4df   : > { %2371 = vmatprep.mubr.msk.f32.mxu1 %vm852_vm4, %v1041_v7 }
 0x4e0   : > { %2372 = vmatmul.mubr.msk.f32.vlgmr.msra.gmra.mxu1 %vm852_vm4, %v2362_v6 }
 0x4e1   : > { %2375 = vmatpush3.xpose.msk.msra.mxu1 %vm852_vm4, %v1140_v3  ;;  %2378 = vmatprep.mubr.msk.f32.mxu1 %vm852_vm4, %v1134_v9 }
 0x4e2   : > { %2376 = vmatprep.subr.msk.mxu1 %vm852_vm4, %v1138_v5 }
 0x4e5   : > { %2377 = vmatpush3.xpose.msk.msra.mxu1 %vm852_vm4, %v1138_v5 }
 0x4e8   : > { %2379 = vmatmul.mubr.msk.f32.vlgmr.msra.gmra.mxu1 %vm852_vm4, %v1136_v4 }
 0x5a0   : > { %v2854_v11 = vpop.f32.mrf.mxu1 }
 0x5a2   : > { %v2856_v12 = vpop.f32.mrf.mxu1 }
 0x5a8   : > { %v2380_v13 = vpop.f32.mrf.mxu1 }
 0x5a9   : > { %v1225_v16 = vmul.f32 0.17677669, %v2380_v13  ;;  %v2095_v13 = vld [vmem:[%s3002_s12] ss:$0 sm:$0xff] }
 0x5aa   : > { %v1215_v17 = vpop.f32.mrf.mxu1 }
 0x5ab   : > { %v1224_v18 = vmul.f32 0.17677669, %v1215_v17  ;;  %v1227_v19 = vsel %vm943_vm5, -1e+09, %v1225_v16  ;;  %v1132_v16 = vadd.f32 %v2854_v11, %v2095_v13 }
 0x5ac   : > { %v1231_v20 = vsel %vm946_vm6, %v1227_v19, -inf }
 0x5ad   : > { %1232 = vmax.xlane.f32.xlu1 %v1231_v20  ;;  %v1226_v21 = vsel %vm942_vm7, -1e+09, %v1224_v18  ;;  %v1131_v18 = vadd.f32 %v2095_v13, %v2856_v12 }
 0x5ae   : > { %v1228_v22 = vsel %vm946_vm6, %v1226_v21, -inf }
 0x5af   : > { %1229 = vmax.xlane.f32.xlu0 %v1228_v22 }
 0x5be   : > { %1252 = vrot.lane.b32.xlu1 %v2820_v56, %s2510_s28 }
 0x5c2   : > { %1428 = vrot.lane.b32.xlu1 %v2723_v10, %s2511_s23 }
 0x5c6   : > { %1426 = vrot.lane.b32.xlu1 %v2727_v8, %s2511_s23 }
 0x5ca   : > { %1424 = vrot.lane.b32.xlu1 %v2740_v15, %s2511_s23 }
 0x5ce   : > { %1713 = vrot.lane.b32.xlu1 %v2727_v8, %s2512_s24  ;;  %v834_v8 = vld [vmem:[%s3001_s11 + $0x38] sm:$0xff] }
 0x5cf   : > { %2388 = vmatprep.subr.mxu0 %v834_v8 }
 0x5d0   : > { %2389 = vmatpush3.msra.mxu0 %v834_v8 }
 0x5d2   : > { %1711 = vrot.lane.b32.xlu1 %v2740_v15, %s2512_s24  ;;  %v833_v15 = vld [vmem:[%s3001_s11 + $0x30] sm:$0xff] }
 0x5d3   : > { %2390 = vmatprep.subr.mxu0 %v833_v15 }
 0x5d4   : > { %2391 = vmatpush3.msra.mxu0 %v833_v15 }
 0x5d5   : > { %2392 = vmatprep.subr.mxu0 %v832_v35 }
 0x5d6   : > { %2393 = vmatpush3.msra.mxu0 %v832_v35  ;;  %v837_v35 = vld [vmem:[%s3001_s11 + $0x50] sm:$0xff] }
 0x5d7   : > { %2394 = vmatprep.subr.mxu0 %v831_v36 }
 0x5d8   : > { %2395 = vmatpush3.msra.mxu0 %v831_v36 }
 0x636   : > { %v1233_v23 = vpop.xlane.xlu1 %1232 }
 0x637   : > { %v1235_v24 = vsub.f32 %v1227_v19, %v1233_v23 }
 0x638   : > { %v1230_v25 = vpop.xlane.xlu0 %1229 }
 0x639   : > { %v1238_v26 = vmul.f32 1.442695, %v1235_v24  ;;  %v1234_v27 = vsub.f32 %v1226_v21, %v1230_v25 }
 0x63a   : > { %v1253_v39 = vpop.permute.xlu1 %1252 }
 0x63b   : > { %2476 = vpow2.f32 %v1238_v26  ;;  %v1236_v28 = vmul.f32 1.442695, %v1234_v27 }
 0x63d   : > { %2478 = vpow2.f32 %v1236_v28 }
 0x63e   : > { %v1429_v41 = vpop.permute.xlu1 %1428 }
 0x642   : > { %v1427_v46 = vpop.permute.xlu1 %1426 }
 0x646   : > { %v1425_v47 = vpop.permute.xlu1 %1424 }
 0x648   : > { %v2477_v29 = vpop.eup %2476 }
 0x649   : > { %v1243_v30 = vsel %vm946_vm6, %v2477_v29, 0.0 }
 0x64a   : > { %v2479_v31 = vpop.eup %2478  ;;  %1244 = vadd.xlane.f32.xlu0 %v1243_v30  ;;  %v1714_v51 = vpop.permute.xlu1 %1713 }
 0x64b   : > { %v1240_v34 = vsel %vm946_vm6, %v2479_v31, 0.0 }
 0x64e   : > { %1241 = vadd.xlane.f32.xlu0 %v1240_v34  ;;  %v1712_v57 = vpop.permute.xlu1 %1711 }
 0x664   : > { %1254 = vrot.lane.b32.xlu0 %v2818_v54, %s2510_s28 }
 0x668   : > { %1422 = vrot.lane.b32.xlu0 %v2738_v14, %s2511_s23 }
 0x66c   : > { %1715 = vrot.lane.b32.xlu0 %v2723_v10, %s2512_s24 }
 0x670   : > { %1709 = vrot.lane.b32.xlu0 %v2738_v14, %s2512_s24 }
 0x6d3   : > { %v1245_v37 = vpop.xlane.xlu0 %1244 }
 0x6d4   : > { %2480 = vrcp.f32 %v1245_v37 }
 0x6d7   : > { %v1242_v38 = vpop.xlane.xlu0 %1241 }
 0x6d8   : > { %2482 = vrcp.f32 %v1242_v38 }
 0x6db   : > { %v1255_v40 = vpop.permute.xlu0 %1254 }
 0x6dc   : > { %2381 = vmatprep.subr.mxu1 %v1255_v40 }
 0x6dd   : > { %2382 = vmatpush3.msra.mxu1 %v1255_v40 }
 0x6de   : > { %2383 = vmatprep.subr.mxu1 %v1253_v39 }
 0x6df   : > { %2384 = vmatpush3.msra.mxu1 %v1253_v39  ;;  %v1423_v42 = vpop.permute.xlu0 %1422 }
 0x6e0   : > { %2399 = vmatprep.subr.msk.mxu1 %vm852_vm4, %v1429_v41 }
 0x6e1   : > { %v2481_v44 = vpop.eup %2480 }
 0x6e2   : > { %v1249_v45 = vmul.f32 %v2481_v44, %v2477_v29  ;;  %v836_v44 = vld [vmem:[%s3001_s11 + $0x48] sm:$0xff] }
 0x6e3   : > { %v1716_v43 = vpop.permute.xlu0 %1715 }
 0x6e4   : > { %2424 = vmatprep.subr.msk.mxu0 %vm852_vm4, %v1716_v43 }
 0x6e5   : > { %v2483_v10 = vpop.eup %2482 }
 0x6e6   : > { %v1248_v14 = vmul.f32 %v2483_v10, %v2479_v31  ;;  %v835_v10 = vld [vmem:[%s3001_s11 + $0x40] sm:$0xff] }
 0x6e7   : > { %v1710_v50 = vpop.permute.xlu0 %1709 }
 0x6e8   : > { %2385 = vmatprep.mubr.msk.f32.mxu1 %vm946_vm6, %v1248_v14 }
 0x6e9   : > { %2386 = vmatmul.mubr.msk.f32.vlgmr.msra.gmra.mxu1 %vm946_vm6, %v1249_v45 }
 0x6ea   : > { %2400 = vmatpush3.xpose.msk.msra.mxu1 %vm852_vm4, %v1429_v41  ;;  %2403 = vmatprep.mubr.msk.f32.mxu1 %vm852_vm4, %v1423_v42 }
 0x6eb   : > { %2401 = vmatprep.subr.msk.mxu1 %vm852_vm4, %v1427_v46 }
 0x6ee   : > { %2402 = vmatpush3.xpose.msk.msra.mxu1 %vm852_vm4, %v1427_v46 }
 0x6f1   : > { %2404 = vmatmul.mubr.msk.f32.vlgmr.msra.gmra.mxu1 %vm852_vm4, %v1425_v47 }
 0x7a9   : > { %v2387_v48 = vpop.f32.mrf.mxu1 }
 0x7ab   : > { %v1330_v49 = vpop.f32.mrf.mxu1 }
 0x7ac   : > { %2396 = vmatprep.mubr.msk.f32.mxu0 %vm852_vm4, %v1330_v49 }
 0x7ad   : > { %2397 = vmatmul.mubr.msk.f32.vlgmr.msra.gmra.mxu0 %vm852_vm4, %v2387_v48 }
 0x7ae   : > { %2425 = vmatpush3.xpose.msk.msra.mxu0 %vm852_vm4, %v1716_v43  ;;  %2428 = vmatprep.mubr.msk.f32.mxu0 %vm852_vm4, %v1710_v50 }
 0x7af   : > { %2426 = vmatprep.subr.msk.mxu0 %vm852_vm4, %v1714_v51 }
 0x7b1   : > { %v2405_v52 = vpop.f32.mrf.mxu1 }
 0x7b2   : > { %v1514_v53 = vmul.f32 0.17677669, %v2405_v52  ;;  %2427 = vmatpush3.xpose.msk.msra.mxu0 %vm852_vm4, %v1714_v51 }
 0x7b3   : > { %v1504_v55 = vpop.f32.mrf.mxu1 }
 0x7b4   : > { %v1513_v58 = vmul.f32 0.17677669, %v1504_v55  ;;  %v1516_v59 = vsel %vm943_vm5, -1e+09, %v1514_v53  ;;  %v842_v55 = vld [vmem:[%s3001_s11 + $0x78] sm:$0xff] }
 0x7b5   : > { %2429 = vmatmul.mubr.msk.f32.vlgmr.msra.gmra.mxu0 %vm852_vm4, %v1712_v57  ;;  %v1520_v60 = vsel %vm946_vm6, %v1516_v59, -inf  ;;  %v841_v57 = vld [vmem:[%s3001_s11 + $0x70] sm:$0xff]  ;;  %2438 = vmatprep.subr.mxu0 %v842_v55 }
 0x7b6   : > { %1521 = vmax.xlane.f32.xlu1 %v1520_v60  ;;  %v1515_v61 = vsel %vm942_vm7, -1e+09, %v1513_v58  ;;  %2439 = vmatpush3.msra.mxu0 %v842_v55  ;;  %v840_v58 = vld [vmem:[%s3001_s11 + $0x68] sm:$0xff] }
 0x7b7   : > { %v1517_v62 = vsel %vm946_vm6, %v1515_v61, -inf  ;;  %2440 = vmatprep.subr.mxu0 %v841_v57 }
 0x7b8   : > { %1518 = vmax.xlane.f32.xlu0 %v1517_v62  ;;  %2441 = vmatpush3.msra.mxu0 %v841_v57 }
 0x7b9   : > { %2442 = vmatprep.subr.mxu0 %v840_v58 }
 0x7ba   : > { %2443 = vmatpush3.msra.mxu0 %v840_v58 }
 0x7c7   : > { %1539 = vrot.lane.b32.xlu1 %v2820_v56, %s2511_s23 }
 0x83f   : > { %v1522_v63 = vpop.xlane.xlu1 %1521 }
 0x840   : > { %v1524_v0 = vsub.f32 %v1516_v59, %v1522_v63  ;;  %v839_v59 = vld [vmem:[%s3001_s11 + $0x60] sm:$0xff] }
 0x841   : > { %v1519_v1 = vpop.xlane.xlu0 %1518  ;;  %2444 = vmatprep.subr.mxu0 %v839_v59 }
 0x842   : > { %v1527_v2 = vmul.f32 1.442695, %v1524_v0  ;;  %v1523_v3 = vsub.f32 %v1515_v61, %v1519_v1  ;;  %2445 = vmatpush3.msra.mxu0 %v839_v59 }
 0x843   : > { %v1540_v31 = vpop.permute.xlu1 %1539 }
 0x844   : > { %2484 = vpow2.f32 %v1527_v2  ;;  %v1525_v5 = vmul.f32 1.442695, %v1523_v3 }
 0x846   : > { %2486 = vpow2.f32 %v1525_v5 }
 0x851   : > { %v2485_v6 = vpop.eup %2484 }
 0x852   : > { %v1532_v7 = vsel %vm946_vm6, %v2485_v6, 0.0 }
 0x853   : > { %v2487_v9 = vpop.eup %2486  ;;  %1533 = vadd.xlane.f32.xlu0 %v1532_v7 }
 0x854   : > { %v1529_v4 = vsel %vm946_vm6, %v2487_v9, 0.0 }
 0x857   : > { %1530 = vadd.xlane.f32.xlu0 %v1529_v4  ;;  %v2501_v4 = vld [vmem:[%s2603_s15] sm:$0xff] }
 0x86d   : > { %1541 = vrot.lane.b32.xlu0 %v2818_v54, %s2511_s23  ;;  %v2398_v17 = vpop.f32.mrf.mxu0 }
 0x86e   : > { %v2931_v19 = vadd.f32 %v2398_v17, %v1132_v16 }
 0x86f   : > { %v1411_v20 = vpop.f32.mrf.mxu0 }
 0x870   : > { %v2933_v21 = vadd.f32 %v1411_v20, %v1131_v18 }
 0x875   : > { %v2430_v22 = vpop.f32.mrf.mxu0 }
 0x876   : > { %v1801_v11 = vmul.f32 0.17677669, %v2430_v22 }
 0x877   : > { %v1791_v23 = vpop.f32.mrf.mxu0 }
 0x878   : > { %v1800_v24 = vmul.f32 0.17677669, %v1791_v23  ;;  %v1803_v27 = vsel %vm943_vm5, -1e+09, %v1801_v11 }
 0x879   : > { %v1807_v12 = vsel %vm946_vm6, %v1803_v27, -inf }
 0x87a   : > { %v1802_v25 = vsel %vm942_vm7, -1e+09, %v1800_v24 }
 0x87b   : > { %v1804_v26 = vsel %vm946_vm6, %v1802_v25, -inf }
 0x87c   : > { %1805 = vmax.xlane.f32.xlu1 %v1804_v26 }
 0x88c   : > { %1808 = vmax.xlane.f32.xlu0 %v1807_v12 }
 0x8dc   : > { %v1534_v28 = vpop.xlane.xlu0 %1533 }
 0x8dd   : > { %2488 = vrcp.f32 %v1534_v28 }
 0x8e0   : > { %v1531_v29 = vpop.xlane.xlu0 %1530 }
 0x8e1   : > { %2490 = vrcp.f32 %v1531_v29 }
 0x8e4   : > { %v1542_v30 = vpop.permute.xlu0 %1541 }
 0x8e5   : > { %2406 = vmatprep.subr.mxu1 %v1542_v30 }
 0x8e6   : > { %2407 = vmatpush3.msra.mxu1 %v1542_v30 }
 0x8e7   : > { %2408 = vmatprep.subr.mxu1 %v1540_v31 }
 0x8e8   : > { %2409 = vmatpush3.msra.mxu1 %v1540_v31 }
 0x8e9   : > { %2413 = vmatprep.subr.mxu1 %v838_v33 }
 0x8ea   : > { %v2489_v32 = vpop.eup %2488 }
 0x8eb   : > { %v1538_v15 = vmul.f32 %v2489_v32, %v2485_v6  ;;  %v2500_v6 = vld [vmem:[%s2603_s15 + $0x8] sm:$0xff] }
 0x8ee   : > { %v2491_v34 = vpop.eup %2490 }
 0x8ef   : > { %v1537_v8 = vmul.f32 %v2491_v34, %v2487_v9 }
 0x8f1   : > { %2410 = vmatprep.mubr.msk.f32.mxu1 %vm946_vm6, %v1537_v8 }
 0x8f2   : > { %2411 = vmatmul.mubr.msk.f32.vlgmr.msra.gmra.mxu1 %vm946_vm6, %v1538_v15 }
 0x8f3   : > { %2414 = vmatpush3.msra.mxu1 %v838_v33 }
 0x8f4   : > { %2415 = vmatprep.subr.mxu1 %v837_v35 }
 0x8f5   : > { %2416 = vmatpush3.msra.mxu1 %v837_v35 }
 0x8f6   : > { %2417 = vmatprep.subr.mxu1 %v836_v44 }
 0x8f7   : > { %2418 = vmatpush3.msra.mxu1 %v836_v44 }
 0x8f8   : > { %2419 = vmatprep.subr.mxu1 %v835_v10 }
 0x8f9   : > { %2420 = vmatpush3.msra.mxu1 %v835_v10 }
 0x905   : > { %v1806_v36 = vpop.xlane.xlu1 %1805 }
 0x906   : > { %v1810_v37 = vsub.f32 %v1802_v25, %v1806_v36 }
 0x908   : > { %v1812_v38 = vmul.f32 1.442695, %v1810_v37 }
 0x90a   : > { %2492 = vpow2.f32 %v1812_v38 }
 0x915   : > { %v1809_v39 = vpop.xlane.xlu0 %1808 }
 0x916   : > { %v1811_v40 = vsub.f32 %v1803_v27, %v1809_v39 }
 0x917   : > { %v2493_v41 = vpop.eup %2492 }
 0x918   : > { %v1814_v42 = vmul.f32 1.442695, %v1811_v40  ;;  %v1816_v43 = vsel %vm946_vm6, %v2493_v41, 0.0 }
 0x919   : > { %1817 = vadd.xlane.f32.xlu0 %v1816_v43 }
 0x91a   : > { %2494 = vpow2.f32 %v1814_v42 }
 0x927   : > { %v2495_v14 = vpop.eup %2494 }
 0x928   : > { %v1819_v45 = vsel %vm946_vm6, %v2495_v14, 0.0 }
 0x929   : > { %1820 = vadd.xlane.f32.xlu1 %v1819_v45 }
 0x92f   : > { %1828 = vrot.lane.b32.xlu0 %v2818_v54, %s2512_s24 }
 0x93a   : > { %1826 = vrot.lane.b32.xlu1 %v2820_v56, %s2512_s24 }
 0x9a2   : > { %v1818_v46 = vpop.xlane.xlu0 %1817 }
 0x9a3   : > { %2496 = vrcp.f32 %v1818_v46 }
 0x9a6   : > { %v1829_v47 = vpop.permute.xlu0 %1828 }
 0x9a7   : > { %2431 = vmatprep.subr.mxu1 %v1829_v47 }
 0x9b0   : > { %v2497_v48 = vpop.eup %2496 }
 0x9b1   : > { %v1824_v52 = vmul.f32 %v2497_v48, %v2493_v41 }
 0x9b2   : > { %v2412_v49 = vpop.f32.mrf.mxu1  ;;  %v1821_v50 = vpop.xlane.xlu1 %1820 }
 0x9b3   : > { %2498 = vrcp.f32 %v1821_v50 }
 0x9b4   : > { %v1617_v51 = vpop.f32.mrf.mxu1 }
 0x9b5   : > { %2421 = vmatprep.mubr.msk.f32.mxu1 %vm852_vm4, %v1617_v51 }
 0x9b6   : > { %2422 = vmatmul.mubr.msk.f32.vlgmr.msra.gmra.mxu1 %vm852_vm4, %v2412_v49  ;;  %v1827_v53 = vpop.permute.xlu1 %1826 }
 0x9b7   : > { %2432 = vmatpush3.msra.mxu1 %v1829_v47  ;;  %2435 = vmatprep.mubr.msk.f32.mxu1 %vm946_vm6, %v1824_v52 }
 0x9b8   : > { %2433 = vmatprep.subr.mxu1 %v1827_v53 }
 0x9b9   : > { %2434 = vmatpush3.msra.mxu1 %v1827_v53 }
 0x9c0   : > { %v2499_v54 = vpop.eup %2498 }
 0x9c1   : > { %v1825_v56 = vmul.f32 %v2499_v54, %v2495_v14 }
 0x9c3   : > { %2436 = vmatmul.mubr.msk.f32.vlgmr.msra.gmra.mxu1 %vm946_vm6, %v1825_v56 }
 0xa76   : > { %v2423_v60 = vpop.f32.mrf.mxu1 }
 0xa77   : > { %v1708_v61 = vadd.f32 %v2423_v60, %v2931_v19 }
 0xa78   : > { %v1698_v62 = vpop.f32.mrf.mxu1 }
 0xa79   : > { %v1707_v63 = vadd.f32 %v1698_v62, %v2933_v21 }
 0xa83   : > { %v2437_v0 = vpop.f32.mrf.mxu1 }
 0xa85   : > { %v1904_v1 = vpop.f32.mrf.mxu1 }
 0xa86   : > { %2446 = vmatprep.mubr.msk.f32.mxu0 %vm852_vm4, %v1904_v1 }
 0xa87   : > { %2447 = vmatmul.mubr.msk.f32.vlgmr.msra.gmra.mxu0 %vm852_vm4, %v2437_v0 }
 0xb47   : > { %v2448_v2 = vpop.f32.mrf.mxu0 }
 0xb48   : > { %v1995_v3 = vadd.f32 %v2448_v2, %v1708_v61 }
 0xb49   : > { %v1985_v5 = vpop.f32.mrf.mxu0 }
 0xb4a   : > { %v1997_v7 = vadd.f32 %v2500_v6, %v1995_v3  ;;  %v1994_v9 = vadd.f32 %v1985_v5, %v1707_v63 }
 0xb4c   : > { %1999 = vst [vmem:[%s482_s21 + $0x8] sm:$0xff] %v1997_v7  ;;  %v1996_v13 = vadd.f32 %v2501_v4, %v1994_v9 }
 0xb4e   : > { %1998 = vst [vmem:[%s482_s21] sm:$0xff] %v1996_v13 }
 0xb4f PF: > { %s25_s29 = sadd.s32 1, %s2508_s29  }
 0xb50   : > { %p22_p4 = scmp.ge.s32.totalorder %s25_s29, 4  }
 0xb52   :  { %24 = sbr.rel (!%p22_p4) target bundleno = 3 (0x3), region = 108 }

// kernel: decoder_forward.7
= control target key start
LH: loop header
LB: loop body
LE: loop exit
PB: predicated region body
PF: predicated region fallthrough
CT: control target
= control target key end

     0   :  { %s3152_s0 = inlined_call_operand.vmem [shape: f32[2,16,128], index: 0, kind: input, shape index: {}, may-alias: {0,1}]   ;;  %s3153_s1 = inlined_call_operand.vmem [shape: f32[2,16,128], index: 1, kind: input, shape index: {}, may-alias: {0,1}]   ;;  %s3154_s2 = inlined_call_operand.vmem [shape: f32[2,1,16,16], index: 2, kind: input, shape index: {}]   ;;  %s3155_s3 = inlined_call_operand.<no memory space> [shape: f32[1], index: 3, kind: input, shape index: {}]   ;;  %s3156_s4 = inlined_call_operand.<no memory space> [shape: f32[1], index: 4, kind: input, shape index: {}]   ;;  %s3157_s5 = inlined_call_operand.hbm [shape: f32[128,128], index: 5, kind: input, shape index: {}]   ;;  %s3158_s6 = inlined_call_operand.vmem [shape: f32[1,128], index: 6, kind: input, shape index: {}]   ;;  %s3159_s7 = inlined_call_operand.hbm [shape: f32[128,128], index: 7, kind: input, shape index: {}]   ;;  %s3160_s8 = inlined_call_operand.vmem [shape: f32[1,128], index: 8, kind: input, shape index: {}]   ;;  %s3161_s9 = inlined_call_operand.hbm [shape: f32[128,128], index: 9, kind: input, shape index: {}]   ;;  %s3162_s10 = inlined_call_operand.vmem [shape: f32[1,128], index: 10, kind: input, shape index: {}]   ;;  %s3163_s11 = inlined_call_operand.hbm [shape: f32[128,128], index: 11, kind: input, shape index: {}]   ;;  %s3164_s12 = inlined_call_operand.vmem [shape: f32[1,128], index: 12, kind: input, shape index: {}]   ;;  %s3165_s13 = inlined_call_operand.vmem [shape: f32[2,16,128], index: 13, kind: output, shape index: {}]  }
   0x1   :  { %18 = sst [smem:[#allocation2]] %s3155_s3 }
   0x2   :  { %19 = sst [smem:[#allocation3]] %s3156_s4 }
   0x3   :  { %20 = vsyncpa [#allocation5], 0 }
   0x4   :  { %21 = vsyncpa [#allocation7], 0 }
   0x5   :  { %22 = vsyncpa [#allocation10], 0  ;;  %s2857_s28 = smov 0  }
   0x6 LB: > { %s2863_s29 = sadd.s32 4294967295, %s2770_s28   ;;  %p2179_p0 = scmp.ge.s32.totalorder %s2770_s28, 1  ;;  %s2770_s28 = sphi %s2857_s28, %s28_s28  }
   0x7   : > { %p347_p1 = scmp.lt.s32.totalorder %s2770_s28, 3  ;;  %p2581_p2 = scmp.eq.s32.totalorder %s2863_s29, 0 }
   0x8   : > { %s2772_s4 = smov [#allocation6]   ;;  %s2773_s1 = smov [#allocation4]  }
   0x9   : > { %p2868_p3 = pnand %p2179_p0, %p347_p1  ;;  %s381_s30 = sshll.u32 %s2772_s4, 4  ;;  %s382_s30 = int_to_ptr.vmem [resolvable:$true] %s381_s30 }
   0xa   : > { %s365_s14 = sshll.u32 %s2773_s1, 4  ;;  %s2774_s16 = smov [#allocation8]   ;;  %s2874_s14 = int_to_ptr.vmem [resolvable:$true] %s365_s14 }
   0xb   : > { %p2568_p4 = pneg %p2868_p3  ;;  %s397_s17 = sshll.u32 %s2774_s16, 4  ;;  %s2882_s17 = int_to_ptr.vmem [resolvable:$true] %s397_s17 }
   0xc   : > { %s2775_s18 = smov [#allocation9]   ;;  %s2659_s20 = scalar_lea.vmem %s382_s30, 2048 }
   0xd   : > { %p2878_p5 = pnand %p2581_p2, %p2568_p4  ;;  %s2884_s19 = sshll.u32 %s2775_s18, 4  ;;  %s414_s19 = int_to_ptr.vmem [resolvable:$true] %s2884_s19 }
   0xe   : > { %p2660_p7 = scmp.ne.s32.totalorder %s382_s30, %s2659_s20  ;;  %p2667_p10 = scmp.lt.s32.totalorder %s382_s30, %s382_s30 }
   0xf   : > { %p2650_p6 = pneg %p2878_p5  ;;  %p2668_p11 = scmp.lt.s32.totalorder %s2659_s20, %s2659_s20 }
  0x11   : > { %p2662_p8 = pnand %p2660_p7, %p2650_p6  ;;  %p2669_p12 = por %p2668_p11, %p2667_p10 }
  0x13   : > { %p2663_p9 = pneg %p2662_p8 }
  0x15   : > { %p2670_p13 = pnand %p2669_p12, %p2663_p9 }
  0x17   : > { %2673 = shalt.err (!%p2670_p13)
}
  0x18   : > { %s2776_s21 = smov 128   ;;  %s2777_s22 = smov 8  }
  0x19   : > { %2574 = dma.hbm_to_vmem [thread:$0]  (!%p2878_p5), %s3159_s7, 2048, %s382_s30, [#allocation7], %s2776_s21, %s2776_s21, %s2777_s22  }
  0x1a   : > { %s2685_s25 = scalar_lea.vmem %s2874_s14, 2048  ;;  %p2693_p7 = scmp.lt.s32.totalorder %s2874_s14, %s2874_s14 }
  0x1b   : > { %p2686_p0 = scmp.ne.s32.totalorder %s2874_s14, %s2685_s25  ;;  %p2694_p8 = scmp.lt.s32.totalorder %s2685_s25, %s2685_s25 }
  0x1d   : > { %p2688_p1 = pnand %p2686_p0, %p2650_p6  ;;  %p2695_p9 = por %p2694_p8, %p2693_p7 }
  0x1f   : > { %p2689_p4 = pneg %p2688_p1 }
  0x21   : > { %p2696_p10 = pnand %p2695_p9, %p2689_p4 }
  0x23   : > { %2699 = shalt.err (!%p2696_p10)
}
  0x24   : > { %2571 = dma.hbm_to_vmem [thread:$0]  (!%p2878_p5), %s3157_s5, 2048, %s2874_s14, [#allocation5], %s2776_s21, %s2776_s21, %s2777_s22  }
  0x25   : > { %s2711_s4 = scalar_lea.vmem %s2882_s17, 2048  ;;  %p2719_p0 = scmp.lt.s32.totalorder %s2882_s17, %s2882_s17 }
  0x26   : > { %p2712_p11 = scmp.ne.s32.totalorder %s2882_s17, %s2711_s4  ;;  %p2720_p1 = scmp.lt.s32.totalorder %s2711_s4, %s2711_s4 }
  0x28   : > { %p2714_p12 = pnand %p2712_p11, %p2650_p6  ;;  %p2721_p4 = por %p2720_p1, %p2719_p0 }
  0x2a   : > { %p2715_p13 = pneg %p2714_p12 }
  0x2c   : > { %p2722_p7 = pnand %p2721_p4, %p2715_p13 }
  0x2e   : > { %2725 = shalt.err (!%p2722_p7)
}
  0x2f   : > { %2577 = dma.hbm_to_vmem [thread:$0]  (!%p2878_p5), %s3161_s9, 2048, %s2882_s17, [#allocation7], %s2776_s21, %s2776_s21, %s2777_s22  }
  0x30   : > { %s2737_s14 = scalar_lea.vmem %s414_s19, 2048  ;;  %p2745_p11 = scmp.lt.s32.totalorder %s414_s19, %s414_s19 }
  0x31   : > { %p2738_p8 = scmp.ne.s32.totalorder %s414_s19, %s2737_s14  ;;  %p2746_p12 = scmp.lt.s32.totalorder %s2737_s14, %s2737_s14 }
  0x33   : > { %p2740_p9 = pnand %p2738_p8, %p2650_p6  ;;  %p2747_p13 = por %p2746_p12, %p2745_p11 }
  0x35   : > { %p2741_p10 = pneg %p2740_p9 }
  0x37   : > { %p2748_p0 = pnand %p2747_p13, %p2741_p10 }
  0x39   : > { %2751 = shalt.err (!%p2748_p0)
}
  0x3a   : > { %2580 = dma.hbm_to_vmem [thread:$0]  (!%p2878_p5), %s3163_s11, 2048, %s414_s19, [#allocation10], %s2776_s21, %s2776_s21, %s2777_s22  }
  0x3b   : > { %456 = sbr.rel (%p2868_p3) target bundleno = 2958 (0xb8e), region = 72 }
  0x40   : > { %2757 = dma.done.wait (%p2581_p2), [#allocation5], 2048  }
  0x41   : > { %2759 = vsyncadd (%p2581_p2), [#allocation5], 4294965248 }
  0x42   : > { %2761 = dma.done.wait (%p2581_p2), [#allocation7], 4096  }
  0x43   : > { %2763 = vsyncadd (%p2581_p2), [#allocation7], 4294963200 }
  0x44   : > { %2765 = dma.done.wait (%p2581_p2), [#allocation10], 2048  }
  0x45   : > { %2767 = vsyncadd (%p2581_p2), [#allocation10], 4294965248  ;;  %p522_p3 = scmp.lt.s32.totalorder %s2863_s29, 1  ;;  %v605_v10 = vld [vmem:[#allocation4 + $0x78] sm:$0xff]  ;;  %v604_v12 = vld [vmem:[#allocation4 + $0x70] sm:$0xff]  ;;  %s586_s20 = sld [smem:[#allocation3]] }
  0x46   : > { %2347 = vmatprep.subr.mxu0 %v605_v10  ;;  %v703_v11 = vld [vmem:[#allocation6 + $0x78] sm:$0xff]  ;;  %v702_v13 = vld [vmem:[#allocation6 + $0x70] sm:$0xff]  ;;  %v603_v14 = vld [vmem:[#allocation4 + $0x68] sm:$0xff]  ;;  %vm909_vm4 = vcmask 261120   ;;  %vm1003_vm6 = vcmask 130048   ;;  %s2778_s1 = smov 96  }
  0x47   : > { %s3169_s29 = smov (!%p522_p3, %s2863_s29), 1  ;;  %2348 = vmatpush3.msra.mxu0 %v605_v10  ;;  %2382 = vmatprep.subr.mxu1 %v703_v11  ;;  %v701_v15 = vld [vmem:[#allocation6 + $0x68] sm:$0xff]  ;;  %v602_v16 = vld [vmem:[#allocation4 + $0x60] sm:$0xff]  ;;  %v601_v18 = vld [vmem:[#allocation4 + $0x58] sm:$0xff]  ;;  %s2779_s14 = smov 64  }
  0x48   : > { %s2959_s3 = sshll.u32 %s3169_s29, 4  ;;  %2349 = vmatprep.subr.mxu0 %v604_v12  ;;  %2383 = vmatpush3.msra.mxu1 %v703_v11  ;;  %v700_v17 = vld [vmem:[#allocation6 + $0x60] sm:$0xff]  ;;  %v699_v19 = vld [vmem:[#allocation6 + $0x58] sm:$0xff]  ;;  %v600_v20 = vld [vmem:[#allocation4 + $0x50] sm:$0xff]  ;;  %s562_s29 = sld [smem:[#allocation2]] }
  0x49   : > { %s2965_s19 = scalar_lea.vmem %s3152_s0, %s2959_s3  ;;  %2350 = vmatpush3.msra.mxu0 %v604_v12  ;;  %2384 = vmatprep.subr.mxu1 %v702_v13  ;;  %v698_v21 = vld [vmem:[#allocation6 + $0x50] sm:$0xff]  ;;  %v599_v22 = vld [vmem:[#allocation4 + $0x48] sm:$0xff]  ;;  %v598_v24 = vld [vmem:[#allocation4 + $0x40] sm:$0xff]  ;;  %s536_s30 = scalar_lea.vmem %s3154_s2, %s2959_s3 }
  0x4a   : > { %v542_v0 = vld [vmem:[%s2965_s19] sm:$0xff]  ;;  %v543_v1 = vld [vmem:[%s2965_s19 + $0x8] sm:$0xff]  ;;  %2351 = vmatprep.subr.mxu0 %v603_v14  ;;  %2385 = vmatpush3.msra.mxu1 %v702_v13  ;;  %v597_v26 = vld [vmem:[#allocation4 + $0x38] sm:$0xff]  ;;  %s2780_s16 = smov 32  }
  0x4b   : > { %544 = vadd.xlane.f32.xlu0 %v542_v0  ;;  %2352 = vmatpush3.msra.mxu0 %v603_v14  ;;  %v697_v23 = vld [vmem:[#allocation6 + $0x48] sm:$0xff]  ;;  %v696_v25 = vld [vmem:[#allocation6 + $0x40] sm:$0xff]  ;;  %v695_v27 = vld [vmem:[#allocation6 + $0x38] sm:$0xff]  ;;  %v587_v62 = vstv %s586_s20  ;;  %s541_s20 = scalar_lea.vmem %s3165_s13, %s2959_s3 }
  0x4c   : > { %2386 = vmatprep.subr.mxu1 %v701_v15  ;;  %2353 = vmatprep.subr.mxu0 %v602_v16  ;;  %v596_v28 = vld [vmem:[#allocation4 + $0x30] sm:$0xff]  ;;  %v595_v30 = vld [vmem:[#allocation4 + $0x28] sm:$0xff]  ;;  %v594_v32 = vld [vmem:[#allocation4 + $0x20] sm:$0xff] }
  0x4d   : > { %2387 = vmatpush3.msra.mxu1 %v701_v15  ;;  %2354 = vmatpush3.msra.mxu0 %v602_v16  ;;  %v694_v29 = vld [vmem:[#allocation6 + $0x30] sm:$0xff]  ;;  %v693_v31 = vld [vmem:[#allocation6 + $0x28] sm:$0xff]  ;;  %v692_v33 = vld [vmem:[#allocation6 + $0x20] sm:$0xff] }
  0x4e   : > { %2388 = vmatprep.subr.mxu1 %v700_v17  ;;  %2355 = vmatprep.subr.mxu0 %v601_v18  ;;  %v593_v34 = vld [vmem:[#allocation4 + $0x18] sm:$0xff]  ;;  %v592_v36 = vld [vmem:[#allocation4 + $0x10] sm:$0xff]  ;;  %v591_v38 = vld [vmem:[#allocation4 + $0x8] sm:$0xff]  ;;  %v563_v59 = vstv %s562_s29 }
  0x4f   : > { %546 = vadd.xlane.f32.xlu0 %v543_v1  ;;  %2389 = vmatpush3.msra.mxu1 %v700_v17  ;;  %v691_v35 = vld [vmem:[#allocation6 + $0x18] sm:$0xff]  ;;  %v690_v37 = vld [vmem:[#allocation6 + $0x10] sm:$0xff]  ;;  %v689_v39 = vld [vmem:[#allocation6 + $0x8] sm:$0xff] }
  0x50   : > { %2356 = vmatpush3.msra.mxu0 %v601_v18  ;;  %2390 = vmatprep.subr.mxu1 %v699_v19  ;;  %v590_v40 = vld [vmem:[#allocation4] sm:$0xff]  ;;  %v801_v42 = vld [vmem:[#allocation8 + $0x78] sm:$0xff]  ;;  %v795_v10 = vld [vmem:[#allocation8 + $0x48] sm:$0xff] }
  0x51   : > { %2357 = vmatprep.subr.mxu0 %v600_v20  ;;  %2391 = vmatpush3.msra.mxu1 %v699_v19  ;;  %v688_v41 = vld [vmem:[#allocation6] sm:$0xff]  ;;  %v793_v12 = vld [vmem:[#allocation8 + $0x38] sm:$0xff]  ;;  %v792_v13 = vld [vmem:[#allocation8 + $0x30] sm:$0xff] }
  0x52   : > { %2358 = vmatpush3.msra.mxu0 %v600_v20  ;;  %2392 = vmatprep.subr.mxu1 %v698_v21  ;;  %v794_v11 = vld [vmem:[#allocation8 + $0x40] sm:$0xff]  ;;  %v791_v14 = vld [vmem:[#allocation8 + $0x28] sm:$0xff]  ;;  %v789_v16 = vld [vmem:[#allocation8 + $0x18] sm:$0xff] }
  0x53   : > { %2359 = vmatprep.subr.mxu0 %v599_v22  ;;  %2393 = vmatpush3.msra.mxu1 %v698_v21  ;;  %v790_v15 = vld [vmem:[#allocation8 + $0x20] sm:$0xff]  ;;  %v788_v17 = vld [vmem:[#allocation8 + $0x10] sm:$0xff]  ;;  %v787_v18 = vld [vmem:[#allocation8 + $0x8] sm:$0xff] }
  0x54   : > { %2360 = vmatpush3.msra.mxu0 %v599_v22  ;;  %2394 = vmatprep.subr.mxu1 %v697_v23  ;;  %v786_v19 = vld [vmem:[#allocation8] sm:$0xff] }
  0x55   : > { %2361 = vmatprep.subr.mxu0 %v598_v24  ;;  %2395 = vmatpush3.msra.mxu1 %v697_v23  ;;  %v2197_v20 = vld [vmem:[%s3160_s8] ss:$0 sm:$0xff] }
  0x56   : > { %2362 = vmatpush3.msra.mxu0 %v598_v24  ;;  %2396 = vmatprep.subr.mxu1 %v696_v25  ;;  %v2196_v24 = vld [vmem:[%s3158_s6] ss:$0 sm:$0xff] }
  0x57   : > { %2363 = vmatprep.subr.mxu0 %v597_v26  ;;  %2397 = vmatpush3.msra.mxu1 %v696_v25 }
  0x58   : > { %2364 = vmatpush3.msra.mxu0 %v597_v26  ;;  %2398 = vmatprep.subr.mxu1 %v695_v27 }
  0x59   : > { %2365 = vmatprep.subr.mxu0 %v596_v28  ;;  %2399 = vmatpush3.msra.mxu1 %v695_v27 }
  0x5a   : > { %2366 = vmatpush3.msra.mxu0 %v596_v28  ;;  %2400 = vmatprep.subr.mxu1 %v694_v29 }
  0x5b   : > { %2367 = vmatprep.subr.mxu0 %v595_v30  ;;  %2401 = vmatpush3.msra.mxu1 %v694_v29 }
  0x5c   : > { %2368 = vmatpush3.msra.mxu0 %v595_v30  ;;  %2402 = vmatprep.subr.mxu1 %v693_v31  ;;  %v2198_v30 = vld [vmem:[%s3162_s10] ss:$0 sm:$0xff] }
  0x5d   : > { %2369 = vmatprep.subr.mxu0 %v594_v32  ;;  %2403 = vmatpush3.msra.mxu1 %v693_v31 }
  0x5e   : > { %2370 = vmatpush3.msra.mxu0 %v594_v32  ;;  %2404 = vmatprep.subr.mxu1 %v692_v33 }
  0x5f   : > { %2371 = vmatprep.subr.mxu0 %v593_v34  ;;  %2405 = vmatpush3.msra.mxu1 %v692_v33 }
  0x60   : > { %2372 = vmatpush3.msra.mxu0 %v593_v34  ;;  %2406 = vmatprep.subr.mxu1 %v691_v35 }
  0x61   : > { %2373 = vmatprep.subr.mxu0 %v592_v36  ;;  %2407 = vmatpush3.msra.mxu1 %v691_v35  ;;  %v3020_v35 = vld [vmem:[%s536_s30 + $0x8] sm:$0xff] }
  0x62   : > { %2374 = vmatpush3.msra.mxu0 %v592_v36  ;;  %2408 = vmatprep.subr.mxu1 %v690_v37  ;;  %v3022_v36 = vld [vmem:[%s536_s30] sm:$0xff]  ;;  %vm1000_vm5 = vcmp.eq.f32.partialorder %v3020_v35, 0.0 }
  0x63   : > { %2375 = vmatprep.subr.mxu0 %v591_v38  ;;  %2409 = vmatpush3.msra.mxu1 %v690_v37  ;;  %vm999_vm7 = vcmp.eq.f32.partialorder %v3022_v36, 0.0  ;;  %v895_v36 = vld [vmem:[#allocation9 + $0x58] sm:$0xff] }
  0x64   : > { %2376 = vmatpush3.msra.mxu0 %v591_v38  ;;  %2410 = vmatprep.subr.mxu1 %v689_v39 }
  0x65   : > { %2377 = vmatprep.subr.mxu0 %v590_v40  ;;  %2411 = vmatpush3.msra.mxu1 %v689_v39 }
  0x66   : > { %2378 = vmatpush3.msra.mxu0 %v590_v40  ;;  %2412 = vmatprep.subr.mxu1 %v688_v41 }
  0x67   : > { %2413 = vmatpush3.msra.mxu1 %v688_v41  ;;  %2417 = vmatprep.subr.mxu0 %v801_v42 }
  0xd4   : > { %v545_v2 = vpop.xlane.xlu0 %544 }
  0xd5   : > { %v549_v3 = vmul.f32 0.0078125, %v545_v2 }
  0xd7   : > { %v2969_v4 = vsub.f32 %v542_v0, %v549_v3 }
  0xd8   : > { %v547_v5 = vpop.xlane.xlu0 %546 }
  0xd9   : > { %v550_v6 = vmul.f32 0.0078125, %v547_v5  ;;  %v553_v7 = vmul.f32 %v2969_v4, %v2969_v4  ;;  %v564_v60 = vmul.f32 %v563_v59, %v2969_v4  ;;  %v798_v4 = vld [vmem:[#allocation8 + $0x60] sm:$0xff] }
  0xdb   : > { %v2973_v8 = vsub.f32 %v543_v1, %v550_v6  ;;  %555 = vadd.xlane.f32.xlu1 %v553_v7  ;;  %v800_v6 = vld [vmem:[#allocation8 + $0x70] sm:$0xff]  ;;  %v799_v7 = vld [vmem:[#allocation8 + $0x68] sm:$0xff] }
  0xdd   : > { %v554_v9 = vmul.f32 %v2973_v8, %v2973_v8  ;;  %v565_v0 = vmul.f32 %v563_v59, %v2973_v8  ;;  %v796_v8 = vld [vmem:[#allocation8 + $0x50] sm:$0xff] }
  0xdf   : > { %557 = vadd.xlane.f32.xlu1 %v554_v9  ;;  %v797_v9 = vld [vmem:[#allocation8 + $0x58] sm:$0xff] }
 0x164   : > { %v556_v43 = vpop.xlane.xlu1 %555 }
 0x165   : > { %v560_v44 = vmul.f32 0.007874016, %v556_v43 }
 0x167   : > { %2606 = vrsqrt.f32 %v560_v44  ;;  %vm568_vm0 = vcmp.eq.f32.partialorder %v560_v44, inf  ;;  %v571_v49 = vand.u32 2147483648, %v560_v44  ;;  %vm570_vm1 = vcmp.eq.f32.partialorder %v560_v44, 0.0 }
 0x168   : > { %v558_v45 = vpop.xlane.xlu1 %557 }
 0x169   : > { %v561_v46 = vmul.f32 0.007874016, %v558_v45 }
 0x16b   : > { %2608 = vrsqrt.f32 %v561_v46  ;;  %vm575_vm2 = vcmp.eq.f32.partialorder %v561_v46, inf  ;;  %v578_v55 = vand.u32 2147483648, %v561_v46  ;;  %vm577_vm3 = vcmp.eq.f32.partialorder %v561_v46, 0.0 }
 0x174   : > { %v2607_v47 = vpop.eup %2606 }
 0x175   : > { %v567_v48 = vmul.f32 %v2607_v47, %v560_v44 }
 0x177   : > { %v569_v50 = vsel %vm568_vm0, %v560_v44, %v567_v48 }
 0x178   : > { %v2609_v51 = vpop.eup %2608  ;;  %v572_v52 = vsel %vm570_vm1, %v571_v49, %v569_v50 }
 0x179   : > { %v574_v53 = vmul.f32 %v2609_v51, %v561_v46  ;;  %v580_v54 = vadd.f32 1e-06, %v572_v52 }
 0x17b   : > { %v576_v56 = vsel %vm575_vm2, %v561_v46, %v574_v53  ;;  %2610 = vrcp.f32 %v580_v54 }
 0x17c   : > { %v579_v57 = vsel %vm577_vm3, %v578_v55, %v576_v56  ;;  %v887_v55 = vld [vmem:[#allocation9 + $0x18] sm:$0xff] }
 0x17d   : > { %v581_v58 = vadd.f32 1e-06, %v579_v57 }
 0x17f   : > { %2612 = vrcp.f32 %v581_v58 }
 0x188   : > { %v2611_v61 = vpop.eup %2610 }
 0x189   : > { %v583_v63 = vmul.f32 %v2611_v61, %v564_v60 }
 0x18b   : > { %v588_v1 = vadd.f32 %v587_v62, %v583_v63  ;;  %v885_v63 = vld [vmem:[#allocation9 + $0x8] sm:$0xff] }
 0x18c   : > { %v2613_v2 = vpop.eup %2612 }
 0x18d   : > { %2379 = vmatprep.mubr.f32.mxu0 %v588_v1  ;;  %2414 = vmatprep.mubr.f32.mxu1 %v588_v1  ;;  %v585_v3 = vmul.f32 %v2613_v2, %v565_v0  ;;  %v884_v0 = vld [vmem:[#allocation9] sm:$0xff] }
 0x18f   : > { %v589_v5 = vadd.f32 %v587_v62, %v585_v3  ;;  %v886_v62 = vld [vmem:[#allocation9 + $0x10] sm:$0xff] }
 0x191   : > { %2380 = vmatmul.mubr.f32.vlgmr.msra.gmra.mxu0 %v589_v5  ;;  %2415 = vmatmul.mubr.f32.vlgmr.msra.gmra.mxu1 %v589_v5 }
 0x192   : > { %2418 = vmatpush3.msra.mxu0 %v801_v42  ;;  %2449 = vmatprep.mubr.f32.mxu0 %v588_v1 }
 0x193   : > { %2419 = vmatprep.subr.mxu0 %v800_v6 }
 0x194   : > { %2420 = vmatpush3.msra.mxu0 %v800_v6 }
 0x195   : > { %2421 = vmatprep.subr.mxu0 %v799_v7 }
 0x196   : > { %2422 = vmatpush3.msra.mxu0 %v799_v7 }
 0x197   : > { %2423 = vmatprep.subr.mxu0 %v798_v4 }
 0x198   : > { %2424 = vmatpush3.msra.mxu0 %v798_v4 }
 0x199   : > { %2425 = vmatprep.subr.mxu0 %v797_v9 }
 0x19a   : > { %2426 = vmatpush3.msra.mxu0 %v797_v9 }
 0x19b   : > { %2427 = vmatprep.subr.mxu0 %v796_v8 }
 0x19c   : > { %2428 = vmatpush3.msra.mxu0 %v796_v8 }
 0x19d   : > { %2429 = vmatprep.subr.mxu0 %v795_v10 }
 0x19e   : > { %2430 = vmatpush3.msra.mxu0 %v795_v10 }
 0x19f   : > { %2431 = vmatprep.subr.mxu0 %v794_v11 }
 0x1a0   : > { %2432 = vmatpush3.msra.mxu0 %v794_v11 }
 0x1a1   : > { %2433 = vmatprep.subr.mxu0 %v793_v12 }
 0x1a2   : > { %2434 = vmatpush3.msra.mxu0 %v793_v12 }
 0x1a3   : > { %2435 = vmatprep.subr.mxu0 %v792_v13 }
 0x1a4   : > { %2436 = vmatpush3.msra.mxu0 %v792_v13 }
 0x1a5   : > { %2437 = vmatprep.subr.mxu0 %v791_v14 }
 0x1a6   : > { %2438 = vmatpush3.msra.mxu0 %v791_v14 }
 0x1a7   : > { %2439 = vmatprep.subr.mxu0 %v790_v15 }
 0x1a8   : > { %2440 = vmatpush3.msra.mxu0 %v790_v15 }
 0x1a9   : > { %2441 = vmatprep.subr.mxu0 %v789_v16 }
 0x1aa   : > { %2442 = vmatpush3.msra.mxu0 %v789_v16 }
 0x1ab   : > { %2443 = vmatprep.subr.mxu0 %v788_v17 }
 0x1ac   : > { %2444 = vmatpush3.msra.mxu0 %v788_v17 }
 0x1ad   : > { %2445 = vmatprep.subr.mxu0 %v787_v18 }
 0x1ae   : > { %2446 = vmatpush3.msra.mxu0 %v787_v18 }
 0x1af   : > { %2447 = vmatprep.subr.mxu0 %v786_v19 }
 0x1b0   : > { %2448 = vmatpush3.msra.mxu0 %v786_v19 }
 0x1b1   : > { %2450 = vmatmul.mubr.f32.vlgmr.msra.gmra.mxu0 %v589_v5 }
 0x251   : > { %v2381_v21 = vpop.f32.mrf.mxu0  ;;  %v2416_v22 = vpop.f32.mrf.mxu1 }
 0x252   : > { %v2982_v23 = vadd.f32 %v2416_v22, %v2197_v20  ;;  %v3001_v29 = vadd.f32 %v2381_v21, %v2196_v24 }
 0x253   : > { %v679_v25 = vpop.f32.mrf.mxu0  ;;  %v777_v26 = vpop.f32.mrf.mxu1 }
 0x254   : > { %v2987_v27 = vadd.f32 %v2196_v24, %v679_v25  ;;  %v2989_v28 = vadd.f32 %v2197_v20, %v777_v26  ;;  %2452 = vmatprep.subr.msk.mxu1 %vm909_vm4, %v2982_v23 }
 0x255   : > { %2453 = vmatpush3.xpose.msk.msra.mxu1 %vm909_vm4, %v2982_v23 }
 0x256   : > { %2454 = vmatprep.subr.msk.mxu1 %vm909_vm4, %v2989_v28  ;;  %2456 = vmatprep.mubr.msk.f32.mxu1 %vm909_vm4, %v2987_v27 }
 0x259   : > { %2455 = vmatpush3.xpose.msk.msra.mxu1 %vm909_vm4, %v2989_v28 }
 0x25c   : > { %2457 = vmatmul.mubr.msk.f32.vlgmr.msra.gmra.mxu1 %vm909_vm4, %v3001_v29 }
 0x271   : > { %v2451_v31 = vpop.f32.mrf.mxu0 }
 0x272   : > { %v3008_v32 = vadd.f32 %v2451_v31, %v2198_v30  ;;  %v889_v31 = vld [vmem:[#allocation9 + $0x28] sm:$0xff] }
 0x273   : > { %v875_v33 = vpop.f32.mrf.mxu0 }
 0x274   : > { %v3010_v34 = vadd.f32 %v2198_v30, %v875_v33  ;;  %2459 = vmatprep.subr.mxu1 %v3008_v32  ;;  %v888_v33 = vld [vmem:[#allocation9 + $0x20] sm:$0xff] }
 0x275   : > { %2460 = vmatpush3.msra.mxu1 %v3008_v32 }
 0x276   : > { %2461 = vmatprep.subr.mxu1 %v3010_v34 }
 0x277   : > { %2462 = vmatpush3.msra.mxu1 %v3010_v34 }
 0x278   : > { %2466 = vmatprep.subr.mxu1 %v887_v55 }
 0x31c   : > { %v2458_v37 = vpop.f32.mrf.mxu1 }
 0x31d   : > { %v998_v38 = vmul.f32 0.17677669, %v2458_v37 }
 0x31e   : > { %v988_v39 = vpop.f32.mrf.mxu1 }
 0x31f   : > { %v997_v40 = vmul.f32 0.17677669, %v988_v39  ;;  %v1002_v41 = vsel %vm1000_vm5, -1e+09, %v998_v38 }
 0x320   : > { %v1007_v42 = vsel %vm1003_vm6, %v1002_v41, -inf }
 0x321   : > { %1008 = vmax.xlane.f32.xlu1 %v1007_v42  ;;  %v1001_v43 = vsel %vm999_vm7, -1e+09, %v997_v40 }
 0x322   : > { %v1004_v44 = vsel %vm1003_vm6, %v1001_v43, -inf }
 0x323   : > { %1005 = vmax.xlane.f32.xlu0 %v1004_v44 }
 0x3aa   : > { %v1009_v45 = vpop.xlane.xlu1 %1008 }
 0x3ab   : > { %v1011_v46 = vsub.f32 %v1002_v41, %v1009_v45 }
 0x3ac   : > { %v1006_v47 = vpop.xlane.xlu0 %1005 }
 0x3ad   : > { %v1014_v48 = vmul.f32 1.442695, %v1011_v46  ;;  %v1010_v49 = vsub.f32 %v1001_v43, %v1006_v47 }
 0x3af   : > { %2614 = vpow2.f32 %v1014_v48  ;;  %v1012_v50 = vmul.f32 1.442695, %v1010_v49 }
 0x3b1   : > { %2616 = vpow2.f32 %v1012_v50 }
 0x3bc   : > { %v2615_v51 = vpop.eup %2614 }
 0x3bd   : > { %v1019_v52 = vsel %vm1003_vm6, %v2615_v51, 0.0 }
 0x3be   : > { %v2617_v53 = vpop.eup %2616  ;;  %1020 = vadd.xlane.f32.xlu1 %v1019_v52 }
 0x3bf   : > { %v1016_v54 = vsel %vm1003_vm6, %v2617_v53, 0.0 }
 0x3c0   : > { %1017 = vadd.xlane.f32.xlu0 %v1016_v54 }
 0x3cf   : > { %1194 = vrot.lane.b32.xlu1 %v2989_v28, %s2778_s1 }
 0x3d3   : > { %1190 = vrot.lane.b32.xlu1 %v2987_v27, %s2778_s1 }
 0x3d6   : > { %1196 = vrot.lane.b32.xlu0 %v2982_v23, %s2778_s1 }
 0x3d7   : > { %1192 = vrot.lane.b32.xlu1 %v3001_v29, %s2778_s1 }
 0x447   : > { %v1021_v56 = vpop.xlane.xlu1 %1020 }
 0x448   : > { %2618 = vrcp.f32 %v1021_v56 }
 0x449   : > { %v1018_v57 = vpop.xlane.xlu0 %1017 }
 0x44a   : > { %2620 = vrcp.f32 %v1018_v57 }
 0x44b   : > { %v1195_v2 = vpop.permute.xlu1 %1194 }
 0x44d   : > { %v1197_v1 = vpop.permute.xlu0 %1196 }
 0x44f   : > { %v1191_v6 = vpop.permute.xlu1 %1190 }
 0x453   : > { %v1193_v7 = vpop.permute.xlu1 %1192 }
 0x455   : > { %v2619_v58 = vpop.eup %2618 }
 0x456   : > { %v1025_v61 = vmul.f32 %v2619_v58, %v2615_v51 }
 0x457   : > { %v2621_v59 = vpop.eup %2620 }
 0x458   : > { %v1024_v60 = vmul.f32 %v2621_v59, %v2617_v53 }
 0x45a   : > { %2463 = vmatprep.mubr.msk.f32.mxu1 %vm1003_vm6, %v1024_v60 }
 0x45b   : > { %2464 = vmatmul.mubr.msk.f32.vlgmr.msra.gmra.mxu1 %vm1003_vm6, %v1025_v61 }
 0x45c   : > { %2467 = vmatpush3.msra.mxu1 %v887_v55 }
 0x45d   : > { %2468 = vmatprep.subr.mxu1 %v886_v62 }
 0x45e   : > { %2469 = vmatpush3.msra.mxu1 %v886_v62 }
 0x45f   : > { %2470 = vmatprep.subr.mxu1 %v885_v63 }
 0x460   : > { %2471 = vmatpush3.msra.mxu1 %v885_v63 }
 0x461   : > { %2472 = vmatprep.subr.mxu1 %v884_v0 }
 0x462   : > { %2473 = vmatpush3.msra.mxu1 %v884_v0 }
 0x463   : > { %2477 = vmatprep.subr.msk.mxu1 %vm909_vm4, %v1197_v1 }
 0x51b   : > { %v2465_v3 = vpop.f32.mrf.mxu1 }
 0x51d   : > { %v1098_v5 = vpop.f32.mrf.mxu1 }
 0x51e   : > { %2474 = vmatprep.mubr.msk.f32.mxu1 %vm909_vm4, %v1098_v5 }
 0x51f   : > { %2475 = vmatmul.mubr.msk.f32.vlgmr.msra.gmra.mxu1 %vm909_vm4, %v2465_v3 }
 0x520   : > { %2478 = vmatpush3.xpose.msk.msra.mxu1 %vm909_vm4, %v1197_v1  ;;  %2481 = vmatprep.mubr.msk.f32.mxu1 %vm909_vm4, %v1191_v6 }
 0x521   : > { %2479 = vmatprep.subr.msk.mxu1 %vm909_vm4, %v1195_v2 }
 0x524   : > { %2480 = vmatpush3.xpose.msk.msra.mxu1 %vm909_vm4, %v1195_v2 }
 0x527   : > { %2482 = vmatmul.mubr.msk.f32.vlgmr.msra.gmra.mxu1 %vm909_vm4, %v1193_v7 }
 0x5df   : > { %v3052_v4 = vpop.f32.mrf.mxu1 }
 0x5e1   : > { %v3054_v9 = vpop.f32.mrf.mxu1 }
 0x5e7   : > { %v2483_v8 = vpop.f32.mrf.mxu1 }
 0x5e8   : > { %v1282_v10 = vmul.f32 0.17677669, %v2483_v8  ;;  %v2199_v8 = vld [vmem:[%s3164_s12] ss:$0 sm:$0xff] }
 0x5e9   : > { %v1272_v11 = vpop.f32.mrf.mxu1 }
 0x5ea   : > { %v1281_v12 = vmul.f32 0.17677669, %v1272_v11  ;;  %v1284_v13 = vsel %vm1000_vm5, -1e+09, %v1282_v10  ;;  %v1189_v10 = vadd.f32 %v3052_v4, %v2199_v8 }
 0x5eb   : > { %v1288_v14 = vsel %vm1003_vm6, %v1284_v13, -inf }
 0x5ec   : > { %1289 = vmax.xlane.f32.xlu1 %v1288_v14  ;;  %v1283_v15 = vsel %vm999_vm7, -1e+09, %v1281_v12  ;;  %v1188_v12 = vadd.f32 %v2199_v8, %v3054_v9 }
 0x5ed   : > { %v1285_v16 = vsel %vm1003_vm6, %v1283_v15, -inf }
 0x5ee   : > { %1286 = vmax.xlane.f32.xlu0 %v1285_v16 }
 0x5fd   : > { %1309 = vrot.lane.b32.xlu1 %v3010_v34, %s2778_s1 }
 0x601   : > { %1485 = vrot.lane.b32.xlu1 %v2982_v23, %s2779_s14 }
 0x605   : > { %1483 = vrot.lane.b32.xlu1 %v2989_v28, %s2779_s14 }
 0x609   : > { %1481 = vrot.lane.b32.xlu1 %v3001_v29, %s2779_s14 }
 0x60d   : > { %1770 = vrot.lane.b32.xlu1 %v2989_v28, %s2780_s16  ;;  %v891_v28 = vld [vmem:[#allocation9 + $0x38] sm:$0xff] }
 0x60e   : > { %2491 = vmatprep.subr.mxu0 %v891_v28 }
 0x60f   : > { %2492 = vmatpush3.msra.mxu0 %v891_v28 }
 0x611   : > { %1768 = vrot.lane.b32.xlu1 %v3001_v29, %s2780_s16  ;;  %v890_v29 = vld [vmem:[#allocation9 + $0x30] sm:$0xff] }
 0x612   : > { %2493 = vmatprep.subr.mxu0 %v890_v29 }
 0x613   : > { %2494 = vmatpush3.msra.mxu0 %v890_v29 }
 0x614   : > { %2495 = vmatprep.subr.mxu0 %v889_v31 }
 0x615   : > { %2496 = vmatpush3.msra.mxu0 %v889_v31  ;;  %v894_v31 = vld [vmem:[#allocation9 + $0x50] sm:$0xff] }
 0x616   : > { %2497 = vmatprep.subr.mxu0 %v888_v33 }
 0x617   : > { %2498 = vmatpush3.msra.mxu0 %v888_v33 }
 0x675   : > { %v1290_v17 = vpop.xlane.xlu1 %1289 }
 0x676   : > { %v1292_v18 = vsub.f32 %v1284_v13, %v1290_v17 }
 0x677   : > { %v1287_v19 = vpop.xlane.xlu0 %1286 }
 0x678   : > { %v1295_v20 = vmul.f32 1.442695, %v1292_v18  ;;  %v1291_v21 = vsub.f32 %v1283_v15, %v1287_v19 }
 0x679   : > { %v1310_v39 = vpop.permute.xlu1 %1309 }
 0x67a   : > { %2622 = vpow2.f32 %v1295_v20  ;;  %v1293_v22 = vmul.f32 1.442695, %v1291_v21 }
 0x67c   : > { %2624 = vpow2.f32 %v1293_v22 }
 0x67d   : > { %v1486_v41 = vpop.permute.xlu1 %1485 }
 0x681   : > { %v1484_v46 = vpop.permute.xlu1 %1483 }
 0x685   : > { %v1482_v47 = vpop.permute.xlu1 %1481 }
 0x687   : > { %v2623_v24 = vpop.eup %2622 }
 0x688   : > { %v1300_v25 = vsel %vm1003_vm6, %v2623_v24, 0.0 }
 0x689   : > { %v2625_v26 = vpop.eup %2624  ;;  %1301 = vadd.xlane.f32.xlu0 %v1300_v25  ;;  %v1771_v51 = vpop.permute.xlu1 %1770 }
 0x68a   : > { %v1297_v30 = vsel %vm1003_vm6, %v2625_v26, 0.0 }
 0x68d   : > { %1298 = vadd.xlane.f32.xlu0 %v1297_v30  ;;  %v1769_v55 = vpop.permute.xlu1 %1768 }
 0x6a3   : > { %1311 = vrot.lane.b32.xlu0 %v3008_v32, %s2778_s1 }
 0x6a7   : > { %1479 = vrot.lane.b32.xlu0 %v2987_v27, %s2779_s14 }
 0x6ab   : > { %1772 = vrot.lane.b32.xlu0 %v2982_v23, %s2780_s16 }
 0x6af   : > { %1766 = vrot.lane.b32.xlu0 %v2987_v27, %s2780_s16 }
 0x712   : > { %v1302_v37 = vpop.xlane.xlu0 %1301 }
 0x713   : > { %2626 = vrcp.f32 %v1302_v37 }
 0x716   : > { %v1299_v38 = vpop.xlane.xlu0 %1298 }
 0x717   : > { %2628 = vrcp.f32 %v1299_v38 }
 0x71a   : > { %v1312_v40 = vpop.permute.xlu0 %1311 }
 0x71b   : > { %2484 = vmatprep.subr.mxu1 %v1312_v40 }
 0x71c   : > { %2485 = vmatpush3.msra.mxu1 %v1312_v40 }
 0x71d   : > { %2486 = vmatprep.subr.mxu1 %v1310_v39 }
 0x71e   : > { %2487 = vmatpush3.msra.mxu1 %v1310_v39  ;;  %v1480_v42 = vpop.permute.xlu0 %1479 }
 0x71f   : > { %2502 = vmatprep.subr.msk.mxu1 %vm909_vm4, %v1486_v41 }
 0x720   : > { %v2627_v44 = vpop.eup %2626 }
 0x721   : > { %v1306_v45 = vmul.f32 %v2627_v44, %v2623_v24  ;;  %v893_v44 = vld [vmem:[#allocation9 + $0x48] sm:$0xff] }
 0x722   : > { %v1773_v43 = vpop.permute.xlu0 %1772 }
 0x723   : > { %2527 = vmatprep.subr.msk.mxu0 %vm909_vm4, %v1773_v43 }
 0x724   : > { %v2629_v23 = vpop.eup %2628 }
 0x725   : > { %v1305_v27 = vmul.f32 %v2629_v23, %v2625_v26  ;;  %v892_v23 = vld [vmem:[#allocation9 + $0x40] sm:$0xff] }
 0x726   : > { %v1767_v50 = vpop.permute.xlu0 %1766 }
 0x727   : > { %2488 = vmatprep.mubr.msk.f32.mxu1 %vm1003_vm6, %v1305_v27 }
 0x728   : > { %2489 = vmatmul.mubr.msk.f32.vlgmr.msra.gmra.mxu1 %vm1003_vm6, %v1306_v45 }
 0x729   : > { %2503 = vmatpush3.xpose.msk.msra.mxu1 %vm909_vm4, %v1486_v41  ;;  %2506 = vmatprep.mubr.msk.f32.mxu1 %vm909_vm4, %v1480_v42 }
 0x72a   : > { %2504 = vmatprep.subr.msk.mxu1 %vm909_vm4, %v1484_v46 }
 0x72d   : > { %2505 = vmatpush3.xpose.msk.msra.mxu1 %vm909_vm4, %v1484_v46 }
 0x730   : > { %2507 = vmatmul.mubr.msk.f32.vlgmr.msra.gmra.mxu1 %vm909_vm4, %v1482_v47 }
 0x7e8   : > { %v2490_v48 = vpop.f32.mrf.mxu1 }
 0x7ea   : > { %v1387_v49 = vpop.f32.mrf.mxu1 }
 0x7eb   : > { %2499 = vmatprep.mubr.msk.f32.mxu0 %vm909_vm4, %v1387_v49 }
 0x7ec   : > { %2500 = vmatmul.mubr.msk.f32.vlgmr.msra.gmra.mxu0 %vm909_vm4, %v2490_v48 }
 0x7ed   : > { %2528 = vmatpush3.xpose.msk.msra.mxu0 %vm909_vm4, %v1773_v43  ;;  %2531 = vmatprep.mubr.msk.f32.mxu0 %vm909_vm4, %v1767_v50 }
 0x7ee   : > { %2529 = vmatprep.subr.msk.mxu0 %vm909_vm4, %v1771_v51 }
 0x7f0   : > { %v2508_v52 = vpop.f32.mrf.mxu1 }
 0x7f1   : > { %v1571_v53 = vmul.f32 0.17677669, %v2508_v52  ;;  %2530 = vmatpush3.xpose.msk.msra.mxu0 %vm909_vm4, %v1771_v51 }
 0x7f2   : > { %v1561_v54 = vpop.f32.mrf.mxu1 }
 0x7f3   : > { %v1570_v56 = vmul.f32 0.17677669, %v1561_v54  ;;  %v1573_v57 = vsel %vm1000_vm5, -1e+09, %v1571_v53  ;;  %v899_v54 = vld [vmem:[#allocation9 + $0x78] sm:$0xff] }
 0x7f4   : > { %2532 = vmatmul.mubr.msk.f32.vlgmr.msra.gmra.mxu0 %vm909_vm4, %v1769_v55  ;;  %v1577_v58 = vsel %vm1003_vm6, %v1573_v57, -inf  ;;  %v898_v55 = vld [vmem:[#allocation9 + $0x70] sm:$0xff]  ;;  %2541 = vmatprep.subr.mxu0 %v899_v54 }
 0x7f5   : > { %1578 = vmax.xlane.f32.xlu1 %v1577_v58  ;;  %v1572_v59 = vsel %vm999_vm7, -1e+09, %v1570_v56  ;;  %2542 = vmatpush3.msra.mxu0 %v899_v54  ;;  %v897_v56 = vld [vmem:[#allocation9 + $0x68] sm:$0xff] }
 0x7f6   : > { %v1574_v60 = vsel %vm1003_vm6, %v1572_v59, -inf  ;;  %2543 = vmatprep.subr.mxu0 %v898_v55 }
 0x7f7   : > { %1575 = vmax.xlane.f32.xlu0 %v1574_v60  ;;  %2544 = vmatpush3.msra.mxu0 %v898_v55 }
 0x7f8   : > { %2545 = vmatprep.subr.mxu0 %v897_v56 }
 0x7f9   : > { %2546 = vmatpush3.msra.mxu0 %v897_v56 }
 0x806   : > { %1596 = vrot.lane.b32.xlu1 %v3010_v34, %s2779_s14 }
 0x87e   : > { %v1579_v61 = vpop.xlane.xlu1 %1578 }
 0x87f   : > { %v1581_v62 = vsub.f32 %v1573_v57, %v1579_v61  ;;  %v896_v57 = vld [vmem:[#allocation9 + $0x60] sm:$0xff] }
 0x880   : > { %v1576_v63 = vpop.xlane.xlu0 %1575  ;;  %2547 = vmatprep.subr.mxu0 %v896_v57 }
 0x881   : > { %v1584_v0 = vmul.f32 1.442695, %v1581_v62  ;;  %v1580_v1 = vsub.f32 %v1572_v59, %v1576_v63  ;;  %2548 = vmatpush3.msra.mxu0 %v896_v57 }
 0x882   : > { %v1597_v26 = vpop.permute.xlu1 %1596 }
 0x883   : > { %2630 = vpow2.f32 %v1584_v0  ;;  %v1582_v2 = vmul.f32 1.442695, %v1580_v1 }
 0x885   : > { %2632 = vpow2.f32 %v1582_v2 }
 0x890   : > { %v2631_v3 = vpop.eup %2630 }
 0x891   : > { %v1589_v5 = vsel %vm1003_vm6, %v2631_v3, 0.0 }
 0x892   : > { %v2633_v6 = vpop.eup %2632  ;;  %1590 = vadd.xlane.f32.xlu0 %v1589_v5 }
 0x893   : > { %v1586_v7 = vsel %vm1003_vm6, %v2633_v6, 0.0 }
 0x896   : > { %1587 = vadd.xlane.f32.xlu0 %v1586_v7  ;;  %v2647_v7 = vld [vmem:[%s2965_s19] sm:$0xff] }
 0x8ac   : > { %1598 = vrot.lane.b32.xlu0 %v3008_v32, %s2779_s14  ;;  %v2501_v11 = vpop.f32.mrf.mxu0 }
 0x8ad   : > { %v3117_v13 = vadd.f32 %v2501_v11, %v1189_v10 }
 0x8ae   : > { %v1468_v14 = vpop.f32.mrf.mxu0 }
 0x8af   : > { %v3119_v15 = vadd.f32 %v1468_v14, %v1188_v12 }
 0x8b4   : > { %v2533_v16 = vpop.f32.mrf.mxu0 }
 0x8b5   : > { %v1858_v4 = vmul.f32 0.17677669, %v2533_v16 }
 0x8b6   : > { %v1848_v17 = vpop.f32.mrf.mxu0 }
 0x8b7   : > { %v1857_v18 = vmul.f32 0.17677669, %v1848_v17  ;;  %v1860_v21 = vsel %vm1000_vm5, -1e+09, %v1858_v4 }
 0x8b8   : > { %v1864_v9 = vsel %vm1003_vm6, %v1860_v21, -inf }
 0x8b9   : > { %v1859_v19 = vsel %vm999_vm7, -1e+09, %v1857_v18 }
 0x8ba   : > { %v1861_v20 = vsel %vm1003_vm6, %v1859_v19, -inf }
 0x8bb   : > { %1862 = vmax.xlane.f32.xlu1 %v1861_v20 }
 0x8cb   : > { %1865 = vmax.xlane.f32.xlu0 %v1864_v9 }
 0x91b   : > { %v1591_v22 = vpop.xlane.xlu0 %1590 }
 0x91c   : > { %2634 = vrcp.f32 %v1591_v22 }
 0x91f   : > { %v1588_v24 = vpop.xlane.xlu0 %1587 }
 0x920   : > { %2636 = vrcp.f32 %v1588_v24 }
 0x923   : > { %v1599_v25 = vpop.permute.xlu0 %1598 }
 0x924   : > { %2509 = vmatprep.subr.mxu1 %v1599_v25 }
 0x925   : > { %2510 = vmatpush3.msra.mxu1 %v1599_v25 }
 0x926   : > { %2511 = vmatprep.subr.mxu1 %v1597_v26 }
 0x927   : > { %2512 = vmatpush3.msra.mxu1 %v1597_v26 }
 0x928   : > { %2516 = vmatprep.subr.mxu1 %v895_v36 }
 0x929   : > { %v2635_v30 = vpop.eup %2634 }
 0x92a   : > { %v1595_v35 = vmul.f32 %v2635_v30, %v2631_v3  ;;  %v2646_v3 = vld [vmem:[%s2965_s19 + $0x8] sm:$0xff] }
 0x92d   : > { %v2637_v28 = vpop.eup %2636 }
 0x92e   : > { %v1594_v29 = vmul.f32 %v2637_v28, %v2633_v6 }
 0x930   : > { %2513 = vmatprep.mubr.msk.f32.mxu1 %vm1003_vm6, %v1594_v29 }
 0x931   : > { %2514 = vmatmul.mubr.msk.f32.vlgmr.msra.gmra.mxu1 %vm1003_vm6, %v1595_v35 }
 0x932   : > { %2517 = vmatpush3.msra.mxu1 %v895_v36 }
 0x933   : > { %2518 = vmatprep.subr.mxu1 %v894_v31 }
 0x934   : > { %2519 = vmatpush3.msra.mxu1 %v894_v31 }
 0x935   : > { %2520 = vmatprep.subr.mxu1 %v893_v44 }
 0x936   : > { %2521 = vmatpush3.msra.mxu1 %v893_v44 }
 0x937   : > { %2522 = vmatprep.subr.mxu1 %v892_v23 }
 0x938   : > { %2523 = vmatpush3.msra.mxu1 %v892_v23 }
 0x944   : > { %v1863_v33 = vpop.xlane.xlu1 %1862 }
 0x945   : > { %v1867_v37 = vsub.f32 %v1859_v19, %v1863_v33 }
 0x947   : > { %v1869_v38 = vmul.f32 1.442695, %v1867_v37 }
 0x949   : > { %2638 = vpow2.f32 %v1869_v38 }
 0x954   : > { %v1866_v39 = vpop.xlane.xlu0 %1865 }
 0x955   : > { %v1868_v40 = vsub.f32 %v1860_v21, %v1866_v39 }
 0x956   : > { %v2639_v41 = vpop.eup %2638 }
 0x957   : > { %v1871_v42 = vmul.f32 1.442695, %v1868_v40  ;;  %v1873_v43 = vsel %vm1003_vm6, %v2639_v41, 0.0 }
 0x958   : > { %1874 = vadd.xlane.f32.xlu0 %v1873_v43 }
 0x959   : > { %2640 = vpow2.f32 %v1871_v42 }
 0x966   : > { %v2641_v27 = vpop.eup %2640 }
 0x967   : > { %v1876_v45 = vsel %vm1003_vm6, %v2641_v27, 0.0 }
 0x968   : > { %1877 = vadd.xlane.f32.xlu1 %v1876_v45 }
 0x96e   : > { %1885 = vrot.lane.b32.xlu0 %v3008_v32, %s2780_s16 }
 0x979   : > { %1883 = vrot.lane.b32.xlu1 %v3010_v34, %s2780_s16 }
 0x9e1   : > { %v1875_v46 = vpop.xlane.xlu0 %1874 }
 0x9e2   : > { %2642 = vrcp.f32 %v1875_v46 }
 0x9e5   : > { %v1886_v47 = vpop.permute.xlu0 %1885 }
 0x9e6   : > { %2534 = vmatprep.subr.mxu1 %v1886_v47 }
 0x9ef   : > { %v2643_v48 = vpop.eup %2642 }
 0x9f0   : > { %v1881_v52 = vmul.f32 %v2643_v48, %v2639_v41 }
 0x9f1   : > { %v2515_v49 = vpop.f32.mrf.mxu1  ;;  %v1878_v50 = vpop.xlane.xlu1 %1877 }
 0x9f2   : > { %2644 = vrcp.f32 %v1878_v50 }
 0x9f3   : > { %v1674_v51 = vpop.f32.mrf.mxu1 }
 0x9f4   : > { %2524 = vmatprep.mubr.msk.f32.mxu1 %vm909_vm4, %v1674_v51 }
 0x9f5   : > { %2525 = vmatmul.mubr.msk.f32.vlgmr.msra.gmra.mxu1 %vm909_vm4, %v2515_v49  ;;  %v1884_v53 = vpop.permute.xlu1 %1883 }
 0x9f6   : > { %2535 = vmatpush3.msra.mxu1 %v1886_v47  ;;  %2538 = vmatprep.mubr.msk.f32.mxu1 %vm1003_vm6, %v1881_v52 }
 0x9f7   : > { %2536 = vmatprep.subr.mxu1 %v1884_v53 }
 0x9f8   : > { %2537 = vmatpush3.msra.mxu1 %v1884_v53 }
 0x9ff   : > { %v2645_v32 = vpop.eup %2644 }
 0xa00   : > { %v1882_v34 = vmul.f32 %v2645_v32, %v2641_v27 }
 0xa02   : > { %2539 = vmatmul.mubr.msk.f32.vlgmr.msra.gmra.mxu1 %vm1003_vm6, %v1882_v34 }
 0xab5   : > { %v2526_v58 = vpop.f32.mrf.mxu1 }
 0xab6   : > { %v1765_v59 = vadd.f32 %v2526_v58, %v3117_v13 }
 0xab7   : > { %v1755_v60 = vpop.f32.mrf.mxu1 }
 0xab8   : > { %v1764_v61 = vadd.f32 %v1755_v60, %v3119_v15 }
 0xac2   : > { %v2540_v62 = vpop.f32.mrf.mxu1 }
 0xac4   : > { %v1961_v63 = vpop.f32.mrf.mxu1 }
 0xac5   : > { %2549 = vmatprep.mubr.msk.f32.mxu0 %vm909_vm4, %v1961_v63 }
 0xac6   : > { %2550 = vmatmul.mubr.msk.f32.vlgmr.msra.gmra.mxu0 %vm909_vm4, %v2540_v62 }
 0xb86   : > { %v2551_v0 = vpop.f32.mrf.mxu0 }
 0xb87   : > { %v2052_v1 = vadd.f32 %v2551_v0, %v1765_v59 }
 0xb88   : > { %v2042_v2 = vpop.f32.mrf.mxu0 }
 0xb89   : > { %v2054_v5 = vadd.f32 %v2646_v3, %v2052_v1  ;;  %v2051_v6 = vadd.f32 %v2042_v2, %v1764_v61 }
 0xb8b   : > { %2056 = vst [vmem:[%s541_s20 + $0x8] sm:$0xff] %v2054_v5  ;;  %v2053_v8 = vadd.f32 %v2647_v7, %v2051_v6 }
 0xb8d   : > { %2055 = vst [vmem:[%s541_s20] sm:$0xff] %v2053_v8 }
 0xb8e PF: > { %s28_s28 = sadd.s32 1, %s2770_s28  }
 0xb8f   : > { %p25_p2 = scmp.ge.s32.totalorder %s28_s28, 4  }
 0xb91   :  { %27 = sbr.rel (!%p25_p2) target bundleno = 6 (0x6), region = 125 }
 0xb96   :  { %2078 = vsyncpa [#allocation5], 1 }
 0xb97   :  { %2080 = vsyncpa [#allocation5 + $0x1], 1 }
 0xb98   :  { %2081 = vsyncpa [#allocation7], 1 }
 0xb99   :  { %2082 = vsyncpa [#allocation10], 1 }

// kernel: decoder_forward.13
= control target key start
LH: loop header
LB: loop body
LE: loop exit
PB: predicated region body
PF: predicated region fallthrough
CT: control target
= control target key end

     0   :  { %s227_s0 = inlined_call_operand.vmem [shape: f32[32,128], index: 0, kind: input, shape index: {}]   ;;  %s228_s1 = inlined_call_operand.<no memory space> [shape: f32[1], index: 1, kind: input, shape index: {}]   ;;  %s229_s2 = inlined_call_operand.<no memory space> [shape: f32[1], index: 2, kind: input, shape index: {}]   ;;  %s230_s3 = inlined_call_operand.hbm [shape: f32[32,128], index: 3, kind: output, shape index: {}]  }
   0x1   :  { %v17_v0 = vld [vmem:[%s227_s0] sm:$0xff]  ;;  %v19_v1 = vld [vmem:[%s227_s0 + $0x10] sm:$0xff] }
   0x2   :  { %21 = vadd.xlane.f32.xlu0 %v17_v0  ;;  %25 = vadd.xlane.f32.xlu1 %v19_v1 }
   0x3   :  { %10 = vsyncpa [#allocation5], 0  ;;  %v18_v2 = vld [vmem:[%s227_s0 + $0x8] sm:$0xff]  ;;  %v20_v3 = vld [vmem:[%s227_s0 + $0x18] sm:$0xff]  ;;  %v56_v52 = vstv %s228_s1  ;;  %v102_v55 = vstv %s229_s2  ;;  %s168_s1 = smov [#allocation4]  }
   0x4   :  { %s116_s23 = sshll.u32 %s168_s1, 4  ;;  %s117_s23 = int_to_ptr.vmem [resolvable:$true] %s116_s23 }
   0x5   :  { %s146_s2 = scalar_lea.vmem %s117_s23, 512  ;;  %p151_p1 = scmp.lt.s32.totalorder %s117_s23, %s117_s23 }
   0x6   :  { %23 = vadd.xlane.f32.xlu0 %v18_v2  ;;  %27 = vadd.xlane.f32.xlu1 %v20_v3  ;;  %p147_p0 = scmp.ne.s32.totalorder %s117_s23, %s146_s2  ;;  %p152_p2 = scmp.lt.s32.totalorder %s146_s2, %s146_s2 }
   0x8   :  { %p153_p3 = por %p152_p2, %p151_p1 }
   0xa   :  { %p154_p4 = pnand %p153_p3, %p147_p0 }
  0x8b   :  { %v22_v4 = vpop.xlane.xlu0 %21  ;;  %v26_v5 = vpop.xlane.xlu1 %25 }
  0x8c   :  { %v30_v6 = vmul.f32 0.0078125, %v22_v4  ;;  %v32_v7 = vmul.f32 0.0078125, %v26_v5 }
  0x8e   :  { %v203_v8 = vsub.f32 %v17_v0, %v30_v6  ;;  %v205_v9 = vsub.f32 %v19_v1, %v32_v7 }
  0x8f   :  { %v24_v10 = vpop.xlane.xlu0 %23  ;;  %v28_v11 = vpop.xlane.xlu1 %27 }
  0x90   :  { %v31_v12 = vmul.f32 0.0078125, %v24_v10  ;;  %v38_v13 = vmul.f32 %v203_v8, %v203_v8  ;;  %v33_v14 = vmul.f32 0.0078125, %v28_v11  ;;  %v40_v16 = vmul.f32 %v205_v9, %v205_v9 }
  0x91   :  { %v57_v53 = vmul.f32 %v56_v52, %v203_v8  ;;  %v59_v60 = vmul.f32 %v56_v52, %v205_v9 }
  0x92   :  { %v35_v15 = vsub.f32 %v18_v2, %v31_v12  ;;  %42 = vadd.xlane.f32.xlu0 %v38_v13  ;;  %v211_v17 = vsub.f32 %v20_v3, %v33_v14 }
  0x94   :  { %v39_v18 = vmul.f32 %v35_v15, %v35_v15  ;;  %v41_v19 = vmul.f32 %v211_v17, %v211_v17  ;;  %v58_v57 = vmul.f32 %v56_v52, %v35_v15  ;;  %v60_v0 = vmul.f32 %v56_v52, %v211_v17 }
  0x96   :  { %46 = vadd.xlane.f32.xlu0 %v40_v16  ;;  %44 = vadd.xlane.f32.xlu1 %v39_v18 }
  0x9a   :  { %48 = vadd.xlane.f32.xlu1 %v41_v19 }
 0x11b   :  { %v43_v20 = vpop.xlane.xlu0 %42 }
 0x11c   :  { %v51_v21 = vmul.f32 0.007874016, %v43_v20 }
 0x11e   :  { %130 = vrsqrt.f32 %v51_v21  ;;  %vm63_vm0 = vcmp.eq.f32.partialorder %v51_v21, inf  ;;  %v66_v30 = vand.u32 2147483648, %v51_v21  ;;  %vm65_vm1 = vcmp.eq.f32.partialorder %v51_v21, 0.0 }
 0x11f   :  { %v45_v22 = vpop.xlane.xlu1 %44  ;;  %v47_v23 = vpop.xlane.xlu0 %46 }
 0x120   :  { %v52_v24 = vmul.f32 0.007874016, %v45_v22  ;;  %v53_v25 = vmul.f32 0.007874016, %v47_v23 }
 0x122   :  { %132 = vrsqrt.f32 %v52_v24  ;;  %vm70_vm2 = vcmp.eq.f32.partialorder %v52_v24, inf  ;;  %vm72_vm3 = vcmp.eq.f32.partialorder %v52_v24, 0.0  ;;  %v73_v37 = vand.u32 2147483648, %v52_v24 }
 0x123   :  { %134 = vrsqrt.f32 %v53_v25  ;;  %v49_v26 = vpop.xlane.xlu1 %48  ;;  %vm77_vm4 = vcmp.eq.f32.partialorder %v53_v25, inf  ;;  %v80_v40 = vand.u32 2147483648, %v53_v25  ;;  %vm79_vm5 = vcmp.eq.f32.partialorder %v53_v25, 0.0 }
 0x124   :  { %v54_v27 = vmul.f32 0.007874016, %v49_v26 }
 0x126   :  { %136 = vrsqrt.f32 %v54_v27  ;;  %vm84_vm6 = vcmp.eq.f32.partialorder %v54_v27, inf  ;;  %v87_v48 = vand.u32 2147483648, %v54_v27  ;;  %vm86_vm7 = vcmp.eq.f32.partialorder %v54_v27, 0.0 }
 0x12b   :  { %v131_v28 = vpop.eup %130 }
 0x12c   :  { %v62_v29 = vmul.f32 %v131_v28, %v51_v21 }
 0x12e   :  { %v64_v31 = vsel %vm63_vm0, %v51_v21, %v62_v29 }
 0x12f   :  { %v133_v32 = vpop.eup %132  ;;  %v67_v33 = vsel %vm65_vm1, %v66_v30, %v64_v31 }
 0x130   :  { %v135_v34 = vpop.eup %134  ;;  %v89_v35 = vadd.f32 1e-06, %v67_v33  ;;  %v69_v36 = vmul.f32 %v133_v32, %v52_v24 }
 0x131   :  { %v76_v38 = vmul.f32 %v135_v34, %v53_v25 }
 0x132   :  { %138 = vrcp.f32 %v89_v35  ;;  %v71_v39 = vsel %vm70_vm2, %v52_v24, %v69_v36 }
 0x133   :  { %v137_v41 = vpop.eup %136  ;;  %v74_v42 = vsel %vm72_vm3, %v73_v37, %v71_v39  ;;  %v78_v43 = vsel %vm77_vm4, %v53_v25, %v76_v38 }
 0x134   :  { %v90_v44 = vadd.f32 1e-06, %v74_v42  ;;  %v81_v45 = vsel %vm79_vm5, %v80_v40, %v78_v43  ;;  %v83_v46 = vmul.f32 %v137_v41, %v54_v27 }
 0x135   :  { %v91_v47 = vadd.f32 1e-06, %v81_v45 }
 0x136   :  { %140 = vrcp.f32 %v90_v44  ;;  %v85_v49 = vsel %vm84_vm6, %v54_v27, %v83_v46 }
 0x137   :  { %142 = vrcp.f32 %v91_v47  ;;  %v88_v50 = vsel %vm86_vm7, %v87_v48, %v85_v49 }
 0x138   :  { %v92_v51 = vadd.f32 1e-06, %v88_v50 }
 0x13a   :  { %144 = vrcp.f32 %v92_v51 }
 0x13f   :  { %v139_v54 = vpop.eup %138 }
 0x140   :  { %v94_v56 = vmul.f32 %v139_v54, %v57_v53 }
 0x142   :  { %v103_v58 = vadd.f32 %v102_v55, %v94_v56 }
 0x143   :  { %v141_v59 = vpop.eup %140 }
 0x144   :  { %v143_v61 = vpop.eup %142  ;;  %v96_v62 = vmul.f32 %v141_v59, %v58_v57  ;;  %107 = vst [vmem:[#allocation4] sm:$0xff] %v103_v58 }
 0x145   :  { %v98_v63 = vmul.f32 %v143_v61, %v59_v60 }
 0x146   :  { %v104_v1 = vadd.f32 %v102_v55, %v96_v62 }
 0x147   :  { %v145_v2 = vpop.eup %144  ;;  %v105_v3 = vadd.f32 %v102_v55, %v98_v63 }
 0x148   :  { %v100_v4 = vmul.f32 %v145_v2, %v60_v0  ;;  %108 = vst [vmem:[#allocation4 + $0x8] sm:$0xff] %v104_v1 }
 0x149   :  { %109 = vst [vmem:[#allocation4 + $0x10] sm:$0xff] %v105_v3 }
 0x14a   :  { %v106_v5 = vadd.f32 %v102_v55, %v100_v4 }
 0x14c   :  { %110 = vst [vmem:[#allocation4 + $0x18] sm:$0xff] %v106_v5 }
 0x14d   :  { %157 = shalt.err (!%p154_p4)
}
 0x14e   :  { %s169_s24 = smov 128   ;;  %s170_s25 = smov 8  }
 0x14f   :  { %122 = dma.vmem_to_hbm [thread:$0]  %s117_s23, 512, %s230_s3, [#allocation5], %s169_s24, %s169_s24, %s170_s25  }
 0x150   :  { %166 = dma.done.wait [#allocation5], 512  }
 0x151   :  { %167 = vsyncadd [#allocation5], 4294966784 }
 0x152   :  { %126 = vsyncpa [#allocation5], 1 }

</bundles_post_ra>
